<compile_context>
chip_gen: v7x
topology: tpu7x:2x2x1
jax: 0.10.0
libtpu: 0.0.40
codegen_flags: <defaults>
</compile_context>

<pallas_src>
import functools

import numpy as np
import jax
import jax.numpy as jnp
from jax.experimental import pallas as pl
from jax.experimental.pallas import tpu as pltpu


# ----------------------------- configuration ------------------------------
WINDOW_SIZE = (2, 4, 4)          # (Wd, Wh, Ww)  -> N = 32 tokens per window
DIM = 32                         # channels C
NUM_HEADS = 4                    # -> head_dim = 8
HEAD_DIM = DIM // NUM_HEADS
N_TOKENS = WINDOW_SIZE[0] * WINDOW_SIZE[1] * WINDOW_SIZE[2]
B_WINDOWS = 4                    # num_windows * batch


# ------------------------- parameter construction -------------------------
def init_params(key):
    ks = jax.random.split(key, 6)
    C, H = DIM, NUM_HEADS
    params = {
        # nn.Linear(dim, 3*dim, bias=True): weight (3C, C), bias (3C,)
        "w_qkv": 0.02 * jax.random.normal(ks[0], (3 * C, C), jnp.float32),
        "b_qkv": 0.02 * jax.random.normal(ks[1], (3 * C,), jnp.float32),
        # nn.Linear(dim, dim): weight (C, C), bias (C,)
        "w_proj": 0.02 * jax.random.normal(ks[2], (C, C), jnp.float32),
        "b_proj": 0.02 * jax.random.normal(ks[3], (C,), jnp.float32),
        # cpb_mlp: Linear(3, 512) + ReLU + Linear(512, H, bias=False)
        "cpb_w1": 0.02 * jax.random.normal(ks[4], (512, 3), jnp.float32),
        "cpb_b1": jnp.zeros((512,), jnp.float32),
        "cpb_w2": 0.02 * jax.random.normal(ks[5], (H, 512), jnp.float32),
        # logit_scale init: log(10 * ones(H, 1, 1))
        "logit_scale": jnp.log(10.0) * jnp.ones((H, 1, 1), jnp.float32),
    }
    return params


def make_relative_coords_table(window_size):
    Wd, Wh, Ww = window_size
    d = np.arange(-(Wd - 1), Wd, dtype=np.float32)
    h = np.arange(-(Wh - 1), Wh, dtype=np.float32)
    w = np.arange(-(Ww - 1), Ww, dtype=np.float32)
    grid = np.stack(np.meshgrid(d, h, w, indexing="ij"))            # (3, 2Wd-1, 2Wh-1, 2Ww-1)
    table = np.transpose(grid, (1, 2, 3, 0))[None].copy()           # (1, ..., 3)
    table[..., 0] /= (Wd - 1)
    table[..., 1] /= (Wh - 1)
    table[..., 2] /= (Ww - 1)
    table *= 8.0
    table = np.sign(table) * np.log2(np.abs(table) + 1.0) / np.log2(8.0)
    return jnp.asarray(table, jnp.float32)


def make_relative_position_index(window_size):
    Wd, Wh, Ww = window_size
    coords = np.stack(np.meshgrid(np.arange(Wd), np.arange(Wh), np.arange(Ww),
                                  indexing="ij"))                   # (3, Wd, Wh, Ww)
    cf = coords.reshape(3, -1)                                      # (3, N)
    rel = cf[:, :, None] - cf[:, None, :]                           # (3, N, N)
    rel = np.transpose(rel, (1, 2, 0)).copy()                       # (N, N, 3)
    rel[..., 0] += Wd - 1
    rel[..., 1] += Wh - 1
    rel[..., 2] += Ww - 1
    rel[..., 0] *= (2 * Wh - 1) * (2 * Ww - 1)
    rel[..., 1] *= (2 * Ww - 1)
    return jnp.asarray(rel.sum(-1), jnp.int32)                      # (N, N)


def precompute_bias_and_scale(params):
    """Input-independent preprocessing (glue): relative position bias + logit scale."""
    H, N = NUM_HEADS, N_TOKENS
    table = make_relative_coords_table(WINDOW_SIZE)                 # (1, ..., 3)
    rel_idx = make_relative_position_index(WINDOW_SIZE)             # (N, N)
    hidden = jnp.maximum(table @ params["cpb_w1"].T + params["cpb_b1"], 0.0)
    bias_table = (hidden @ params["cpb_w2"].T).reshape(-1, H)       # (num_rel, H)
    rpb = bias_table[rel_idx.reshape(-1)].reshape(N, N, H)
    rpb = jnp.transpose(rpb, (2, 0, 1))                             # (H, N, N)
    rpb = 16.0 * jax.nn.sigmoid(rpb)
    scale = jnp.exp(jnp.minimum(params["logit_scale"], jnp.log(1.0 / 0.01)))
    return rpb.astype(jnp.float32), scale.reshape(H).astype(jnp.float32)


# ------------------------------ Pallas kernel ------------------------------
def _window_attn_kernel(x_ref, wqkv_ref, bqkv_ref, scale_ref, gmask_ref,
                        hmask_ref, rpb_ref, wproj_ref, bproj_ref, o_ref,
                        *, num_windows, num_heads, n_tokens, head_dim):
    B, H, N, D = num_windows, num_heads, n_tokens, head_dim
    C = H * D

    x = x_ref[...]                                            # (B*N, C), all windows at once

    # --- QKV projection: three full-height (B*N, C) @ (C, C) MXU matmuls in
    # the merged-head channel layout (no per-head 8-lane tiles anywhere).
    q = jnp.dot(x, wqkv_ref[0], preferred_element_type=jnp.float32) + bqkv_ref[0]
    k = jnp.dot(x, wqkv_ref[1], preferred_element_type=jnp.float32) + bqkv_ref[1]
    v = jnp.dot(x, wqkv_ref[2], preferred_element_type=jnp.float32) + bqkv_ref[2]

    # --- Cosine attention: per-head L2 norms via a block-mask matmul.
    # (q*q) @ gmask leaves each head's sum-of-squares broadcast across that
    # head's lanes -- one MXU push, no segmented XLU reduction / re-broadcast.
    # The clamped/exp'd per-head logit scale is folded straight into q.
    gmask = gmask_ref[...]                                    # (C, C) 0/1 head blocks
    q_ss = jnp.dot(q * q, gmask, preferred_element_type=jnp.float32)
    k_ss = jnp.dot(k * k, gmask, preferred_element_type=jnp.float32)
    qn = q * jax.lax.rsqrt(jnp.maximum(q_ss, 1e-24)) * scale_ref[...]
    kn = k * jax.lax.rsqrt(jnp.maximum(k_ss, 1e-24))

    # --- Scores with heads stacked along sublanes: row (h*N + n) of window b
    # holds head h, token n.  Masking q to its own head's lanes makes a single
    # (H*N, C) x (N, C) matmul per window produce all heads' (N, N) scores.
    hmask = hmask_ref[...]                                    # (H, 1, C) 0/1 head-lane mask
    qn_w = qn.reshape(B, N, C)
    kn_w = kn.reshape(B, N, C)
    v_w = v.reshape(B, N, C)
    q_t = (qn_w[:, None, :, :] * hmask[None]).reshape(B, H * N, C)

    s = jnp.einsum("bqc,bmc->bqm", q_t, kn_w,
                   preferred_element_type=jnp.float32)        # (B, H*N, N)
    s = s + rpb_ref[...]                                      # (H*N, N) bias, bcast over windows

    # --- Softmax over keys.  Max-subtraction kept: a trained (clamped) logit
    # scale of 100 can push logits to ~116, past the f32 exp range.
    s = s - jnp.max(s, axis=-1, keepdims=True)
    e = jnp.exp(s)
    p = e * pl.reciprocal(jnp.sum(e, axis=-1, keepdims=True), approx=True)

    # --- attn @ V in the same stacked layout; the MXU also produces cross-head
    # channel blocks, which are masked away before the head merge (block-row sum).
    o = jnp.einsum("bqm,bmc->bqc", p, v_w,
                   preferred_element_type=jnp.float32)        # (B, H*N, C)
    o = (o.reshape(B, H, N, C) * hmask[None]).sum(axis=1)     # merge heads -> (B, N, C)
    o = o.reshape(B * N, C)

    # --- Output projection (single matmul) + bias.
    y = jnp.dot(o, wproj_ref[...], preferred_element_type=jnp.float32) + bproj_ref[...]
    o_ref[...] = y.astype(o_ref.dtype)


def window_attention_3d(x, params, rpb, scale):
    B_, N, C = x.shape
    H = NUM_HEADS
    D = C // H
    BN = B_ * N

    # torch nn.Linear stores (out, in); pre-transpose so the kernel does x @ W.
    w_qkv_t = jnp.transpose(params["w_qkv"].reshape(3, C, C), (0, 2, 1))  # (3, C_in, C_out)
    b_qkv3 = params["b_qkv"].reshape(3, 1, C)
    w_proj_t = params["w_proj"].T                                         # (C, C)
    b_proj = params["b_proj"].reshape(1, C)

    # Per-head logit scale replicated across that head's lanes.
    scale_lanes = jnp.repeat(scale.reshape(H, 1), D, axis=1).reshape(1, C)
    # 0/1 masks encoding the head <-> channel-group structure.
    cid = jnp.arange(C) // D
    gmask = (cid[:, None] == cid[None, :]).astype(jnp.float32)            # (C, C)
    hmask = (jnp.arange(H)[:, None, None] == cid[None, None, :]).astype(jnp.float32)  # (H, 1, C)
    # Relative-position bias packed to match the (head*N, N) score layout.
    rpb_packed = rpb.reshape(H * N, N)

    x2 = x.reshape(BN, C)                                     # all windows in one slab

    kernel = functools.partial(_window_attn_kernel, num_windows=B_,
                               num_heads=H, n_tokens=N, head_dim=D)
    out = pl.pallas_call(
        kernel,
        out_shape=jax.ShapeDtypeStruct((BN, C), x.dtype),
        grid=(1,),                                            # whole problem fits in VMEM
        in_specs=[
            pl.BlockSpec((BN, C), lambda i: (0, 0)),          # x (all windows)
            pl.BlockSpec((3, C, C), lambda i: (0, 0, 0)),     # Wq/Wk/Wv (pre-transposed)
            pl.BlockSpec((3, 1, C), lambda i: (0, 0, 0)),     # bq/bk/bv
            pl.BlockSpec((1, C), lambda i: (0, 0)),           # per-head logit scale on lanes
            pl.BlockSpec((C, C), lambda i: (0, 0)),           # head-block mask (sumsq matmul)
            pl.BlockSpec((H, 1, C), lambda i: (0, 0, 0)),     # head-lane mask
            pl.BlockSpec((H * N, N), lambda i: (0, 0)),       # 16*sigmoid(rel-pos bias), packed
            pl.BlockSpec((C, C), lambda i: (0, 0)),           # W_proj^T
            pl.BlockSpec((1, C), lambda i: (0, 0)),           # b_proj
        ],
        out_specs=pl.BlockSpec((BN, C), lambda i: (0, 0)),
        compiler_params=pltpu.CompilerParams(dimension_semantics=("arbitrary",)),
    )(x2, w_qkv_t, b_qkv3, scale_lanes, gmask, hmask, rpb_packed, w_proj_t, b_proj)
    return out.reshape(B_, N, C)


# ---------------------------- pure-JAX reference ----------------------------
def reference(x, params, rpb, scale):
    B_, N, C = x.shape
    H, hd = NUM_HEADS, HEAD_DIM
    qkv = x @ params["w_qkv"].T + params["b_qkv"]
    qkv = qkv.reshape(B_, N, 3, H, hd).transpose(2, 0, 3, 1, 4)
    q, k, v = qkv[0], qkv[1], qkv[2]
    qn = q / jnp.maximum(jnp.linalg.norm(q, axis=-1, keepdims=True), 1e-12)
    kn = k / jnp.maximum(jnp.linalg.norm(k, axis=-1, keepdims=True), 1e-12)
    attn = qn @ jnp.swapaxes(kn, -2, -1)
    attn = attn * scale.reshape(1, H, 1, 1)
    attn = attn + rpb[None]
    attn = jax.nn.softmax(attn, axis=-1)
    out = (attn @ v).transpose(0, 2, 1, 3).reshape(B_, N, C)
    return out @ params["w_proj"].T + params["b_proj"]


# ----------------------------------- main -----------------------------------
if __name__ == "__main__":
    key = jax.random.PRNGKey(0)
    k_param, k_x = jax.random.split(key)
    params = init_params(k_param)
    rpb, scale = precompute_bias_and_scale(params)

    x = jax.random.normal(k_x, (B_WINDOWS, N_TOKENS, DIM), jnp.float32)

    out = jax.block_until_ready(window_attention_3d(x, params, rpb, scale))
    ref = jax.block_until_ready(reference(x, params, rpb, scale))

    # Tolerance accounts for the approximate (EUP) reciprocal in the softmax
    # denominator; real structural errors are orders of magnitude larger.
    np.testing.assert_allclose(np.asarray(out), np.asarray(ref), rtol=1e-3, atol=1e-3)

    print("KERNEL_OK")
</pallas_src>

<mosaic_0001>
module attributes {stable_mosaic.version = 11 : i64} {
  func.func @_window_attn_kernel(%arg0: i32, %arg1: memref<128x32xf32, #tpu.memory_space<vmem>>, %arg2: memref<3x32x32xf32, #tpu.memory_space<vmem>>, %arg3: memref<3x1x32xf32, #tpu.memory_space<vmem>>, %arg4: memref<1x32xf32, #tpu.memory_space<vmem>>, %arg5: memref<32x32xf32, #tpu.memory_space<vmem>>, %arg6: memref<4x1x32xf32, #tpu.memory_space<vmem>>, %arg7: memref<128x32xf32, #tpu.memory_space<vmem>>, %arg8: memref<32x32xf32, #tpu.memory_space<vmem>>, %arg9: memref<1x32xf32, #tpu.memory_space<vmem>>, %arg10: memref<128x32xf32, #tpu.memory_space<vmem>>) attributes {dimension_semantics = [#tpu.dimension_semantics<arbitrary>], iteration_bounds = array<i64: 1>, scalar_prefetch = 0 : i64, scratch_operands = 0 : i64, tpu.core_type = #tpu.core_type<tc>, window_params = [{pipeline_mode = #tpu.pipeline_mode<synchronous>, transform_indices = @transform_0, window_bounds = array<i64: 128, 32>}, {pipeline_mode = #tpu.pipeline_mode<synchronous>, transform_indices = @transform_1, window_bounds = array<i64: 3, 32, 32>}, {pipeline_mode = #tpu.pipeline_mode<synchronous>, transform_indices = @transform_2, window_bounds = array<i64: 3, 1, 32>}, {pipeline_mode = #tpu.pipeline_mode<synchronous>, transform_indices = @transform_3, window_bounds = array<i64: 1, 32>}, {pipeline_mode = #tpu.pipeline_mode<synchronous>, transform_indices = @transform_4, window_bounds = array<i64: 32, 32>}, {pipeline_mode = #tpu.pipeline_mode<synchronous>, transform_indices = @transform_5, window_bounds = array<i64: 4, 1, 32>}, {pipeline_mode = #tpu.pipeline_mode<synchronous>, transform_indices = @transform_6, window_bounds = array<i64: 128, 32>}, {pipeline_mode = #tpu.pipeline_mode<synchronous>, transform_indices = @transform_7, window_bounds = array<i64: 32, 32>}, {pipeline_mode = #tpu.pipeline_mode<synchronous>, transform_indices = @transform_8, window_bounds = array<i64: 1, 32>}, {pipeline_mode = #tpu.pipeline_mode<synchronous>, transform_indices = @transform_9, window_bounds = array<i64: 128, 32>}]} {
    %c0 = arith.constant 0 : index
    %c0_0 = arith.constant 0 : index
    %0 = vector.load %arg1[%c0, %c0_0] : memref<128x32xf32, #tpu.memory_space<vmem>>, vector<128x32xf32>
    %c0_1 = arith.constant 0 : index
    %c0_2 = arith.constant 0 : index
    %c0_3 = arith.constant 0 : index
    %1 = vector.load %arg2[%c0_1, %c0_2, %c0_3] : memref<3x32x32xf32, #tpu.memory_space<vmem>>, vector<1x32x32xf32>
    %2 = vector.shape_cast %1 : vector<1x32x32xf32> to vector<32x32xf32>
    %cst = arith.constant dense<0.000000e+00> : vector<128x32xf32>
    %3 = tpu.matmul %0, %2, %cst {dimension_numbers = #tpu.dot_dimension_numbers<[1], [0], [0], [1], [0, 0, 1, 1], [], []>} : vector<128x32xf32>, vector<32x32xf32>, vector<128x32xf32> -> vector<128x32xf32>
    %c0_4 = arith.constant 0 : index
    %c0_5 = arith.constant 0 : index
    %c0_6 = arith.constant 0 : index
    %4 = vector.load %arg3[%c0_4, %c0_5, %c0_6] : memref<3x1x32xf32, #tpu.memory_space<vmem>>, vector<1x1x32xf32>
    %5 = vector.shape_cast %4 : vector<1x1x32xf32> to vector<1x32xf32>
    %6 = vector.broadcast %5 : vector<1x32xf32> to vector<128x32xf32>
    %7 = arith.addf %3, %6 : vector<128x32xf32>
    %c1 = arith.constant 1 : index
    %c0_7 = arith.constant 0 : index
    %c0_8 = arith.constant 0 : index
    %8 = vector.load %arg2[%c1, %c0_7, %c0_8] : memref<3x32x32xf32, #tpu.memory_space<vmem>>, vector<1x32x32xf32>
    %9 = vector.shape_cast %8 : vector<1x32x32xf32> to vector<32x32xf32>
    %cst_9 = arith.constant dense<0.000000e+00> : vector<128x32xf32>
    %10 = tpu.matmul %0, %9, %cst_9 {dimension_numbers = #tpu.dot_dimension_numbers<[1], [0], [0], [1], [0, 0, 1, 1], [], []>} : vector<128x32xf32>, vector<32x32xf32>, vector<128x32xf32> -> vector<128x32xf32>
    %c1_10 = arith.constant 1 : index
    %c0_11 = arith.constant 0 : index
    %c0_12 = arith.constant 0 : index
    %11 = vector.load %arg3[%c1_10, %c0_11, %c0_12] : memref<3x1x32xf32, #tpu.memory_space<vmem>>, vector<1x1x32xf32>
    %12 = vector.shape_cast %11 : vector<1x1x32xf32> to vector<1x32xf32>
    %13 = vector.broadcast %12 : vector<1x32xf32> to vector<128x32xf32>
    %14 = arith.addf %10, %13 : vector<128x32xf32>
    %c2 = arith.constant 2 : index
    %c0_13 = arith.constant 0 : index
    %c0_14 = arith.constant 0 : index
    %15 = vector.load %arg2[%c2, %c0_13, %c0_14] : memref<3x32x32xf32, #tpu.memory_space<vmem>>, vector<1x32x32xf32>
    %16 = vector.shape_cast %15 : vector<1x32x32xf32> to vector<32x32xf32>
    %cst_15 = arith.constant dense<0.000000e+00> : vector<128x32xf32>
    %17 = tpu.matmul %0, %16, %cst_15 {dimension_numbers = #tpu.dot_dimension_numbers<[1], [0], [0], [1], [0, 0, 1, 1], [], []>} : vector<128x32xf32>, vector<32x32xf32>, vector<128x32xf32> -> vector<128x32xf32>
    %c2_16 = arith.constant 2 : index
    %c0_17 = arith.constant 0 : index
    %c0_18 = arith.constant 0 : index
    %18 = vector.load %arg3[%c2_16, %c0_17, %c0_18] : memref<3x1x32xf32, #tpu.memory_space<vmem>>, vector<1x1x32xf32>
    %19 = vector.shape_cast %18 : vector<1x1x32xf32> to vector<1x32xf32>
    %20 = vector.broadcast %19 : vector<1x32xf32> to vector<128x32xf32>
    %21 = arith.addf %17, %20 : vector<128x32xf32>
    %c0_19 = arith.constant 0 : index
    %c0_20 = arith.constant 0 : index
    %22 = vector.load %arg5[%c0_19, %c0_20] : memref<32x32xf32, #tpu.memory_space<vmem>>, vector<32x32xf32>
    %23 = arith.mulf %7, %7 : vector<128x32xf32>
    %cst_21 = arith.constant dense<0.000000e+00> : vector<128x32xf32>
    %24 = tpu.matmul %23, %22, %cst_21 {dimension_numbers = #tpu.dot_dimension_numbers<[1], [0], [0], [1], [0, 0, 1, 1], [], []>} : vector<128x32xf32>, vector<32x32xf32>, vector<128x32xf32> -> vector<128x32xf32>
    %25 = arith.mulf %14, %14 : vector<128x32xf32>
    %cst_22 = arith.constant dense<0.000000e+00> : vector<128x32xf32>
    %26 = tpu.matmul %25, %22, %cst_22 {dimension_numbers = #tpu.dot_dimension_numbers<[1], [0], [0], [1], [0, 0, 1, 1], [], []>} : vector<128x32xf32>, vector<32x32xf32>, vector<128x32xf32> -> vector<128x32xf32>
    %cst_23 = arith.constant 1.000000e-24 : f32
    %27 = vector.broadcast %cst_23 : f32 to vector<128x32xf32>
    %28 = arith.maximumf %24, %27 : vector<128x32xf32>
    %29 = math.rsqrt %28 : vector<128x32xf32>
    %30 = arith.mulf %7, %29 : vector<128x32xf32>
    %c0_24 = arith.constant 0 : index
    %c0_25 = arith.constant 0 : index
    %31 = vector.load %arg4[%c0_24, %c0_25] : memref<1x32xf32, #tpu.memory_space<vmem>>, vector<1x32xf32>
    %32 = vector.broadcast %31 : vector<1x32xf32> to vector<128x32xf32>
    %33 = arith.mulf %30, %32 : vector<128x32xf32>
    %cst_26 = arith.constant 1.000000e-24 : f32
    %34 = vector.broadcast %cst_26 : f32 to vector<128x32xf32>
    %35 = arith.maximumf %26, %34 : vector<128x32xf32>
    %36 = math.rsqrt %35 : vector<128x32xf32>
    %37 = arith.mulf %14, %36 : vector<128x32xf32>
    %c0_27 = arith.constant 0 : index
    %c0_28 = arith.constant 0 : index
    %c0_29 = arith.constant 0 : index
    %38 = vector.load %arg6[%c0_27, %c0_28, %c0_29] : memref<4x1x32xf32, #tpu.memory_space<vmem>>, vector<4x1x32xf32>
    %39 = vector.shape_cast %33 : vector<128x32xf32> to vector<4x32x32xf32>
    %40 = vector.shape_cast %37 : vector<128x32xf32> to vector<4x32x32xf32>
    %41 = vector.shape_cast %21 : vector<128x32xf32> to vector<4x32x32xf32>
    %42 = vector.shape_cast %39 : vector<4x32x32xf32> to vector<4x1x32x32xf32>
    %43 = vector.shape_cast %38 : vector<4x1x32xf32> to vector<1x4x1x32xf32>
    %44 = vector.broadcast %42 : vector<4x1x32x32xf32> to vector<4x4x32x32xf32>
    %45 = vector.broadcast %43 : vector<1x4x1x32xf32> to vector<4x4x32x32xf32>
    %46 = arith.mulf %44, %45 : vector<4x4x32x32xf32>
    %47 = vector.shape_cast %46 : vector<4x4x32x32xf32> to vector<4x128x32xf32>
    "tpu.trace_start"() <{level = 10 : i32, message = "bqc,bmc->bqm"}> : () -> ()
    %cst_30 = arith.constant dense<0.000000e+00> : vector<4x128x32xf32>
    %48 = tpu.matmul %47, %40, %cst_30 {dimension_numbers = #tpu.dot_dimension_numbers<[2], [2], [1], [1], [0, 0, 0, 1, 1, 1], [0], [0]>} : vector<4x128x32xf32>, vector<4x32x32xf32>, vector<4x128x32xf32> -> vector<4x128x32xf32>
    "tpu.trace_stop"() : () -> ()
    %c0_31 = arith.constant 0 : index
    %c0_32 = arith.constant 0 : index
    %49 = vector.load %arg7[%c0_31, %c0_32] : memref<128x32xf32, #tpu.memory_space<vmem>>, vector<128x32xf32>
    %50 = vector.shape_cast %49 : vector<128x32xf32> to vector<1x128x32xf32>
    %51 = vector.broadcast %50 : vector<1x128x32xf32> to vector<4x128x32xf32>
    %52 = arith.addf %48, %51 : vector<4x128x32xf32>
    %cst_33 = arith.constant dense<0xFF800000> : vector<4x128xf32>
    %53 = vector.multi_reduction <maximumf>, %52, %cst_33 [2] : vector<4x128x32xf32> to vector<4x128xf32>
    %54 = vector.shape_cast %53 : vector<4x128xf32> to vector<4x128x1xf32>
    %55 = vector.broadcast %54 : vector<4x128x1xf32> to vector<4x128x32xf32>
    %56 = arith.subf %52, %55 : vector<4x128x32xf32>
    %57 = math.exp %56 : vector<4x128x32xf32>
    %cst_34 = arith.constant dense<0.000000e+00> : vector<4x128xf32>
    %58 = vector.multi_reduction <add>, %57, %cst_34 [2] : vector<4x128x32xf32> to vector<4x128xf32>
    %59 = vector.shape_cast %58 : vector<4x128xf32> to vector<4x128x1xf32>
    %60 = tpu.reciprocal %59 {approx = true} : vector<4x128x1xf32> -> vector<4x128x1xf32>
    %61 = vector.broadcast %60 : vector<4x128x1xf32> to vector<4x128x32xf32>
    %62 = arith.mulf %57, %61 : vector<4x128x32xf32>
    "tpu.trace_start"() <{level = 10 : i32, message = "bqm,bmc->bqc"}> : () -> ()
    %cst_35 = arith.constant dense<0.000000e+00> : vector<4x128x32xf32>
    %63 = tpu.matmul %62, %41, %cst_35 {dimension_numbers = #tpu.dot_dimension_numbers<[2], [1], [1], [2], [0, 0, 0, 1, 1, 2], [0], [0]>} : vector<4x128x32xf32>, vector<4x32x32xf32>, vector<4x128x32xf32> -> vector<4x128x32xf32>
    "tpu.trace_stop"() : () -> ()
    %64 = vector.shape_cast %63 : vector<4x128x32xf32> to vector<4x4x32x32xf32>
    %65 = vector.shape_cast %38 : vector<4x1x32xf32> to vector<1x4x1x32xf32>
    %66 = vector.broadcast %65 : vector<1x4x1x32xf32> to vector<4x4x32x32xf32>
    %67 = arith.mulf %64, %66 : vector<4x4x32x32xf32>
    %cst_36 = arith.constant dense<0.000000e+00> : vector<4x32x32xf32>
    %68 = vector.multi_reduction <add>, %67, %cst_36 [1] : vector<4x4x32x32xf32> to vector<4x32x32xf32>
    %69 = vector.shape_cast %68 : vector<4x32x32xf32> to vector<128x32xf32>
    %c0_37 = arith.constant 0 : index
    %c0_38 = arith.constant 0 : index
    %70 = vector.load %arg8[%c0_37, %c0_38] : memref<32x32xf32, #tpu.memory_space<vmem>>, vector<32x32xf32>
    %cst_39 = arith.constant dense<0.000000e+00> : vector<128x32xf32>
    %71 = tpu.matmul %69, %70, %cst_39 {dimension_numbers = #tpu.dot_dimension_numbers<[1], [0], [0], [1], [0, 0, 1, 1], [], []>} : vector<128x32xf32>, vector<32x32xf32>, vector<128x32xf32> -> vector<128x32xf32>
    %c0_40 = arith.constant 0 : index
    %c0_41 = arith.constant 0 : index
    %72 = vector.load %arg9[%c0_40, %c0_41] : memref<1x32xf32, #tpu.memory_space<vmem>>, vector<1x32xf32>
    %73 = vector.broadcast %72 : vector<1x32xf32> to vector<128x32xf32>
    %74 = arith.addf %71, %73 : vector<128x32xf32>
    %c0_42 = arith.constant 0 : index
    %c0_43 = arith.constant 0 : index
    %75 = vector.load %arg10[%c0_42, %c0_43] : memref<128x32xf32, #tpu.memory_space<vmem>>, vector<128x32xf32>
    tpu.vector_store %arg10[%c0_42, %c0_43], %74 {strides = array<i32>} : memref<128x32xf32, #tpu.memory_space<vmem>>, vector<128x32xf32>,
    return
  }
  func.func @transform_0(%arg0: i32) -> (i32, i32) {
    %c0_i32 = arith.constant 0 : i32
    %c0_i32_0 = arith.constant 0 : i32
    %c0_i32_1 = arith.constant 0 : i32
    return %c0_i32, %c0_i32_0 : i32, i32
  }
  func.func @transform_1(%arg0: i32) -> (i32, i32, i32) {
    %c0_i32 = arith.constant 0 : i32
    %c0_i32_0 = arith.constant 0 : i32
    %c0_i32_1 = arith.constant 0 : i32
    %c0_i32_2 = arith.constant 0 : i32
    return %c0_i32, %c0_i32_0, %c0_i32_1 : i32, i32, i32
  }
  func.func @transform_2(%arg0: i32) -> (i32, i32, i32) {
    %c0_i32 = arith.constant 0 : i32
    %c0_i32_0 = arith.constant 0 : i32
    %c0_i32_1 = arith.constant 0 : i32
    %c0_i32_2 = arith.constant 0 : i32
    return %c0_i32, %c0_i32_0, %c0_i32_1 : i32, i32, i32
  }
  func.func @transform_3(%arg0: i32) -> (i32, i32) {
    %c0_i32 = arith.constant 0 : i32
    %c0_i32_0 = arith.constant 0 : i32
    %c0_i32_1 = arith.constant 0 : i32
    return %c0_i32, %c0_i32_0 : i32, i32
  }
  func.func @transform_4(%arg0: i32) -> (i32, i32) {
    %c0_i32 = arith.constant 0 : i32
    %c0_i32_0 = arith.constant 0 : i32
    %c0_i32_1 = arith.constant 0 : i32
    return %c0_i32, %c0_i32_0 : i32, i32
  }
  func.func @transform_5(%arg0: i32) -> (i32, i32, i32) {
    %c0_i32 = arith.constant 0 : i32
    %c0_i32_0 = arith.constant 0 : i32
    %c0_i32_1 = arith.constant 0 : i32
    %c0_i32_2 = arith.constant 0 : i32
    return %c0_i32, %c0_i32_0, %c0_i32_1 : i32, i32, i32
  }
  func.func @transform_6(%arg0: i32) -> (i32, i32) {
    %c0_i32 = arith.constant 0 : i32
    %c0_i32_0 = arith.constant 0 : i32
    %c0_i32_1 = arith.constant 0 : i32
    return %c0_i32, %c0_i32_0 : i32, i32
  }
  func.func @transform_7(%arg0: i32) -> (i32, i32) {
    %c0_i32 = arith.constant 0 : i32
    %c0_i32_0 = arith.constant 0 : i32
    %c0_i32_1 = arith.constant 0 : i32
    return %c0_i32, %c0_i32_0 : i32, i32
  }
  func.func @transform_8(%arg0: i32) -> (i32, i32) {
    %c0_i32 = arith.constant 0 : i32
    %c0_i32_0 = arith.constant 0 : i32
    %c0_i32_1 = arith.constant 0 : i32
    return %c0_i32, %c0_i32_0 : i32, i32
  }
  func.func @transform_9(%arg0: i32) -> (i32, i32) {
    %c0_i32 = arith.constant 0 : i32
    %c0_i32_0 = arith.constant 0 : i32
    %c0_i32_1 = arith.constant 0 : i32
    return %c0_i32, %c0_i32_0 : i32, i32
  }
}

</mosaic_0001>

<bundles_post_ra>
// kernel: tpu_custom_call.1
= control target key start
LH: loop header
LB: loop body
LE: loop exit
PB: predicated region body
PF: predicated region fallthrough
CT: control target
= control target key end

     0   :  { %vm59_vm0 = vcmask 261120   ;;  %s7264_s1 = inlined_call_operand.vmem [shape: f32[3,32,32], index: 1, kind: input, shape index: {}]   ;;  %s7265_s0 = inlined_call_operand.vmem [shape: f32[128,32], index: 0, kind: input, shape index: {}]   ;;  %s7266_s4 = inlined_call_operand.vmem [shape: f32[32,32], index: 4, kind: input, shape index: {}]   ;;  %s7267_s2 = inlined_call_operand.vmem [shape: f32[3,1,32], index: 2, kind: input, shape index: {}]   ;;  %s7268_s3 = inlined_call_operand.vmem [shape: f32[1,32], index: 3, kind: input, shape index: {}]   ;;  %s7269_s5 = inlined_call_operand.vmem [shape: f32[4,1,32], index: 5, kind: input, shape index: {}]   ;;  %s7270_s6 = inlined_call_operand.vmem [shape: f32[128,32], index: 6, kind: input, shape index: {}]   ;;  %s7271_s7 = inlined_call_operand.vmem [shape: f32[32,32], index: 7, kind: input, shape index: {}]   ;;  %s7272_s8 = inlined_call_operand.vmem [shape: f32[1,32], index: 8, kind: input, shape index: {}]   ;;  %s7273_s9 = inlined_call_operand.vmem [shape: f32[128,32], index: 9, kind: output, shape index: {}]  }
   0x1   :  { %v48_v0 = vld [vmem:[%s7264_s1] sm:$0xff]  ;;  %v49_v1 = vld [vmem:[%s7264_s1 + $0x8] sm:$0xff]  ;;  %v50_v5 = vld [vmem:[%s7264_s1 + $0x10] sm:$0xff] }
   0x2   :  { %v3931_v2 = vld [vmem:[%s7264_s1 + $0x20] sm:$0xff]  ;;  %v4901_v3 = vpack.c.bf16 %v49_v1, %v48_v0  ;;  %v3932_v4 = vld [vmem:[%s7264_s1 + $0x28] sm:$0xff]  ;;  %v51_v6 = vld [vmem:[%s7264_s1 + $0x18] sm:$0xff] }
   0x3   :  { %v4909_v7 = vpack.c.bf16 %v3932_v4, %v3931_v2  ;;  %v4905_v8 = vpack.c.bf16 %v51_v6, %v50_v5  ;;  %v3933_v9 = vld [vmem:[%s7264_s1 + $0x30] sm:$0xff]  ;;  %v3934_v10 = vld [vmem:[%s7264_s1 + $0x38] sm:$0xff]  ;;  %v5430_v11 = vld [vmem:[%s7265_s0] sm:$0xff] }
   0x4   :  { %4902 = vmatprep.subr.bf16.mxu0 %v4901_v3  ;;  %v4913_v12 = vpack.c.bf16 %v3934_v10, %v3933_v9  ;;  %4461 = vmatprep.mubr.msk.f32.mxu0 %vm59_vm0, %v5430_v11  ;;  %v5439_v13 = vld [vmem:[%s7265_s0 + $0x8] sm:$0xff]  ;;  %v5444_v14 = vld [vmem:[%s7265_s0 + $0x10] sm:$0xff]  ;;  %v3953_v15 = vld [vmem:[%s7264_s1 + $0x40] sm:$0xff] }
   0x5   :  { %4910 = vmatprep.subr.bf16.mxu1 %v4909_v7  ;;  %4904 = vmatpush3.bf16.msra.mxu0 %v4901_v3  ;;  %v3954_v16 = vld [vmem:[%s7264_s1 + $0x48] sm:$0xff]  ;;  %v3955_v17 = vld [vmem:[%s7264_s1 + $0x50] sm:$0xff]  ;;  %v3956_v19 = vld [vmem:[%s7264_s1 + $0x58] sm:$0xff] }
   0x6   :  { %4912 = vmatpush3.bf16.msra.mxu1 %v4909_v7  ;;  %4906 = vmatprep.subr.bf16.mxu0 %v4905_v8  ;;  %v4917_v18 = vpack.c.bf16 %v3954_v16, %v3953_v15  ;;  %v569_v20 = vld [vmem:[%s7266_s4] sm:$0xff]  ;;  %v570_v21 = vld [vmem:[%s7266_s4 + $0x8] sm:$0xff]  ;;  %v4921_v22 = vpack.c.bf16 %v3956_v19, %v3955_v17  ;;  %v35_v24 = vld [vmem:[%s7265_s0 + $0x18] sm:$0xff] }
   0x7   :  { %4914 = vmatprep.subr.bf16.mxu1 %v4913_v12  ;;  %4493 = vmatprep.mubr.msk.f32.mxu1 %vm59_vm0, %v5430_v11  ;;  %v4925_v23 = vpack.c.bf16 %v570_v21, %v569_v20  ;;  %v36_v25 = vld [vmem:[%s7265_s0 + $0x20] sm:$0xff]  ;;  %v37_v26 = vld [vmem:[%s7265_s0 + $0x28] sm:$0xff]  ;;  %v38_v27 = vld [vmem:[%s7265_s0 + $0x30] sm:$0xff] }
   0x8   :  { %v39_v28 = vld [vmem:[%s7265_s0 + $0x38] sm:$0xff]  ;;  %v40_v29 = vld [vmem:[%s7265_s0 + $0x40] sm:$0xff]  ;;  %v41_v30 = vld [vmem:[%s7265_s0 + $0x48] sm:$0xff] }
   0x9   :  { %4908 = vmatpush3.bf16.msra.mxu0 %v4905_v8  ;;  %v42_v31 = vld [vmem:[%s7265_s0 + $0x50] sm:$0xff]  ;;  %v43_v32 = vld [vmem:[%s7265_s0 + $0x58] sm:$0xff]  ;;  %v44_v33 = vld [vmem:[%s7265_s0 + $0x60] sm:$0xff] }
   0xa   :  { %4916 = vmatpush3.bf16.msra.mxu1 %v4913_v12  ;;  %4918 = vmatprep.subr.bf16.mxu0 %v4917_v18  ;;  %v45_v34 = vld [vmem:[%s7265_s0 + $0x68] sm:$0xff]  ;;  %v46_v35 = vld [vmem:[%s7265_s0 + $0x70] sm:$0xff]  ;;  %v47_v36 = vld [vmem:[%s7265_s0 + $0x78] sm:$0xff] }
   0xb   :  { %4926 = vmatprep.subr.bf16.mxu1 %v4925_v23  ;;  %v571_v37 = vld [vmem:[%s7266_s4 + $0x10] sm:$0xff]  ;;  %v572_v38 = vld [vmem:[%s7266_s4 + $0x18] sm:$0xff]  ;;  %v5565_v40 = vld [vmem:[%s7267_s2] ss:$0 sm:$0xff] }
   0xc   :  { %4462 = vmatmul.mubr.msk.f32.vlgmr.msra.gmra.mrb[0].mxu0 %vm59_vm0, %v5439_v13  ;;  %v4929_v39 = vpack.c.bf16 %v572_v38, %v571_v37  ;;  %v5570_v41 = vld [vmem:[%s7267_s2 + $0x1] ss:$0 sm:$0xff]  ;;  %vm5805_vm1 = vmpackc.low %vm59_vm0, %vm59_vm0 }
   0xd   :  { %4494 = vmatmul.mubr.msk.f32.vlgmr.msra.gmra.mrb[0].mxu1 %vm59_vm0, %v5439_v13  ;;  %4464 = vmatprep.mubr.msk.f32.mxu0 %vm59_vm0, %v5444_v14 }
   0xe   :  { %4496 = vmatprep.mubr.msk.f32.mxu1 %vm59_vm0, %v5444_v14  ;;  %4920 = vmatpush3.bf16.msra.mxu0 %v4917_v18 }
   0xf   :  { %4922 = vmatprep.subr.bf16.mxu0 %v4921_v22  ;;  %4928 = vmatpush3.bf16.msra.mxu1 %v4925_v23 }
  0x10   :  { %4465 = vmatmul.mubr.msk.f32.gmra.mrb[2].mxu0 %vm59_vm0, %v35_v24  ;;  %4930 = vmatprep.subr.bf16.mxu1 %v4929_v39 }
  0x11   :  { %4497 = vmatmul.mubr.msk.f32.gmra.mrb[2].mxu1 %vm59_vm0, %v35_v24  ;;  %4467 = vmatprep.mubr.msk.f32.mxu0 %vm59_vm0, %v36_v25 }
  0x12   :  { %4499 = vmatprep.mubr.msk.f32.mxu1 %vm59_vm0, %v36_v25  ;;  %4924 = vmatpush3.bf16.msra.mxu0 %v4921_v22 }
  0x13   :  { %4934 = vmatprep.subr.bf16.mxu0 %v4925_v23  ;;  %4932 = vmatpush3.bf16.msra.mxu1 %v4929_v39 }
  0x14   :  { %4468 = vmatmul.mubr.msk.f32.gmra.mrb[4].mxu0 %vm59_vm0, %v37_v26 }
  0x15   :  { %4500 = vmatmul.mubr.msk.f32.gmra.mrb[4].mxu1 %vm59_vm0, %v37_v26  ;;  %4470 = vmatprep.mubr.msk.f32.mxu0 %vm59_vm0, %v38_v27 }
  0x16   :  { %4502 = vmatprep.mubr.msk.f32.mxu1 %vm59_vm0, %v38_v27 }
  0x18   :  { %4471 = vmatmul.mubr.msk.f32.gmra.mrb[6].mxu0 %vm59_vm0, %v39_v28 }
  0x19   :  { %4503 = vmatmul.mubr.msk.f32.gmra.mrb[6].mxu1 %vm59_vm0, %v39_v28  ;;  %4473 = vmatprep.mubr.msk.f32.mxu0 %vm59_vm0, %v40_v29 }
  0x1a   :  { %4505 = vmatprep.mubr.msk.f32.mxu1 %vm59_vm0, %v40_v29 }
  0x1c   :  { %4474 = vmatmul.mubr.msk.f32.gmra.mrb[8].mxu0 %vm59_vm0, %v41_v30 }
  0x1d   :  { %4506 = vmatmul.mubr.msk.f32.gmra.mrb[8].mxu1 %vm59_vm0, %v41_v30  ;;  %4476 = vmatprep.mubr.msk.f32.mxu0 %vm59_vm0, %v42_v31 }
  0x1e   :  { %4508 = vmatprep.mubr.msk.f32.mxu1 %vm59_vm0, %v42_v31 }
  0x20   :  { %4477 = vmatmul.mubr.msk.f32.gmra.mrb[10].mxu0 %vm59_vm0, %v43_v32 }
  0x21   :  { %4509 = vmatmul.mubr.msk.f32.gmra.mrb[10].mxu1 %vm59_vm0, %v43_v32  ;;  %4479 = vmatprep.mubr.msk.f32.mxu0 %vm59_vm0, %v44_v33 }
  0x22   :  { %4511 = vmatprep.mubr.msk.f32.mxu1 %vm59_vm0, %v44_v33 }
  0x24   :  { %4480 = vmatmul.mubr.msk.f32.gmra.mrb[12].mxu0 %vm59_vm0, %v45_v34 }
  0x25   :  { %4512 = vmatmul.mubr.msk.f32.gmra.mrb[12].mxu1 %vm59_vm0, %v45_v34  ;;  %4482 = vmatprep.mubr.msk.f32.mxu0 %vm59_vm0, %v46_v35 }
  0x26   :  { %4514 = vmatprep.mubr.msk.f32.mxu1 %vm59_vm0, %v46_v35 }
  0x28   :  { %4483 = vmatmul.mubr.msk.f32.gmra.mrb[14].mxu0 %vm59_vm0, %v47_v36 }
  0x29   :  { %4515 = vmatmul.mubr.msk.f32.gmra.mrb[14].mxu1 %vm59_vm0, %v47_v36  ;;  %4525 = vmatprep.mubr.msk.f32.mxu0 %vm59_vm0, %v5430_v11 }
  0x2c   :  { %4526 = vmatmul.mubr.msk.f32.vlgmr.msra.gmra.mrb[16].mxu0 %vm59_vm0, %v5439_v13 }
  0x2d   :  { %4528 = vmatprep.mubr.msk.f32.mxu0 %vm59_vm0, %v5444_v14  ;;  %4936 = vmatpush3.bf16.msra.mxu0 %v4925_v23 }
  0x2e   :  { %4938 = vmatprep.subr.bf16.mxu0 %v4929_v39 }
  0x30   :  { %4529 = vmatmul.mubr.msk.f32.gmra.mrb[18].mxu0 %vm59_vm0, %v35_v24 }
  0x31   :  { %4531 = vmatprep.mubr.msk.f32.mxu0 %vm59_vm0, %v36_v25  ;;  %4940 = vmatpush3.bf16.msra.mxu0 %v4929_v39 }
  0x34   :  { %4532 = vmatmul.mubr.msk.f32.gmra.mrb[20].mxu0 %vm59_vm0, %v37_v26 }
  0x35   :  { %4534 = vmatprep.mubr.msk.f32.mxu0 %vm59_vm0, %v38_v27 }
  0x38   :  { %4535 = vmatmul.mubr.msk.f32.gmra.mrb[22].mxu0 %vm59_vm0, %v39_v28 }
  0x39   :  { %4537 = vmatprep.mubr.msk.f32.mxu0 %vm59_vm0, %v40_v29 }
  0x3c   :  { %4538 = vmatmul.mubr.msk.f32.gmra.mrb[24].mxu0 %vm59_vm0, %v41_v30 }
  0x3d   :  { %4540 = vmatprep.mubr.msk.f32.mxu0 %vm59_vm0, %v42_v31 }
  0x40   :  { %4541 = vmatmul.mubr.msk.f32.gmra.mrb[26].mxu0 %vm59_vm0, %v43_v32 }
  0x41   :  { %4543 = vmatprep.mubr.msk.f32.mxu0 %vm59_vm0, %v44_v33 }
  0x44   :  { %4544 = vmatmul.mubr.msk.f32.gmra.mrb[28].mxu0 %vm59_vm0, %v45_v34 }
  0x45   :  { %4546 = vmatprep.mubr.msk.f32.mxu0 %vm59_vm0, %v46_v35 }
  0x48   :  { %4547 = vmatmul.mubr.msk.f32.gmra.mrb[30].mxu0 %vm59_vm0, %v47_v36 }
  0xdf   :  { %v4463_v42 = vpop.f32.mrb[0].mxu0 }
  0xe0   :  { %v5573_v43 = vadd.f32 %v4463_v42, %v5565_v40  ;;  %v4495_v44 = vpop.f32.mrb[0].mxu1  ;;  %v174_v45 = vpop.f32.mrb[1].mxu0 }
  0xe1   :  { %v5576_v46 = vadd.f32 %v4495_v44, %v5570_v41  ;;  %v5579_v47 = vadd.f32 %v5565_v40, %v174_v45  ;;  %v332_v48 = vpop.f32.mrb[1].mxu1 }
  0xe2   :  { %v574_v49 = vmul.f32 %v5573_v43, %v5573_v43  ;;  %v5584_v50 = vadd.f32 %v5570_v41, %v332_v48 }
  0xe3   :  { %v573_v51 = vmul.f32 %v5579_v47, %v5579_v47  ;;  %v4466_v52 = vpop.f32.mrb[2].mxu0  ;;  %v783_v57 = vmul.f32 %v5576_v46, %v5576_v46 }
  0xe4   :  { %v782_v53 = vmul.f32 %v5584_v50, %v5584_v50  ;;  %v5591_v54 = vadd.f32 %v4466_v52, %v5565_v40  ;;  %v4498_v55 = vpop.f32.mrb[2].mxu1  ;;  %v184_v56 = vpop.f32.mrb[3].mxu0 }
  0xe5   :  { %v5596_v58 = vadd.f32 %v4498_v55, %v5570_v41  ;;  %v5599_v59 = vadd.f32 %v5565_v40, %v184_v56  ;;  %v342_v60 = vpop.f32.mrb[3].mxu1  ;;  %4557 = vmatprep.mubr.msk.f32.mxu1 %vm59_vm0, %v573_v51 }
  0xe6   :  { %v576_v61 = vmul.f32 %v5591_v54, %v5591_v54  ;;  %v5605_v62 = vadd.f32 %v5570_v41, %v342_v60  ;;  %4589 = vmatprep.mubr.msk.f32.mxu0 %vm59_vm0, %v782_v53  ;;  %4558 = vmatmul.mubr.msk.f32.vlgmr.msra.gmra.mrb[16].mxu1 %vm59_vm0, %v574_v49 }
  0xe7   :  { %v785_v63 = vmul.f32 %v5596_v58, %v5596_v58  ;;  %v575_v0 = vmul.f32 %v5599_v59, %v5599_v59  ;;  %4590 = vmatmul.mubr.msk.f32.vlgmr.msra.gmra.mrb[32].mxu0 %vm59_vm0, %v783_v57  ;;  %v4469_v1 = vpop.f32.mrb[4].mxu0 }
  0xe8   :  { %v784_v2 = vmul.f32 %v5605_v62, %v5605_v62  ;;  %v5617_v3 = vadd.f32 %v4469_v1, %v5565_v40  ;;  %v4501_v4 = vpop.f32.mrb[4].mxu1  ;;  %v194_v5 = vpop.f32.mrb[5].mxu0 }
  0xe9   :  { %v5620_v6 = vadd.f32 %v4501_v4, %v5570_v41  ;;  %v5623_v7 = vadd.f32 %v5565_v40, %v194_v5  ;;  %v352_v8 = vpop.f32.mrb[5].mxu1  ;;  %4560 = vmatprep.mubr.msk.f32.mxu1 %vm59_vm0, %v575_v0 }
  0xea   :  { %v578_v9 = vmul.f32 %v5617_v3, %v5617_v3  ;;  %v5629_v10 = vadd.f32 %v5570_v41, %v352_v8  ;;  %4592 = vmatprep.mubr.msk.f32.mxu0 %vm59_vm0, %v784_v2  ;;  %4561 = vmatmul.mubr.msk.f32.gmra.mrb[18].mxu1 %vm59_vm0, %v576_v61 }
  0xeb   :  { %v787_v11 = vmul.f32 %v5620_v6, %v5620_v6  ;;  %v577_v12 = vmul.f32 %v5623_v7, %v5623_v7  ;;  %4593 = vmatmul.mubr.msk.f32.gmra.mrb[34].mxu0 %vm59_vm0, %v785_v63  ;;  %v4472_v13 = vpop.f32.mrb[6].mxu0 }
  0xec   :  { %v786_v14 = vmul.f32 %v5629_v10, %v5629_v10  ;;  %v5641_v15 = vadd.f32 %v4472_v13, %v5565_v40  ;;  %v4504_v16 = vpop.f32.mrb[6].mxu1  ;;  %v204_v17 = vpop.f32.mrb[7].mxu0 }
  0xed   :  { %v5644_v18 = vadd.f32 %v4504_v16, %v5570_v41  ;;  %v5647_v19 = vadd.f32 %v5565_v40, %v204_v17  ;;  %v362_v20 = vpop.f32.mrb[7].mxu1  ;;  %4563 = vmatprep.mubr.msk.f32.mxu1 %vm59_vm0, %v577_v12 }
  0xee   :  { %v580_v21 = vmul.f32 %v5641_v15, %v5641_v15  ;;  %v5653_v22 = vadd.f32 %v5570_v41, %v362_v20  ;;  %4595 = vmatprep.mubr.msk.f32.mxu0 %vm59_vm0, %v786_v14  ;;  %4564 = vmatmul.mubr.msk.f32.gmra.mrb[20].mxu1 %vm59_vm0, %v578_v9 }
  0xef   :  { %v789_v23 = vmul.f32 %v5644_v18, %v5644_v18  ;;  %v579_v24 = vmul.f32 %v5647_v19, %v5647_v19  ;;  %4596 = vmatmul.mubr.msk.f32.gmra.mrb[36].mxu0 %vm59_vm0, %v787_v11  ;;  %v4475_v25 = vpop.f32.mrb[8].mxu0 }
  0xf0   :  { %v788_v26 = vmul.f32 %v5653_v22, %v5653_v22  ;;  %v5665_v27 = vadd.f32 %v4475_v25, %v5565_v40  ;;  %v4507_v28 = vpop.f32.mrb[8].mxu1  ;;  %v214_v29 = vpop.f32.mrb[9].mxu0 }
  0xf1   :  { %v5668_v30 = vadd.f32 %v4507_v28, %v5570_v41  ;;  %v5671_v31 = vadd.f32 %v5565_v40, %v214_v29  ;;  %v372_v32 = vpop.f32.mrb[9].mxu1  ;;  %4566 = vmatprep.mubr.msk.f32.mxu1 %vm59_vm0, %v579_v24 }
  0xf2   :  { %v582_v33 = vmul.f32 %v5665_v27, %v5665_v27  ;;  %v5677_v34 = vadd.f32 %v5570_v41, %v372_v32  ;;  %4598 = vmatprep.mubr.msk.f32.mxu0 %vm59_vm0, %v788_v26  ;;  %4567 = vmatmul.mubr.msk.f32.gmra.mrb[22].mxu1 %vm59_vm0, %v580_v21 }
  0xf3   :  { %v791_v35 = vmul.f32 %v5668_v30, %v5668_v30  ;;  %v581_v36 = vmul.f32 %v5671_v31, %v5671_v31  ;;  %4599 = vmatmul.mubr.msk.f32.gmra.mrb[38].mxu0 %vm59_vm0, %v789_v23  ;;  %v4478_v37 = vpop.f32.mrb[10].mxu0  ;;  %v3958_v23 = vld [vmem:[%s7267_s2 + $0x2] ss:$0 sm:$0xff] }
  0xf4   :  { %v790_v38 = vmul.f32 %v5677_v34, %v5677_v34  ;;  %v5689_v39 = vadd.f32 %v4478_v37, %v5565_v40  ;;  %v4510_v42 = vpop.f32.mrb[10].mxu1  ;;  %v224_v44 = vpop.f32.mrb[11].mxu0 }
  0xf5   :  { %v5692_v45 = vadd.f32 %v4510_v42, %v5570_v41  ;;  %v5695_v48 = vadd.f32 %v5565_v40, %v224_v44  ;;  %v382_v49 = vpop.f32.mrb[11].mxu1  ;;  %4569 = vmatprep.mubr.msk.f32.mxu1 %vm59_vm0, %v581_v36 }
  0xf6   :  { %v584_v51 = vmul.f32 %v5689_v39, %v5689_v39  ;;  %v5701_v52 = vadd.f32 %v5570_v41, %v382_v49  ;;  %4601 = vmatprep.mubr.msk.f32.mxu0 %vm59_vm0, %v790_v38  ;;  %4570 = vmatmul.mubr.msk.f32.gmra.mrb[24].mxu1 %vm59_vm0, %v582_v33 }
  0xf7   :  { %v793_v53 = vmul.f32 %v5692_v45, %v5692_v45  ;;  %v583_v55 = vmul.f32 %v5695_v48, %v5695_v48  ;;  %4602 = vmatmul.mubr.msk.f32.gmra.mrb[40].mxu0 %vm59_vm0, %v791_v35  ;;  %v4481_v56 = vpop.f32.mrb[12].mxu0 }
  0xf8   :  { %v792_v57 = vmul.f32 %v5701_v52, %v5701_v52  ;;  %v5713_v60 = vadd.f32 %v4481_v56, %v5565_v40  ;;  %v4513_v61 = vpop.f32.mrb[12].mxu1  ;;  %v234_v63 = vpop.f32.mrb[13].mxu0 }
  0xf9   :  { %v5716_v0 = vadd.f32 %v4513_v61, %v5570_v41  ;;  %v5719_v1 = vadd.f32 %v5565_v40, %v234_v63  ;;  %v392_v2 = vpop.f32.mrb[13].mxu1  ;;  %4572 = vmatprep.mubr.msk.f32.mxu1 %vm59_vm0, %v583_v55 }
  0xfa   :  { %v586_v4 = vmul.f32 %v5713_v60, %v5713_v60  ;;  %v5725_v5 = vadd.f32 %v5570_v41, %v392_v2  ;;  %4604 = vmatprep.mubr.msk.f32.mxu0 %vm59_vm0, %v792_v57  ;;  %4573 = vmatmul.mubr.msk.f32.gmra.mrb[26].mxu1 %vm59_vm0, %v584_v51 }
  0xfb   :  { %v795_v8 = vmul.f32 %v5716_v0, %v5716_v0  ;;  %v585_v9 = vmul.f32 %v5719_v1, %v5719_v1  ;;  %4605 = vmatmul.mubr.msk.f32.gmra.mrb[42].mxu0 %vm59_vm0, %v793_v53  ;;  %v4484_v11 = vpop.f32.mrb[14].mxu0 }
  0xfc   :  { %v794_v12 = vmul.f32 %v5725_v5, %v5725_v5  ;;  %v5737_v13 = vadd.f32 %v4484_v11, %v5565_v40  ;;  %v4516_v14 = vpop.f32.mrb[14].mxu1  ;;  %v244_v16 = vpop.f32.mrb[15].mxu0 }
  0xfd   :  { %v5740_v17 = vadd.f32 %v4516_v14, %v5570_v41  ;;  %v5743_v20 = vadd.f32 %v5565_v40, %v244_v16  ;;  %v402_v21 = vpop.f32.mrb[15].mxu1  ;;  %4575 = vmatprep.mubr.msk.f32.mxu1 %vm59_vm0, %v585_v9 }
  0xfe   :  { %v588_v24 = vmul.f32 %v5737_v13, %v5737_v13  ;;  %v5752_v25 = vadd.f32 %v5570_v41, %v402_v21  ;;  %4607 = vmatprep.mubr.msk.f32.mxu0 %vm59_vm0, %v794_v12  ;;  %4576 = vmatmul.mubr.msk.f32.gmra.mrb[28].mxu1 %vm59_vm0, %v586_v4 }
  0xff   :  { %v797_v40 = vmul.f32 %v5740_v17, %v5740_v17  ;;  %v587_v26 = vmul.f32 %v5743_v20, %v5743_v20  ;;  %4608 = vmatmul.mubr.msk.f32.gmra.mrb[44].mxu0 %vm59_vm0, %v795_v8  ;;  %v4527_v28 = vpop.f32.mrb[16].mxu0 }
 0x100   :  { %v796_v29 = vmul.f32 %v5752_v25, %v5752_v25  ;;  %v496_v32 = vadd.f32 %v4527_v28, %v3958_v23  ;;  %v490_v33 = vpop.f32.mrb[17].mxu0 }
 0x101   :  { %4578 = vmatprep.mubr.msk.f32.mxu1 %vm59_vm0, %v587_v26  ;;  %v491_v41 = vadd.f32 %v3958_v23, %v490_v33 }
 0x102   :  { %4610 = vmatprep.mubr.msk.f32.mxu0 %vm59_vm0, %v796_v29  ;;  %4579 = vmatmul.mubr.msk.f32.gmra.mrb[30].mxu1 %vm59_vm0, %v588_v24 }
 0x103   :  { %4611 = vmatmul.mubr.msk.f32.gmra.mrb[46].mxu0 %vm59_vm0, %v797_v40  ;;  %v5767_v35 = vpack.c.bf16 %v496_v32, %v491_v41  ;;  %v4530_v36 = vpop.f32.mrb[18].mxu0 }
 0x104   :  { %v506_v37 = vadd.f32 %v4530_v36, %v3958_v23  ;;  %v500_v38 = vpop.f32.mrb[19].mxu0 }
 0x105   :  { %v501_v42 = vadd.f32 %v3958_v23, %v500_v38 }
 0x107   :  { %v5769_v44 = vpack.c.bf16 %v506_v37, %v501_v42  ;;  %v4533_v49 = vpop.f32.mrb[20].mxu0 }
 0x108   :  { %v516_v51 = vadd.f32 %v4533_v49, %v3958_v23  ;;  %v510_v53 = vpop.f32.mrb[21].mxu0 }
 0x109   :  { %v511_v55 = vadd.f32 %v3958_v23, %v510_v53 }
 0x10b   :  { %v5771_v56 = vpack.c.bf16 %v516_v51, %v511_v55  ;;  %v4536_v57 = vpop.f32.mrb[22].mxu0 }
 0x10c   :  { %v526_v61 = vadd.f32 %v4536_v57, %v3958_v23  ;;  %v520_v63 = vpop.f32.mrb[23].mxu0 }
 0x10d   :  { %v521_v2 = vadd.f32 %v3958_v23, %v520_v63 }
 0x10f   :  { %v5773_v4 = vpack.c.bf16 %v526_v61, %v521_v2  ;;  %v4539_v8 = vpop.f32.mrb[24].mxu0 }
 0x110   :  { %v536_v9 = vadd.f32 %v4539_v8, %v3958_v23  ;;  %v530_v11 = vpop.f32.mrb[25].mxu0 }
 0x111   :  { %v531_v12 = vadd.f32 %v3958_v23, %v530_v11 }
 0x113   :  { %v5775_v14 = vpack.c.bf16 %v536_v9, %v531_v12  ;;  %v4542_v16 = vpop.f32.mrb[26].mxu0 }
 0x114   :  { %v546_v21 = vadd.f32 %v4542_v16, %v3958_v23  ;;  %v540_v24 = vpop.f32.mrb[27].mxu0 }
 0x115   :  { %7305 = vst [vmem:[#allocation2_spill] sm:$0xff] %v5775_v14  ;;  %v541_v40 = vadd.f32 %v3958_v23, %v540_v24 }
 0x117   :  { %v5777_v26 = vpack.c.bf16 %v546_v21, %v541_v40  ;;  %v4545_v28 = vpop.f32.mrb[28].mxu0 }
 0x118   :  { %v556_v29 = vadd.f32 %v4545_v28, %v3958_v23  ;;  %v550_v32 = vpop.f32.mrb[29].mxu0 }
 0x119   :  { %7306 = vst [vmem:[#allocation3_spill] sm:$0xff] %v5777_v26  ;;  %v551_v33 = vadd.f32 %v3958_v23, %v550_v32 }
 0x11b   :  { %v5779_v41 = vpack.c.bf16 %v556_v29, %v551_v33  ;;  %v4548_v36 = vpop.f32.mrb[30].mxu0 }
 0x11c   :  { %v566_v37 = vadd.f32 %v4548_v36, %v3958_v23  ;;  %v560_v38 = vpop.f32.mrb[31].mxu0 }
 0x11d   :  { %7307 = vst [vmem:[#allocation4_spill] sm:$0xff] %v5779_v41  ;;  %v561_v42 = vadd.f32 %v3958_v23, %v560_v38 }
 0x11f   :  { %v5781_v49 = vpack.c.bf16 %v566_v37, %v561_v42 }
 0x121   :  { %7308 = vst [vmem:[#allocation5_spill] sm:$0xff] %v5781_v49 }
 0x1b9   :  { %v4559_v51 = vpop.f32.mrb[16].mxu1 }
 0x1ba   :  { %v4591_v53 = vpop.f32.mrb[32].mxu0  ;;  %v703_v55 = vpop.f32.mrb[17].mxu1  ;;  %v992_v21 = vmax.f32 %v4559_v51, 1e-24 }
 0x1bb   :  { %v1063_v57 = vmax.f32 %v4591_v53, 1e-24  ;;  %v991_v61 = vmax.f32 %v703_v55, 1e-24  ;;  %v912_v63 = vpop.f32.mrb[33].mxu0 }
 0x1bc   :  { %v1062_v2 = vmax.f32 %v912_v63, 1e-24 }
 0x1bd   :  { %5029 = vrsqrt.f32 %v1063_v57  ;;  %v4562_v8 = vpop.f32.mrb[18].mxu1 }
 0x1be   :  { %5031 = vrsqrt.f32 %v991_v61  ;;  %v4594_v9 = vpop.f32.mrb[34].mxu0  ;;  %v713_v11 = vpop.f32.mrb[19].mxu1  ;;  %v994_v42 = vmax.f32 %v4562_v8, 1e-24 }
 0x1bf   :  { %5033 = vrsqrt.f32 %v1062_v2  ;;  %v1065_v12 = vmax.f32 %v4594_v9, 1e-24  ;;  %v922_v16 = vpop.f32.mrb[35].mxu0  ;;  %v993_v36 = vmax.f32 %v713_v11, 1e-24 }
 0x1c0   :  { %v1064_v24 = vmax.f32 %v922_v16, 1e-24  ;;  %v5786_v2 = vld [vmem:[%s7268_s3] ss:$0 sm:$0xff] }
 0x1c1   :  { %5035 = vrsqrt.f32 %v1065_v12  ;;  %v4565_v23 = vpop.f32.mrb[20].mxu1 }
 0x1c2   :  { %v4597_v40 = vpop.f32.mrb[36].mxu0  ;;  %v723_v28 = vpop.f32.mrb[21].mxu1  ;;  %5037 = vrsqrt.f32 %v1064_v24 }
 0x1c3   :  { %v1067_v29 = vmax.f32 %v4597_v40, 1e-24  ;;  %v995_v32 = vmax.f32 %v723_v28, 1e-24  ;;  %v932_v33 = vpop.f32.mrb[37].mxu0  ;;  %5039 = vrsqrt.f32 %v992_v21 }
 0x1c4   :  { %v1066_v37 = vmax.f32 %v932_v33, 1e-24  ;;  %v996_v21 = vmax.f32 %v4565_v23, 1e-24 }
 0x1c5   :  { %5041 = vrsqrt.f32 %v1067_v29  ;;  %v4568_v38 = vpop.f32.mrb[22].mxu1  ;;  %v5798_v29 = vld [vmem:[%s7269_s5] ss:$0 sm:$0xff] }
 0x1c6   :  { %5043 = vrsqrt.f32 %v995_v32  ;;  %v4600_v53 = vpop.f32.mrb[38].mxu0  ;;  %v733_v55 = vpop.f32.mrb[23].mxu1 }
 0x1c7   :  { %v5030_v57 = vpop.eup %5029  ;;  %5045 = vrsqrt.f32 %v1066_v37  ;;  %v1069_v51 = vmax.f32 %v4600_v53, 1e-24  ;;  %v942_v61 = vpop.f32.mrb[39].mxu0 }
 0x1c8   :  { %v5032_v63 = vpop.eup %5031  ;;  %5047 = vrsqrt.f32 %v993_v36  ;;  %v1068_v9 = vmax.f32 %v942_v61, 1e-24  ;;  %v1095_v11 = vmul.f32 %v5030_v57, %v5576_v46  ;;  %v997_v36 = vmax.f32 %v733_v55, 1e-24 }
 0x1c9   :  { %v5034_v12 = vpop.eup %5033  ;;  %v1023_v8 = vmul.f32 %v5032_v63, %v5579_v47  ;;  %5049 = vrsqrt.f32 %v1069_v51  ;;  %v5790_v16 = vpop.f32.mrb[24].mxu1  ;;  %v998_v61 = vmax.f32 %v4568_v38, 1e-24 }
 0x1ca   :  { %5051 = vrsqrt.f32 %v994_v42  ;;  %v4603_v24 = vpop.f32.mrb[40].mxu0  ;;  %v5792_v40 = vpop.f32.mrb[25].mxu1  ;;  %v1094_v28 = vmul.f32 %v5034_v12, %v5584_v50 }
 0x1cb   :  { %v5036_v32 = vpop.eup %5035  ;;  %v5801_v46 = vmul.f32 %v5786_v2, %v1023_v8  ;;  %5053 = vrsqrt.f32 %v1068_v9  ;;  %v1071_v47 = vmax.f32 %v4603_v24, 1e-24  ;;  %v952_v33 = vpop.f32.mrb[41].mxu0 }
 0x1cc   :  { %v1070_v50 = vmax.f32 %v952_v33, 1e-24  ;;  %v4941_v37 = vpack.c.bf16 %v1095_v11, %v1094_v28  ;;  %v5038_v42 = vpop.eup %5037  ;;  %v1097_v11 = vmul.f32 %v5036_v32, %v5596_v58 }
 0x1cd   :  { %5055 = vrsqrt.f32 %v1071_v47  ;;  %v5809_v53 = vpop.f32.mrb[26].mxu1  ;;  %v1138_v57 = vmul.f32 %v5798_v29, %v5801_v46  ;;  %v5040_v51 = vpop.eup %5039  ;;  %v1096_v55 = vmul.f32 %v5038_v42, %v5605_v62 }
 0x1ce   :  { %5057 = vrsqrt.f32 %v996_v21  ;;  %4943 = vmatprep.subr.msk.bf16.mxu1 %vm5805_vm1, %v4941_v37  ;;  %v4606_v63 = vpop.f32.mrb[42].mxu0  ;;  %v5815_v9 = vpop.f32.mrb[27].mxu1 }
 0x1cf   :  { %v5042_v12 = vpop.eup %5041  ;;  %5059 = vrsqrt.f32 %v1070_v50  ;;  %v1073_v8 = vmax.f32 %v4606_v63, 1e-24  ;;  %4946 = vmatpush3.bf16.xpose.msk.msra.mxu1 %vm5805_vm1, %v4941_v37  ;;  %v962_v24 = vpop.f32.mrb[43].mxu0  ;;  %4621 = vmatprep.mubr.msk.f32.mxu1 %vm59_vm0, %v1138_v57  ;;  %v4947_v28 = vpack.c.bf16 %v1097_v11, %v1096_v55 }
 0x1d0   :  { %v5044_v38 = vpop.eup %5043  ;;  %5061 = vrsqrt.f32 %v997_v36  ;;  %v1072_v21 = vmax.f32 %v962_v24, 1e-24  ;;  %v1099_v58 = vmul.f32 %v5042_v12, %v5620_v6  ;;  %v1024_v6 = vmul.f32 %v5040_v51, %v5573_v43 }
 0x1d1   :  { %v5046_v47 = vpop.eup %5045  ;;  %v1027_v33 = vmul.f32 %v5044_v38, %v5623_v7  ;;  %5063 = vrsqrt.f32 %v1073_v8  ;;  %v5823_v62 = vpop.f32.mrb[28].mxu1  ;;  %4949 = vmatprep.subr.msk.bf16.mxu1 %vm5805_vm1, %v4947_v28 }
 0x1d2   :  { %v5048_v32 = vpop.eup %5047  ;;  %5065 = vrsqrt.f32 %v998_v61  ;;  %v4609_v50 = vpop.f32.mrb[44].mxu0  ;;  %v1098_v36 = vmul.f32 %v5046_v47, %v5629_v10 }
 0x1d3   :  { %v5828_v37 = vpop.f32.mrb[29].mxu1  ;;  %v5050_v42 = vpop.eup %5049  ;;  %v5832_v57 = vmul.f32 %v5786_v2, %v1027_v33  ;;  %5067 = vrsqrt.f32 %v1072_v21  ;;  %v1075_v7 = vmax.f32 %v4609_v50, 1e-24  ;;  %v1025_v8 = vmul.f32 %v5048_v32, %v5599_v59 }
 0x1d4   :  { %v972_v63 = vpop.f32.mrb[45].mxu0  ;;  %v5052_v55 = vpop.eup %5051  ;;  %v4953_v61 = vpack.c.bf16 %v1099_v58, %v1098_v36  ;;  %v1101_v43 = vmul.f32 %v5050_v42, %v5644_v18  ;;  %v5852_v50 = vmul.f32 %v5786_v2, %v1024_v6 }
 0x1d5   :  { %v1074_v11 = vmax.f32 %v972_v63, 1e-24  ;;  %v5054_v12 = vpop.eup %5053  ;;  %5069 = vrsqrt.f32 %v1075_v7  ;;  %v5836_v24 = vpop.f32.mrb[30].mxu1  ;;  %v1154_v10 = vmul.f32 %v5798_v29, %v5832_v57  ;;  %v1026_v33 = vmul.f32 %v5052_v55, %v5591_v54 }
 0x1d6   :  { %4955 = vmatprep.subr.msk.bf16.mxu0 %vm5805_vm1, %v4953_v61  ;;  %v4612_v38 = vpop.f32.mrb[46].mxu0  ;;  %v5842_v21 = vpop.f32.mrb[31].mxu1  ;;  %v1100_v47 = vmul.f32 %v5054_v12, %v5653_v22  ;;  %v5856_v54 = vmul.f32 %v5786_v2, %v1025_v8 }
 0x1d7   :  { %v5056_v51 = vpop.eup %5055  ;;  %5071 = vrsqrt.f32 %v1074_v11  ;;  %v1077_v59 = vmax.f32 %v4612_v38, 1e-24  ;;  %4952 = vmatpush3.bf16.xpose.msk.msra.mxu1 %vm5805_vm1, %v4947_v28  ;;  %4958 = vmatpush3.bf16.xpose.msk.msra.mxu0 %vm5805_vm1, %v4953_v61  ;;  %v982_v58 = vpop.f32.mrb[47].mxu0  ;;  %v5863_v55 = vmul.f32 %v5786_v2, %v1026_v33  ;;  %v1139_v61 = vmul.f32 %v5798_v29, %v5852_v50 }
 0x1d8   :  { %v5058_v32 = vpop.eup %5057  ;;  %v1076_v36 = vmax.f32 %v982_v58, 1e-24  ;;  %4653 = vmatprep.mubr.msk.f32.mxu0 %vm59_vm0, %v1154_v10  ;;  %v4959_v18 = vpack.c.bf16 %v1101_v43, %v1100_v47  ;;  %v1103_v42 = vmul.f32 %v5056_v51, %v5668_v30  ;;  %v1140_v10 = vmul.f32 %v5798_v29, %v5856_v54 }
 0x1d9   :  { %v5060_v22 = vpop.eup %5059  ;;  %5073 = vrsqrt.f32 %v1077_v59  ;;  %v1028_v11 = vmul.f32 %v5058_v32, %v5617_v3  ;;  %v5879_v3 = vld [vmem:[%s7269_s5 + $0x1] ss:$0 sm:$0xff]  ;;  %v999_v43 = vmax.f32 %v5792_v40, 1e-24 }
 0x1da   :  { %v5062_v28 = vpop.eup %5061  ;;  %4961 = vmatprep.subr.msk.bf16.mxu0 %vm5805_vm1, %v4959_v18  ;;  %v1102_v7 = vmul.f32 %v5060_v22, %v5677_v34  ;;  %5075 = vrsqrt.f32 %v1076_v36  ;;  %v1142_v40 = vmul.f32 %v5879_v3, %v5801_v46 }
 0x1db   :  { %v5064_v63 = vpop.eup %5063  ;;  %v1029_v34 = vmul.f32 %v5062_v28, %v5647_v19  ;;  %v5887_v19 = vmul.f32 %v5786_v2, %v1028_v11  ;;  %5077 = vrsqrt.f32 %v999_v43  ;;  %v5924_v11 = vld [vmem:[%s7269_s5 + $0x2] ss:$0 sm:$0xff] }
 0x1dc   :  { %v5066_v6 = vpop.eup %5065  ;;  %v4965_v12 = vpack.c.bf16 %v1103_v42, %v1102_v7  ;;  %v1105_v30 = vmul.f32 %v5064_v63, %v5692_v45  ;;  %v1144_v63 = vmul.f32 %v5879_v3, %v5856_v54  ;;  %v1149_v43 = vmul.f32 %v5924_v11, %v5863_v55 }
 0x1dd   :  { %v5068_v8 = vpop.eup %5067  ;;  %v1030_v45 = vmul.f32 %v5066_v6, %v5641_v15  ;;  %v5897_v59 = vmul.f32 %v5786_v2, %v1029_v34  ;;  %v1155_v22 = vmul.f32 %v5798_v29, %v5887_v19 }
 0x1de   :  { %4622 = vmatmul.mubr.msk.f32.vlgmr.msra.gmra.mrb[32].mxu1 %vm59_vm0, %v1139_v61  ;;  %4967 = vmatprep.subr.msk.bf16.mxu1 %vm5805_vm1, %v4965_v12  ;;  %v1104_v38 = vmul.f32 %v5068_v8, %v5701_v52  ;;  %v1141_v52 = vmul.f32 %v5798_v29, %v5863_v55  ;;  %v1147_v8 = vmul.f32 %v5924_v11, %v5852_v50 }
 0x1df   :  { %v5070_v47 = vpop.eup %5069  ;;  %4624 = vmatprep.mubr.msk.f32.mxu1 %vm59_vm0, %v1140_v10  ;;  %4964 = vmatpush3.bf16.xpose.msk.msra.mxu0 %vm5805_vm1, %v4959_v18  ;;  %v5904_v36 = vmul.f32 %v5786_v2, %v1030_v45  ;;  %v1143_v18 = vmul.f32 %v5879_v3, %v5852_v50  ;;  %v1159_v10 = vmul.f32 %v5879_v3, %v5887_v19 }
 0x1e0   :  { %4970 = vmatpush3.bf16.xpose.msk.msra.mxu1 %vm5805_vm1, %v4965_v12  ;;  %v4971_v51 = vpack.c.bf16 %v1105_v30, %v1104_v38  ;;  %v1107_v33 = vmul.f32 %v5070_v47, %v5716_v0  ;;  %v1000_v0 = vmax.f32 %v5790_v16, 1e-24  ;;  %v1156_v16 = vmul.f32 %v5798_v29, %v5897_v59 }
 0x1e1   :  { %v5072_v15 = vpop.eup %5071  ;;  %v1146_v12 = vmul.f32 %v5924_v11, %v5801_v46  ;;  %v1158_v30 = vmul.f32 %v5879_v3, %v5832_v57  ;;  %v1005_v38 = vmax.f32 %v5842_v21, 1e-24  ;;  %v1148_v47 = vmul.f32 %v5924_v11, %v5856_v54 }
 0x1e2   :  { %4625 = vmatmul.mubr.msk.f32.gmra.mrb[34].mxu1 %vm59_vm0, %v1141_v52  ;;  %4973 = vmatprep.subr.msk.bf16.mxu1 %vm5805_vm1, %v4971_v51  ;;  %v1106_v58 = vmul.f32 %v5072_v15, %v5725_v5  ;;  %v1001_v5 = vmax.f32 %v5815_v9, 1e-24  ;;  %5079 = vrsqrt.f32 %v1000_v0  ;;  %v1157_v9 = vmul.f32 %v5798_v29, %v5904_v36 }
 0x1e3   :  { %v5074_v32 = vpop.eup %5073  ;;  %4627 = vmatprep.mubr.msk.f32.mxu1 %vm59_vm0, %v1142_v40  ;;  %v1160_v45 = vmul.f32 %v5879_v3, %v5897_v59  ;;  %v1006_v21 = vmax.f32 %v5836_v24, 1e-24  ;;  %v1162_v24 = vmul.f32 %v5924_v11, %v5832_v57 }
 0x1e4   :  { %v4977_v42 = vpack.c.bf16 %v1107_v33, %v1106_v58  ;;  %v1109_v28 = vmul.f32 %v5074_v32, %v5740_v17  ;;  %v5076_v7 = vpop.eup %5075  ;;  %v1002_v17 = vmax.f32 %v5809_v53, 1e-24  ;;  %5081 = vrsqrt.f32 %v1001_v5 }
 0x1e5   :  { %v1108_v6 = vmul.f32 %v5076_v7, %v5752_v25  ;;  %v1145_v25 = vmul.f32 %v5879_v3, %v5863_v55  ;;  %v1003_v53 = vmax.f32 %v5828_v37, 1e-24  ;;  %v1004_v37 = vmax.f32 %v5823_v62, 1e-24  ;;  %v5078_v34 = vpop.eup %5077  ;;  %v5966_v62 = vld [vmem:[%s7269_s5 + $0x3] ss:$0 sm:$0xff] }
 0x1e6   :  { %4628 = vmatmul.mubr.msk.f32.gmra.mrb[36].mxu1 %vm59_vm0, %v1143_v18  ;;  %4654 = vmatmul.mubr.msk.f32.vlgmr.msra.gmra.mrb[48].mxu0 %vm59_vm0, %v1155_v22  ;;  %5083 = vrsqrt.f32 %v1002_v17  ;;  %v1161_v33 = vmul.f32 %v5879_v3, %v5904_v36  ;;  %v1150_v15 = vmul.f32 %v5966_v62, %v5801_v46  ;;  %v1151_v46 = vmul.f32 %v5966_v62, %v5852_v50 }
 0x1e7   :  { %4979 = vmatprep.subr.msk.bf16.mxu0 %vm5805_vm1, %v4977_v42  ;;  %4630 = vmatprep.mubr.msk.f32.mxu1 %vm59_vm0, %v1144_v63  ;;  %v4983_v61 = vpack.c.bf16 %v1109_v28, %v1108_v6  ;;  %5085 = vrsqrt.f32 %v1003_v53  ;;  %v1163_v32 = vmul.f32 %v5924_v11, %v5887_v19  ;;  %v1152_v0 = vmul.f32 %v5966_v62, %v5856_v54 }
 0x1e8   :  { %4656 = vmatprep.mubr.msk.f32.mxu0 %vm59_vm0, %v1156_v16  ;;  %4976 = vmatpush3.bf16.xpose.msk.msra.mxu1 %vm5805_vm1, %v4971_v51  ;;  %5087 = vrsqrt.f32 %v1004_v37  ;;  %v1031_v51 = vmul.f32 %v5078_v34, %v5671_v31  ;;  %v1165_v54 = vmul.f32 %v5924_v11, %v5904_v36  ;;  %v1167_v17 = vmul.f32 %v5966_v62, %v5887_v19 }
 0x1e9   :  { %4982 = vmatpush3.bf16.xpose.msk.msra.mxu0 %vm5805_vm1, %v4977_v42  ;;  %4990 = vmatprep.subr.bf16.mxu1 %v5767_v35  ;;  %5089 = vrsqrt.f32 %v1005_v38 }
 0x1ea   :  { %4631 = vmatmul.mubr.msk.f32.gmra.mrb[38].mxu1 %vm59_vm0, %v1145_v25  ;;  %4657 = vmatmul.mubr.msk.f32.gmra.mrb[50].mxu0 %vm59_vm0, %v1157_v9  ;;  %5091 = vrsqrt.f32 %v1006_v21  ;;  %v5991_v58 = vmul.f32 %v5786_v2, %v1031_v51 }
 0x1eb   :  { %4985 = vmatprep.subr.msk.bf16.mxu0 %vm5805_vm1, %v4983_v61  ;;  %4633 = vmatprep.mubr.msk.f32.mxu1 %vm59_vm0, %v1146_v12 }
 0x1ec   :  { %4659 = vmatprep.mubr.msk.f32.mxu0 %vm59_vm0, %v1158_v30  ;;  %v5080_v52 = vpop.eup %5079  ;;  %v1170_v28 = vmul.f32 %v5798_v29, %v5991_v58  ;;  %v1178_v34 = vmul.f32 %v5924_v11, %v5991_v58 }
 0x1ed   :  { %v1032_v31 = vmul.f32 %v5080_v52, %v5665_v27  ;;  %v1164_v27 = vmul.f32 %v5924_v11, %v5897_v59 }
 0x1ee   :  { %4634 = vmatmul.mubr.msk.f32.gmra.mrb[40].mxu1 %vm59_vm0, %v1147_v8  ;;  %4660 = vmatmul.mubr.msk.f32.gmra.mrb[52].mxu0 %vm59_vm0, %v1159_v10  ;;  %v5082_v40 = vpop.eup %5081 }
 0x1ef   :  { %4636 = vmatprep.mubr.msk.f32.mxu1 %vm59_vm0, %v1148_v47  ;;  %4662 = vmatprep.mubr.msk.f32.mxu0 %vm59_vm0, %v1160_v45  ;;  %v1033_v18 = vmul.f32 %v5082_v40, %v5695_v48  ;;  %v6004_v50 = vmul.f32 %v5786_v2, %v1032_v31  ;;  %v1153_v48 = vmul.f32 %v5966_v62, %v5863_v55 }
 0x1f0   :  { %v5084_v23 = vpop.eup %5083 }
 0x1f1   :  { %4988 = vmatpush3.bf16.xpose.msk.msra.mxu0 %vm5805_vm1, %v4983_v61  ;;  %v5086_v22 = vpop.eup %5085  ;;  %v1034_v42 = vmul.f32 %v5084_v23, %v5689_v39  ;;  %v6015_v5 = vmul.f32 %v5786_v2, %v1033_v18  ;;  %v1166_v39 = vmul.f32 %v5966_v62, %v5832_v57  ;;  %v1171_v6 = vmul.f32 %v5798_v29, %v6004_v50 }
 0x1f2   :  { %4998 = vmatprep.subr.bf16.mxu0 %v5771_v56  ;;  %4637 = vmatmul.mubr.msk.f32.gmra.mrb[42].mxu1 %vm59_vm0, %v1149_v43  ;;  %v5088_v7 = vpop.eup %5087  ;;  %v1035_v63 = vmul.f32 %v5086_v22, %v5719_v1  ;;  %v1168_v61 = vmul.f32 %v5966_v62, %v5897_v59  ;;  %v1169_v59 = vmul.f32 %v5966_v62, %v5904_v36 }
 0x1f3   :  { %4663 = vmatmul.mubr.msk.f32.gmra.mrb[54].mxu0 %vm59_vm0, %v1161_v33  ;;  %4639 = vmatprep.mubr.msk.f32.mxu1 %vm59_vm0, %v1150_v15  ;;  %v5090_v16 = vpop.eup %5089  ;;  %v6024_v55 = vmul.f32 %v5786_v2, %v1034_v42  ;;  %v1036_v1 = vmul.f32 %v5088_v7, %v5713_v60  ;;  %v1172_v53 = vmul.f32 %v5798_v29, %v6015_v5  ;;  %v6174_v7 = vld [vmem:[%s7270_s6 + $0x28] sm:$0xff] }
 0x1f4   :  { %4665 = vmatprep.mubr.msk.f32.mxu0 %vm59_vm0, %v1162_v24  ;;  %v5092_v25 = vpop.eup %5091  ;;  %v6033_v57 = vmul.f32 %v5786_v2, %v1035_v63  ;;  %v1037_v9 = vmul.f32 %v5090_v16, %v5743_v20  ;;  %v1176_v8 = vmul.f32 %v5879_v3, %v6015_v5  ;;  %v1180_v47 = vmul.f32 %v5924_v11, %v6015_v5 }
 0x1f5   :  { %v1173_v60 = vmul.f32 %v5798_v29, %v6024_v55  ;;  %v6048_v20 = vmul.f32 %v5786_v2, %v1036_v1  ;;  %v1038_v19 = vmul.f32 %v5092_v25, %v5737_v13  ;;  %v1175_v13 = vmul.f32 %v5879_v3, %v6004_v50 }
 0x1f6   :  { %4640 = vmatmul.mubr.msk.f32.gmra.mrb[44].mxu1 %vm59_vm0, %v1151_v46  ;;  %v1060_v12 = vmul.f32 %v5786_v2, %v1037_v9  ;;  %v1186_v30 = vmul.f32 %v5798_v29, %v6033_v57  ;;  %v1190_v38 = vmul.f32 %v5879_v3, %v6033_v57  ;;  %v1182_v43 = vmul.f32 %v5966_v62, %v5991_v58 }
 0x1f7   :  { %4666 = vmatmul.mubr.msk.f32.gmra.mrb[56].mxu0 %vm59_vm0, %v1163_v32  ;;  %4642 = vmatprep.mubr.msk.f32.mxu1 %vm59_vm0, %v1152_v0  ;;  %v1061_v36 = vmul.f32 %v5786_v2, %v1038_v19  ;;  %v1187_v37 = vmul.f32 %v5798_v29, %v6048_v20  ;;  %v1177_v2 = vmul.f32 %v5879_v3, %v6024_v55  ;;  %v6148_v0 = vld [vmem:[%s7270_s6] sm:$0xff] }
 0x1f8   :  { %4668 = vmatprep.mubr.msk.f32.mxu0 %vm59_vm0, %v1164_v27  ;;  %v1192_v45 = vmul.f32 %v5879_v3, %v1060_v12  ;;  %v1194_v52 = vmul.f32 %v5924_v11, %v6033_v57  ;;  %v1183_v51 = vmul.f32 %v5966_v62, %v6004_v50  ;;  %v1184_v33 = vmul.f32 %v5966_v62, %v6015_v5 }
 0x1f9   :  { %v1189_v10 = vmul.f32 %v5798_v29, %v1061_v36  ;;  %v1193_v21 = vmul.f32 %v5879_v3, %v1061_v36  ;;  %v1196_v15 = vmul.f32 %v5924_v11, %v1060_v12  ;;  %v1185_v24 = vmul.f32 %v5966_v62, %v6024_v55 }
 0x1fa   :  { %4643 = vmatmul.mubr.msk.f32.gmra.mrb[46].mxu1 %vm59_vm0, %v1153_v48  ;;  %v1197_v40 = vmul.f32 %v5924_v11, %v1061_v36  ;;  %v1198_v31 = vmul.f32 %v5966_v62, %v6033_v57  ;;  %v1199_v46 = vmul.f32 %v5966_v62, %v6048_v20  ;;  %v1200_v23 = vmul.f32 %v5966_v62, %v1060_v12  ;;  %v6166_v48 = vld [vmem:[%s7270_s6 + $0x10] sm:$0xff] }
 0x1fb   :  { %4669 = vmatmul.mubr.msk.f32.gmra.mrb[58].mxu0 %vm59_vm0, %v1165_v54  ;;  %4685 = vmatprep.mubr.msk.f32.mxu1 %vm59_vm0, %v1170_v28 }
 0x1fc   :  { %4671 = vmatprep.mubr.msk.f32.mxu0 %vm59_vm0, %v1166_v39 }
 0x1fe   :  { %4686 = vmatmul.mubr.msk.f32.vlgmr.msra.gmra.mrb[48].mxu1 %vm59_vm0, %v1171_v6  ;;  %v6186_v6 = vld [vmem:[%s7270_s6 + $0x20] sm:$0xff] }
 0x1ff   :  { %4672 = vmatmul.mubr.msk.f32.gmra.mrb[60].mxu0 %vm59_vm0, %v1167_v17  ;;  %4992 = vmatpush3.bf16.msra.mxu1 %v5767_v35  ;;  %v1174_v35 = vmul.f32 %v5879_v3, %v5991_v58  ;;  %v6143_v58 = vld [vmem:[%s7270_s6 + $0x8] sm:$0xff] }
 0x200   :  { %4674 = vmatprep.mubr.msk.f32.mxu0 %vm59_vm0, %v1168_v61  ;;  %4688 = vmatprep.mubr.msk.f32.mxu1 %vm59_vm0, %v1172_v53 }
 0x201   :  { %4994 = vmatprep.subr.bf16.mxu1 %v5769_v44 }
 0x202   :  { %4689 = vmatmul.mubr.msk.f32.gmra.mrb[50].mxu1 %vm59_vm0, %v1173_v60  ;;  %v6204_v60 = vld [vmem:[%s7270_s6 + $0x38] sm:$0xff] }
 0x203   :  { %4675 = vmatmul.mubr.msk.f32.gmra.mrb[62].mxu0 %vm59_vm0, %v1169_v59  ;;  %4996 = vmatpush3.bf16.msra.mxu1 %v5769_v44  ;;  %v1188_v44 = vmul.f32 %v5798_v29, %v1060_v12  ;;  %v1191_v29 = vmul.f32 %v5879_v3, %v6048_v20  ;;  %v1195_v3 = vmul.f32 %v5924_v11, %v6048_v20 }
 0x204   :  { %4691 = vmatprep.mubr.msk.f32.mxu1 %vm59_vm0, %v1174_v35  ;;  %4717 = vmatprep.mubr.msk.f32.mxu0 %vm59_vm0, %v1186_v30 }
 0x205   :  { %5006 = vmatprep.subr.bf16.mxu1 %v5775_v14 }
 0x206   :  { %4692 = vmatmul.mubr.msk.f32.gmra.mrb[52].mxu1 %vm59_vm0, %v1175_v13 }
 0x207   :  { %4718 = vmatmul.mubr.msk.f32.vlgmr.msra.gmra.mrb[64].mxu0 %vm59_vm0, %v1187_v37  ;;  %4694 = vmatprep.mubr.msk.f32.mxu1 %vm59_vm0, %v1176_v8  ;;  %v6219_v37 = vld [vmem:[%s7270_s6 + $0x30] sm:$0xff] }
 0x208   :  { %5000 = vmatpush3.bf16.msra.mxu0 %v5771_v56  ;;  %4720 = vmatprep.mubr.msk.f32.mxu0 %vm59_vm0, %v1188_v44  ;;  %v1179_v56 = vmul.f32 %v5924_v11, %v6004_v50 }
 0x209   :  { %5002 = vmatprep.subr.bf16.mxu0 %v5773_v4 }
 0x20a   :  { %4695 = vmatmul.mubr.msk.f32.gmra.mrb[54].mxu1 %vm59_vm0, %v1177_v2 }
 0x20b   :  { %4721 = vmatmul.mubr.msk.f32.gmra.mrb[66].mxu0 %vm59_vm0, %v1189_v10  ;;  %4697 = vmatprep.mubr.msk.f32.mxu1 %vm59_vm0, %v1178_v34 }
 0x20c   :  { %5004 = vmatpush3.bf16.msra.mxu0 %v5773_v4  ;;  %4723 = vmatprep.mubr.msk.f32.mxu0 %vm59_vm0, %v1190_v38  ;;  %v1181_v4 = vmul.f32 %v5924_v11, %v6024_v55  ;;  %v1201_v11 = vmul.f32 %v5966_v62, %v1061_v36  ;;  %v6156_v62 = vld [vmem:[%s7270_s6 + $0x18] sm:$0xff] }
 0x20d   :  { %5014 = vmatprep.subr.bf16.mxu0 %v5779_v41 }
 0x20e   :  { %4698 = vmatmul.mubr.msk.f32.gmra.mrb[56].mxu1 %vm59_vm0, %v1179_v56 }
 0x20f   :  { %4724 = vmatmul.mubr.msk.f32.gmra.mrb[68].mxu0 %vm59_vm0, %v1191_v29  ;;  %4700 = vmatprep.mubr.msk.f32.mxu1 %vm59_vm0, %v1180_v47  ;;  %v6234_v47 = vld [vmem:[%s7270_s6 + $0x48] sm:$0xff] }
 0x210   :  { %4726 = vmatprep.mubr.msk.f32.mxu0 %vm59_vm0, %v1192_v45 }
 0x212   :  { %4701 = vmatmul.mubr.msk.f32.gmra.mrb[58].mxu1 %vm59_vm0, %v1181_v4 }
 0x213   :  { %4727 = vmatmul.mubr.msk.f32.gmra.mrb[70].mxu0 %vm59_vm0, %v1193_v21  ;;  %4703 = vmatprep.mubr.msk.f32.mxu1 %vm59_vm0, %v1182_v43 }
 0x214   :  { %4729 = vmatprep.mubr.msk.f32.mxu0 %vm59_vm0, %v1194_v52 }
 0x216   :  { %4704 = vmatmul.mubr.msk.f32.gmra.mrb[60].mxu1 %vm59_vm0, %v1183_v51 }
 0x217   :  { %4730 = vmatmul.mubr.msk.f32.gmra.mrb[72].mxu0 %vm59_vm0, %v1195_v3  ;;  %4706 = vmatprep.mubr.msk.f32.mxu1 %vm59_vm0, %v1184_v33 }
 0x218   :  { %4732 = vmatprep.mubr.msk.f32.mxu0 %vm59_vm0, %v1196_v15  ;;  %v6249_v15 = vld [vmem:[%s7270_s6 + $0x40] sm:$0xff] }
 0x21a   :  { %4707 = vmatmul.mubr.msk.f32.gmra.mrb[62].mxu1 %vm59_vm0, %v1185_v24 }
 0x21b   :  { %4733 = vmatmul.mubr.msk.f32.gmra.mrb[74].mxu0 %vm59_vm0, %v1197_v40 }
 0x21c   :  { %4735 = vmatprep.mubr.msk.f32.mxu0 %vm59_vm0, %v1198_v31 }
 0x21f   :  { %4736 = vmatmul.mubr.msk.f32.gmra.mrb[76].mxu0 %vm59_vm0, %v1199_v46 }
 0x220   :  { %4738 = vmatprep.mubr.msk.f32.mxu0 %vm59_vm0, %v1200_v23 }
 0x223   :  { %4739 = vmatmul.mubr.msk.f32.gmra.mrb[78].mxu0 %vm59_vm0, %v1201_v11 }
 0x2b1   :  { %v4623_v32 = vpop.f32.mrb[32].mxu1 }
 0x2b2   :  { %v6151_v18 = vadd.f32 %v4623_v32, %v6143_v58  ;;  %v1344_v27 = vpop.f32.mrb[33].mxu1 }
 0x2b3   :  { %v6159_v22 = vadd.f32 %v1344_v27, %v6148_v0 }
 0x2b4   :  { %v2041_v50 = vsel %vm59_vm0, %v6151_v18, -inf }
 0x2b5   :  { %2042 = vmax.xlane.f32.xlu0 %v2041_v50  ;;  %v4626_v42 = vpop.f32.mrb[34].mxu1  ;;  %v2038_v39 = vsel %vm59_vm0, %v6159_v22, -inf  ;;  %v6264_v50 = vld [vmem:[%s7270_s6 + $0x58] sm:$0xff] }
 0x2b6   :  { %v6169_v54 = vadd.f32 %v4626_v42, %v6156_v62  ;;  %v1354_v28 = vpop.f32.mrb[35].mxu1 }
 0x2b7   :  { %v6177_v5 = vadd.f32 %v1354_v28, %v6166_v48 }
 0x2b8   :  { %v2047_v63 = vsel %vm59_vm0, %v6169_v54, -inf }
 0x2b9   :  { %v4655_v16 = vpop.f32.mrb[48].mxu0  ;;  %2048 = vmax.xlane.f32.xlu1 %v2047_v63  ;;  %v4629_v55 = vpop.f32.mrb[36].mxu1  ;;  %2039 = vmax.xlane.f32.xlu0 %v2038_v39  ;;  %v2044_v61 = vsel %vm59_vm0, %v6177_v5, -inf }
 0x2ba   :  { %v6189_v1 = vadd.f32 %v4629_v55, %v6174_v7  ;;  %v1364_v17 = vpop.f32.mrb[37].mxu1  ;;  %v1549_v25 = vpop.f32.mrb[49].mxu0  ;;  %v6192_v57 = vadd.f32 %v4655_v16, %v6143_v58 }
 0x2bb   :  { %v6195_v9 = vadd.f32 %v1364_v17, %v6186_v6  ;;  %v6207_v35 = vadd.f32 %v1549_v25, %v6148_v0 }
 0x2bc   :  { %v2053_v53 = vsel %vm59_vm0, %v6189_v1, -inf  ;;  %v2089_v13 = vsel %vm59_vm0, %v6192_v57, -inf }
 0x2bd   :  { %v4632_v20 = vpop.f32.mrb[38].mxu1  ;;  %v4658_v19 = vpop.f32.mrb[50].mxu0  ;;  %2045 = vmax.xlane.f32.xlu1 %v2044_v61  ;;  %2054 = vmax.xlane.f32.xlu0 %v2053_v53  ;;  %v2050_v36 = vsel %vm59_vm0, %v6195_v9, -inf  ;;  %v2086_v56 = vsel %vm59_vm0, %v6207_v35, -inf  ;;  %v6285_v61 = vld [vmem:[%s7270_s6 + $0x50] sm:$0xff] }
 0x2be   :  { %v1374_v59 = vpop.f32.mrb[39].mxu1  ;;  %v1559_v12 = vpop.f32.mrb[51].mxu0  ;;  %v6210_v30 = vadd.f32 %v4632_v20, %v6204_v60  ;;  %v6222_v34 = vadd.f32 %v4658_v19, %v6156_v62 }
 0x2bf   :  { %v6225_v38 = vadd.f32 %v1374_v59, %v6219_v37  ;;  %v6237_v52 = vadd.f32 %v1559_v12, %v6166_v48 }
 0x2c0   :  { %v2059_v29 = vsel %vm59_vm0, %v6210_v30, -inf  ;;  %v2095_v3 = vsel %vm59_vm0, %v6222_v34, -inf }
 0x2c1   :  { %v4635_v8 = vpop.f32.mrb[40].mxu1  ;;  %v4661_v44 = vpop.f32.mrb[52].mxu0  ;;  %2090 = vmax.xlane.f32.xlu1 %v2089_v13  ;;  %2051 = vmax.xlane.f32.xlu0 %v2050_v36  ;;  %v2056_v33 = vsel %vm59_vm0, %v6225_v38, -inf  ;;  %v2092_v32 = vsel %vm59_vm0, %v6237_v52, -inf }
 0x2c2   :  { %v1384_v2 = vpop.f32.mrb[41].mxu1  ;;  %v1569_v10 = vpop.f32.mrb[53].mxu0  ;;  %v6240_v51 = vadd.f32 %v4635_v8, %v6234_v47  ;;  %v6252_v23 = vadd.f32 %v4661_v44, %v6174_v7  ;;  %v6308_v44 = vld [vmem:[%s7270_s6 + $0x68] sm:$0xff] }
 0x2c3   :  { %v6255_v11 = vadd.f32 %v1384_v2, %v6249_v15  ;;  %v6273_v16 = vadd.f32 %v1569_v10, %v6186_v6 }
 0x2c4   :  { %v2065_v27 = vsel %vm59_vm0, %v6240_v51, -inf  ;;  %v2101_v17 = vsel %vm59_vm0, %v6252_v23, -inf }
 0x2c5   :  { %v4638_v45 = vpop.f32.mrb[42].mxu1  ;;  %2087 = vmax.xlane.f32.xlu1 %v2086_v56  ;;  %2060 = vmax.xlane.f32.xlu0 %v2059_v29  ;;  %v2062_v25 = vsel %vm59_vm0, %v6255_v11, -inf  ;;  %v2098_v36 = vsel %vm59_vm0, %v6273_v16, -inf }
 0x2c6   :  { %v4664_v4 = vpop.f32.mrb[54].mxu0  ;;  %v1394_v21 = vpop.f32.mrb[43].mxu1  ;;  %v6276_v55 = vadd.f32 %v4638_v45, %v6264_v50 }
 0x2c7   :  { %v1579_v43 = vpop.f32.mrb[55].mxu0  ;;  %v6296_v12 = vadd.f32 %v4664_v4, %v6204_v60  ;;  %v6299_v13 = vadd.f32 %v1394_v21, %v6285_v61 }
 0x2c8   :  { %v2071_v8 = vsel %vm59_vm0, %v6276_v55, -inf  ;;  %v6316_v45 = vadd.f32 %v1579_v43, %v6219_v37 }
 0x2c9   :  { %v4641_v24 = vpop.f32.mrb[44].mxu1  ;;  %2096 = vmax.xlane.f32.xlu1 %v2095_v3  ;;  %2057 = vmax.xlane.f32.xlu0 %v2056_v33  ;;  %7311 = vst [vmem:[#allocation6_spill] sm:$0xff] %v6299_v13  ;;  %v2107_v33 = vsel %vm59_vm0, %v6296_v12, -inf }
 0x2ca   :  { %v4667_v40 = vpop.f32.mrb[56].mxu0  ;;  %v1404_v31 = vpop.f32.mrb[45].mxu1  ;;  %7312 = vst [vmem:[#allocation7_spill] sm:$0xff] %v6316_v45  ;;  %v6324_v3 = vadd.f32 %v4641_v24, %v6308_v44 }
 0x2cb   :  { %v1589_v46 = vpop.f32.mrb[57].mxu0  ;;  %v6347_v49 = vadd.f32 %v4667_v40, %v6234_v47 }
 0x2cc   :  { %7313 = vst [vmem:[#allocation8_spill] sm:$0xff] %v6324_v3  ;;  %v6366_v26 = vadd.f32 %v1589_v46, %v6249_v15 }
 0x2cd   :  { %v4644_v42 = vpop.f32.mrb[46].mxu1  ;;  %2093 = vmax.xlane.f32.xlu1 %v2092_v32  ;;  %2066 = vmax.xlane.f32.xlu0 %v2065_v27  ;;  %v2068_v32 = vsel %vm59_vm0, %v6299_v13, -inf  ;;  %v6333_v27 = vld [vmem:[%s7270_s6 + $0x60] sm:$0xff]  ;;  %7314 = vst [vmem:[#allocation9_spill] sm:$0xff] %v6347_v49 }
 0x2ce   :  { %v6266_v28 = vpop.f32.mrb[58].mxu0  ;;  %v6268_v63 = vpop.f32.mrb[47].mxu1  ;;  %7316 = vst [vmem:[#allocation11_spill] sm:$0xff] %v6366_v26 }
 0x2cf   :  { %v6270_v39 = vpop.f32.mrb[59].mxu0  ;;  %v6402_v13 = vadd.f32 %v6266_v28, %v6264_v50 }
 0x2d0   :  { %v6418_v28 = vadd.f32 %v6270_v39, %v6285_v61 }
 0x2d1   :  { %v6287_v53 = vpop.f32.mrb[48].mxu1  ;;  %2102 = vmax.xlane.f32.xlu1 %v2101_v17  ;;  %2063 = vmax.xlane.f32.xlu0 %v2062_v25  ;;  %7318 = vst [vmem:[#allocation13_spill] sm:$0xff] %v6402_v13 }
 0x2d2   :  { %v6289_v20 = vpop.f32.mrb[60].mxu0  ;;  %v6291_v19 = vpop.f32.mrb[49].mxu1  ;;  %7319 = vst [vmem:[#allocation14_spill] sm:$0xff] %v6418_v28 }
 0x2d3   :  { %v6293_v59 = vpop.f32.mrb[61].mxu0 }
 0x2d5   :  { %v4690_v2 = vpop.f32.mrb[50].mxu1  ;;  %2099 = vmax.xlane.f32.xlu1 %v2098_v36  ;;  %2072 = vmax.xlane.f32.xlu0 %v2071_v8 }
 0x2d6   :  { %v6310_v10 = vpop.f32.mrb[62].mxu0  ;;  %v6313_v56 = vadd.f32 %v4690_v2, %v6156_v62  ;;  %v1764_v29 = vpop.f32.mrb[51].mxu1 }
 0x2d7   :  { %v6318_v4 = vpop.f32.mrb[63].mxu0  ;;  %v6321_v21 = vadd.f32 %v1764_v29, %v6166_v48  ;;  %v2104_v29 = vsel %vm59_vm0, %v6316_v45, -inf }
 0x2d9   :  { %v4693_v43 = vpop.f32.mrb[52].mxu1  ;;  %2108 = vmax.xlane.f32.xlu1 %v2107_v33  ;;  %2069 = vmax.xlane.f32.xlu0 %v2068_v32  ;;  %v6350_v33 = vadd.f32 %v1404_v31, %v6333_v27 }
 0x2da   :  { %v6336_v17 = vadd.f32 %v4693_v43, %v6174_v7  ;;  %v4719_v25 = vpop.f32.mrb[64].mxu0  ;;  %v1774_v24 = vpop.f32.mrb[53].mxu1  ;;  %v2077_v43 = vsel %vm59_vm0, %v6324_v3, -inf }
 0x2db   :  { %v6339_v36 = vadd.f32 %v4719_v25, %v6143_v58  ;;  %v6342_v8 = vadd.f32 %v1774_v24, %v6186_v6  ;;  %v1959_v2 = vpop.f32.mrb[65].mxu0  ;;  %7315 = vst [vmem:[#allocation10_spill] sm:$0xff] %v6350_v33  ;;  %v6360_v25 = vld [vmem:[%s7270_s6 + $0x78] sm:$0xff]  ;;  %v2074_v46 = vsel %vm59_vm0, %v6350_v33, -inf }
 0x2dc   :  { %v6353_v32 = vadd.f32 %v1959_v2, %v6148_v0  ;;  %v6375_v45 = vadd.f32 %v4644_v42, %v6360_v25 }
 0x2dd   :  { %v4696_v24 = vpop.f32.mrb[54].mxu1  ;;  %2105 = vmax.xlane.f32.xlu1 %v2104_v29  ;;  %2078 = vmax.xlane.f32.xlu0 %v2077_v43  ;;  %v2113_v43 = vsel %vm59_vm0, %v6347_v49, -inf  ;;  %v2110_v49 = vsel %vm59_vm0, %v6366_v26, -inf }
 0x2de   :  { %v6363_v40 = vadd.f32 %v4696_v24, %v6204_v60  ;;  %v4722_v41 = vpop.f32.mrb[66].mxu0  ;;  %v1784_v31 = vpop.f32.mrb[55].mxu1  ;;  %7317 = vst [vmem:[#allocation12_spill] sm:$0xff] %v6375_v45 }
 0x2df   :  { %v6369_v2 = vadd.f32 %v4722_v41, %v6156_v62  ;;  %v6372_v14 = vadd.f32 %v1784_v31, %v6219_v37  ;;  %v1969_v3 = vpop.f32.mrb[67].mxu0  ;;  %v6387_v41 = vld [vmem:[%s7270_s6 + $0x70] sm:$0xff] }
 0x2e0   :  { %v6378_v29 = vadd.f32 %v1969_v3, %v6166_v48 }
 0x2e1   :  { %v4699_v62 = vpop.f32.mrb[56].mxu1  ;;  %2114 = vmax.xlane.f32.xlu1 %v2113_v43  ;;  %2075 = vmax.xlane.f32.xlu0 %v2074_v46  ;;  %v6406_v43 = vadd.f32 %v6268_v63, %v6387_v41 }
 0x2e2   :  { %v6390_v42 = vadd.f32 %v4699_v62, %v6234_v47  ;;  %v4725_v24 = vpop.f32.mrb[68].mxu0  ;;  %v1794_v48 = vpop.f32.mrb[57].mxu1 }
 0x2e3   :  { %v6393_v3 = vadd.f32 %v4725_v24, %v6174_v7  ;;  %v6396_v31 = vadd.f32 %v1794_v48, %v6249_v15  ;;  %v1979_v33 = vpop.f32.mrb[69].mxu0  ;;  %v2083_v7 = vsel %vm59_vm0, %v6375_v45, -inf  ;;  %v2080_v39 = vsel %vm59_vm0, %v6406_v43, -inf }
 0x2e4   :  { %v6409_v46 = vadd.f32 %v1979_v33, %v6186_v6 }
 0x2e5   :  { %v4702_v62 = vpop.f32.mrb[58].mxu1  ;;  %2111 = vmax.xlane.f32.xlu1 %v2110_v49  ;;  %2084 = vmax.xlane.f32.xlu0 %v2083_v7  ;;  %v6428_v49 = vadd.f32 %v6289_v20, %v6308_v44  ;;  %v6442_v20 = vadd.f32 %v6287_v53, %v6143_v58 }
 0x2e6   :  { %v6414_v24 = vadd.f32 %v4702_v62, %v6264_v50  ;;  %v4728_v48 = vpop.f32.mrb[70].mxu0  ;;  %v1804_v26 = vpop.f32.mrb[59].mxu1  ;;  %v2119_v62 = vsel %vm59_vm0, %v6402_v13, -inf }
 0x2e7   :  { %v6421_v63 = vadd.f32 %v4728_v48, %v6204_v60  ;;  %v6424_v6 = vadd.f32 %v1804_v26, %v6285_v61  ;;  %v1989_v33 = vpop.f32.mrb[71].mxu0  ;;  %v2125_v58 = vsel %vm59_vm0, %v6428_v49, -inf }
 0x2e8   :  { %v6431_v7 = vadd.f32 %v1989_v33, %v6219_v37 }
 0x2e9   :  { %v4705_v45 = vpop.f32.mrb[60].mxu1  ;;  %2120 = vmax.xlane.f32.xlu1 %v2119_v62  ;;  %2081 = vmax.xlane.f32.xlu0 %v2080_v39  ;;  %v6452_v62 = vadd.f32 %v6293_v59, %v6333_v27  ;;  %v2116_v39 = vsel %vm59_vm0, %v6418_v28, -inf  ;;  %v6466_v59 = vadd.f32 %v6291_v19, %v6148_v0 }
 0x2ea   :  { %v6438_v26 = vadd.f32 %v4705_v45, %v6308_v44  ;;  %v4731_v60 = vpop.f32.mrb[72].mxu0  ;;  %v1814_v48 = vpop.f32.mrb[61].mxu1 }
 0x2eb   :  { %v6445_v37 = vadd.f32 %v4731_v60, %v6234_v47  ;;  %v6448_v33 = vadd.f32 %v1814_v48, %v6333_v27  ;;  %v1999_v13 = vpop.f32.mrb[73].mxu0  ;;  %v2122_v0 = vsel %vm59_vm0, %v6452_v62, -inf }
 0x2ec   :  { %v6455_v45 = vadd.f32 %v1999_v13, %v6249_v15 }
 0x2ed   :  { %v4708_v53 = vpop.f32.mrb[62].mxu1  ;;  %2117 = vmax.xlane.f32.xlu1 %v2116_v39  ;;  %2126 = vmax.xlane.f32.xlu0 %v2125_v58  ;;  %v6476_v39 = vadd.f32 %v6310_v10, %v6360_v25  ;;  %v6490_v10 = vadd.f32 %v6318_v4, %v6387_v41  ;;  %v2143_v4 = vsel %vm59_vm0, %v6313_v56, -inf }
 0x2ee   :  { %v6462_v47 = vadd.f32 %v4708_v53, %v6360_v25  ;;  %v4734_v60 = vpop.f32.mrb[74].mxu0  ;;  %v1824_v48 = vpop.f32.mrb[63].mxu1  ;;  %v2137_v53 = vsel %vm59_vm0, %v6442_v20, -inf }
 0x2ef   :  { %v6469_v15 = vadd.f32 %v4734_v60, %v6264_v50  ;;  %v6472_v13 = vadd.f32 %v1824_v48, %v6387_v41  ;;  %v2009_v28 = vpop.f32.mrb[75].mxu0  ;;  %v2131_v48 = vsel %vm59_vm0, %v6476_v39, -inf }
 0x2f0   :  { %v6479_v58 = vadd.f32 %v2009_v28, %v6285_v61  ;;  %v2134_v28 = vsel %vm59_vm0, %v6466_v59, -inf }
 0x2f1   :  { %2138 = vmax.xlane.f32.xlu1 %v2137_v53  ;;  %2123 = vmax.xlane.f32.xlu0 %v2122_v0 }
 0x2f2   :  { %7320 = vst [vmem:[#allocation15_spill] sm:$0xff] %v6479_v58  ;;  %v4737_v50 = vpop.f32.mrb[76].mxu0 }
 0x2f3   :  { %v6486_v19 = vadd.f32 %v4737_v50, %v6308_v44  ;;  %v2019_v60 = vpop.f32.mrb[77].mxu0 }
 0x2f4   :  { %v6493_v61 = vadd.f32 %v2019_v60, %v6333_v27  ;;  %v2128_v27 = vsel %vm59_vm0, %v6490_v10, -inf  ;;  %v2140_v60 = vsel %vm59_vm0, %v6321_v21, -inf }
 0x2f5   :  { %7321 = vst [vmem:[#allocation16_spill] sm:$0xff] %v6486_v19  ;;  %2135 = vmax.xlane.f32.xlu1 %v2134_v28  ;;  %2132 = vmax.xlane.f32.xlu0 %v2131_v48  ;;  %v2149_v28 = vsel %vm59_vm0, %v6336_v17, -inf  ;;  %v2182_v48 = vsel %vm59_vm0, %v6353_v32, -inf }
 0x2f6   :  { %7322 = vst [vmem:[#allocation17_spill] sm:$0xff] %v6493_v61  ;;  %v4740_v53 = vpop.f32.mrb[78].mxu0 }
 0x2f7   :  { %v6500_v44 = vadd.f32 %v4740_v53, %v6360_v25  ;;  %v2029_v0 = vpop.f32.mrb[79].mxu0  ;;  %v2185_v25 = vsel %vm59_vm0, %v6339_v36, -inf  ;;  %v2155_v53 = vsel %vm59_vm0, %v6363_v40, -inf }
 0x2f8   :  { %v6503_v50 = vadd.f32 %v2029_v0, %v6387_v41  ;;  %v2146_v41 = vsel %vm59_vm0, %v6342_v8, -inf  ;;  %v2152_v0 = vsel %vm59_vm0, %v6372_v14, -inf }
 0x2f9   :  { %7323 = vst [vmem:[#allocation18_spill] sm:$0xff] %v6500_v44  ;;  %2144 = vmax.xlane.f32.xlu1 %v2143_v4  ;;  %2129 = vmax.xlane.f32.xlu0 %v2128_v27  ;;  %v2191_v4 = vsel %vm59_vm0, %v6369_v2, -inf  ;;  %v2161_v27 = vsel %vm59_vm0, %v6390_v42, -inf }
 0x2fa   :  { %7324 = vst [vmem:[#allocation19_spill] sm:$0xff] %v6503_v50 }
 0x2fd   :  { %2141 = vmax.xlane.f32.xlu1 %v2140_v60  ;;  %2150 = vmax.xlane.f32.xlu0 %v2149_v28  ;;  %v2188_v60 = vsel %vm59_vm0, %v6378_v29, -inf  ;;  %v2158_v28 = vsel %vm59_vm0, %v6396_v31, -inf }
 0x301   :  { %2186 = vmax.xlane.f32.xlu1 %v2185_v25  ;;  %2147 = vmax.xlane.f32.xlu0 %v2146_v41  ;;  %v2197_v25 = vsel %vm59_vm0, %v6393_v3, -inf  ;;  %v2167_v41 = vsel %vm59_vm0, %v6414_v24, -inf }
 0x305   :  { %2183 = vmax.xlane.f32.xlu1 %v2182_v48  ;;  %2156 = vmax.xlane.f32.xlu0 %v2155_v53  ;;  %v2194_v48 = vsel %vm59_vm0, %v6409_v46, -inf  ;;  %v2164_v53 = vsel %vm59_vm0, %v6424_v6, -inf }
 0x309   :  { %2153 = vmax.xlane.f32.xlu0 %v2152_v0  ;;  %2192 = vmax.xlane.f32.xlu1 %v2191_v4  ;;  %v2203_v0 = vsel %vm59_vm0, %v6421_v63, -inf  ;;  %v2173_v4 = vsel %vm59_vm0, %v6438_v26, -inf }
 0x30d   :  { %2162 = vmax.xlane.f32.xlu0 %v2161_v27  ;;  %2189 = vmax.xlane.f32.xlu1 %v2188_v60  ;;  %v2200_v27 = vsel %vm59_vm0, %v6431_v7, -inf  ;;  %v2170_v60 = vsel %vm59_vm0, %v6448_v33, -inf }
 0x311   :  { %2159 = vmax.xlane.f32.xlu0 %v2158_v28  ;;  %2198 = vmax.xlane.f32.xlu1 %v2197_v25  ;;  %v2209_v28 = vsel %vm59_vm0, %v6445_v37, -inf  ;;  %v2179_v25 = vsel %vm59_vm0, %v6462_v47, -inf }
 0x315   :  { %2168 = vmax.xlane.f32.xlu0 %v2167_v41  ;;  %2195 = vmax.xlane.f32.xlu1 %v2194_v48  ;;  %v2206_v41 = vsel %vm59_vm0, %v6455_v45, -inf  ;;  %v2176_v48 = vsel %vm59_vm0, %v6472_v13, -inf }
 0x319   :  { %2165 = vmax.xlane.f32.xlu0 %v2164_v53  ;;  %2204 = vmax.xlane.f32.xlu1 %v2203_v0  ;;  %v2215_v53 = vsel %vm59_vm0, %v6469_v15, -inf  ;;  %v2218_v0 = vsel %vm59_vm0, %v6493_v61, -inf }
 0x31d   :  { %2174 = vmax.xlane.f32.xlu0 %v2173_v4  ;;  %2201 = vmax.xlane.f32.xlu1 %v2200_v27  ;;  %v2212_v4 = vsel %vm59_vm0, %v6479_v58, -inf  ;;  %v2224_v27 = vsel %vm59_vm0, %v6503_v50, -inf }
 0x321   :  { %2171 = vmax.xlane.f32.xlu0 %v2170_v60  ;;  %2210 = vmax.xlane.f32.xlu1 %v2209_v28  ;;  %v2221_v60 = vsel %vm59_vm0, %v6486_v19, -inf  ;;  %v2227_v28 = vsel %vm59_vm0, %v6500_v44, -inf }
 0x325   :  { %2180 = vmax.xlane.f32.xlu0 %v2179_v25  ;;  %2207 = vmax.xlane.f32.xlu1 %v2206_v41 }
 0x329   :  { %2177 = vmax.xlane.f32.xlu0 %v2176_v48  ;;  %2216 = vmax.xlane.f32.xlu1 %v2215_v53 }
 0x32d   :  { %2219 = vmax.xlane.f32.xlu0 %v2218_v0  ;;  %2213 = vmax.xlane.f32.xlu1 %v2212_v4 }
 0x331   :  { %2225 = vmax.xlane.f32.xlu0 %v2224_v27  ;;  %2222 = vmax.xlane.f32.xlu1 %v2221_v60 }
 0x335   :  { %2228 = vmax.xlane.f32.xlu1 %v2227_v28 }
 0x342   :  { %v2043_v25 = vpop.xlane.xlu0 %2042 }
 0x343   :  { %v2231_v41 = vsub.f32 %v6151_v18, %v2043_v25 }
 0x345   :  { %v2296_v48 = vmul.f32 1.442695, %v2231_v41 }
 0x346   :  { %v2049_v53 = vpop.xlane.xlu1 %2048  ;;  %v2040_v58 = vpop.xlane.xlu0 %2039 }
 0x347   :  { %5093 = vpow2.f32 %v2296_v48  ;;  %v2233_v0 = vsub.f32 %v6169_v54, %v2049_v53  ;;  %v2230_v4 = vsub.f32 %v6159_v22, %v2040_v58 }
 0x349   :  { %v2300_v50 = vmul.f32 1.442695, %v2233_v0  ;;  %v2294_v61 = vmul.f32 1.442695, %v2230_v4 }
 0x34a   :  { %v2046_v19 = vpop.xlane.xlu1 %2045  ;;  %v2055_v27 = vpop.xlane.xlu0 %2054 }
 0x34b   :  { %5095 = vpow2.f32 %v2300_v50  ;;  %v2232_v60 = vsub.f32 %v6177_v5, %v2046_v19  ;;  %v2235_v28 = vsub.f32 %v6189_v1, %v2055_v27 }
 0x34c   :  { %5097 = vpow2.f32 %v2294_v61 }
 0x34d   :  { %v2298_v44 = vmul.f32 1.442695, %v2232_v60  ;;  %v2304_v18 = vmul.f32 1.442695, %v2235_v28 }
 0x34e   :  { %v2091_v25 = vpop.xlane.xlu1 %2090  ;;  %v2052_v41 = vpop.xlane.xlu0 %2051 }
 0x34f   :  { %5099 = vpow2.f32 %v2298_v44  ;;  %v2247_v48 = vsub.f32 %v6192_v57, %v2091_v25  ;;  %v2234_v54 = vsub.f32 %v6195_v9, %v2052_v41 }
 0x350   :  { %5101 = vpow2.f32 %v2304_v18 }
 0x351   :  { %v6574_v22 = vpop.eup %5093  ;;  %v2328_v58 = vmul.f32 1.442695, %v2247_v48  ;;  %v2302_v53 = vmul.f32 1.442695, %v2234_v54 }
 0x352   :  { %v2088_v50 = vpop.xlane.xlu1 %2087  ;;  %v2061_v0 = vpop.xlane.xlu0 %2060  ;;  %v2425_v5 = vsel %vm59_vm0, %v6574_v22, 0.0 }
 0x353   :  { %5103 = vpow2.f32 %v2328_v58  ;;  %v2246_v1 = vsub.f32 %v6207_v35, %v2088_v50  ;;  %v2237_v19 = vsub.f32 %v6210_v30, %v2061_v0  ;;  %2426 = vadd.xlane.f32.xlu1 %v2425_v5 }
 0x354   :  { %5105 = vpow2.f32 %v2302_v53 }
 0x355   :  { %v6580_v61 = vpop.eup %5095  ;;  %v2326_v57 = vmul.f32 1.442695, %v2246_v1  ;;  %v2308_v44 = vmul.f32 1.442695, %v2237_v19 }
 0x356   :  { %v6582_v9 = vpop.eup %5097  ;;  %v2097_v4 = vpop.xlane.xlu1 %2096  ;;  %v2431_v60 = vsel %vm59_vm0, %v6580_v61, 0.0 }
 0x357   :  { %v2058_v27 = vpop.xlane.xlu0 %2057  ;;  %5107 = vpow2.f32 %v2326_v57  ;;  %v2249_v28 = vsub.f32 %v6222_v34, %v2097_v4  ;;  %v2422_v30 = vsel %vm59_vm0, %v6582_v9, 0.0  ;;  %2432 = vadd.xlane.f32.xlu1 %v2431_v60 }
 0x358   :  { %v2236_v35 = vsub.f32 %v6225_v38, %v2058_v27  ;;  %2423 = vadd.xlane.f32.xlu0 %v2422_v30  ;;  %5109 = vpow2.f32 %v2308_v44 }
 0x359   :  { %v6590_v18 = vpop.eup %5099  ;;  %v2332_v25 = vmul.f32 1.442695, %v2249_v28 }
 0x35a   :  { %v2306_v41 = vmul.f32 1.442695, %v2236_v35  ;;  %v2094_v48 = vpop.xlane.xlu1 %2093  ;;  %v2428_v58 = vsel %vm59_vm0, %v6590_v18, 0.0  ;;  %v6596_v53 = vpop.eup %5101 }
 0x35b   :  { %v2067_v54 = vpop.xlane.xlu0 %2066  ;;  %5111 = vpow2.f32 %v2332_v25  ;;  %v2248_v34 = vsub.f32 %v6237_v52, %v2094_v48 }
 0x35c   :  { %v2239_v38 = vsub.f32 %v6240_v51, %v2067_v54  ;;  %2429 = vadd.xlane.f32.xlu0 %v2428_v58  ;;  %5113 = vpow2.f32 %v2306_v41  ;;  %v2437_v51 = vsel %vm59_vm0, %v6596_v53, 0.0 }
 0x35d   :  { %v6598_v50 = vpop.eup %5103  ;;  %v2330_v0 = vmul.f32 1.442695, %v2248_v34 }
 0x35e   :  { %v2312_v5 = vmul.f32 1.442695, %v2239_v38  ;;  %v2103_v1 = vpop.xlane.xlu1 %2102  ;;  %v2473_v57 = vsel %vm59_vm0, %v6598_v50, 0.0  ;;  %v6606_v4 = vpop.eup %5105 }
 0x35f   :  { %v2064_v19 = vpop.xlane.xlu0 %2063  ;;  %5115 = vpow2.f32 %v2330_v0  ;;  %v2251_v44 = vsub.f32 %v6252_v23, %v2103_v1  ;;  %2474 = vadd.xlane.f32.xlu1 %v2473_v57  ;;  %v2434_v41 = vsel %vm59_vm0, %v6606_v4, 0.0 }
 0x360   :  { %v2238_v52 = vsub.f32 %v6255_v11, %v2064_v19  ;;  %2438 = vadd.xlane.f32.xlu0 %v2437_v51  ;;  %5117 = vpow2.f32 %v2312_v5 }
 0x361   :  { %v6608_v27 = vpop.eup %5107  ;;  %v2336_v60 = vmul.f32 1.442695, %v2251_v44 }
 0x362   :  { %v2310_v28 = vmul.f32 1.442695, %v2238_v52  ;;  %v2100_v35 = vpop.xlane.xlu1 %2099  ;;  %v2470_v25 = vsel %vm59_vm0, %v6608_v27, 0.0  ;;  %v6616_v48 = vpop.eup %5109 }
 0x363   :  { %v2073_v30 = vpop.xlane.xlu0 %2072  ;;  %5119 = vpow2.f32 %v2336_v60  ;;  %v2250_v23 = vsub.f32 %v6273_v16, %v2100_v35  ;;  %2471 = vadd.xlane.f32.xlu1 %v2470_v25  ;;  %v2443_v19 = vsel %vm59_vm0, %v6616_v48, 0.0  ;;  %v7327_v25 = vld [vmem:[#allocation8_spill] sm:$0xff] }
 0x364   :  { %v2241_v11 = vsub.f32 %v6276_v55, %v2073_v30  ;;  %2435 = vadd.xlane.f32.xlu0 %v2434_v41  ;;  %5121 = vpow2.f32 %v2310_v28  ;;  %v7325_v55 = vld [vmem:[#allocation6_spill] sm:$0xff] }
 0x365   :  { %v6618_v54 = vpop.eup %5111  ;;  %v2334_v58 = vmul.f32 1.442695, %v2250_v23 }
 0x366   :  { %v2316_v34 = vmul.f32 1.442695, %v2241_v11  ;;  %v2109_v38 = vpop.xlane.xlu1 %2108  ;;  %v2479_v5 = vsel %vm59_vm0, %v6618_v54, 0.0  ;;  %v6626_v57 = vpop.eup %5113 }
 0x367   :  { %v2070_v0 = vpop.xlane.xlu0 %2069  ;;  %5123 = vpow2.f32 %v2334_v58  ;;  %v2253_v16 = vsub.f32 %v6296_v12, %v2109_v38  ;;  %2480 = vadd.xlane.f32.xlu1 %v2479_v5  ;;  %v7326_v12 = vld [vmem:[#allocation7_spill] sm:$0xff]  ;;  %v2440_v11 = vsel %vm59_vm0, %v6626_v57, 0.0 }
 0x368   :  { %v2240_v1 = vsub.f32 %v7325_v55, %v2070_v0  ;;  %2444 = vadd.xlane.f32.xlu0 %v2443_v19  ;;  %5125 = vpow2.f32 %v2316_v34  ;;  %v7329_v55 = vld [vmem:[#allocation9_spill] sm:$0xff]  ;;  %v7330_v19 = vld [vmem:[#allocation10_spill] sm:$0xff] }
 0x369   :  { %v6628_v44 = vpop.eup %5115  ;;  %v2340_v52 = vmul.f32 1.442695, %v2253_v16 }
 0x36a   :  { %v2314_v51 = vmul.f32 1.442695, %v2240_v1  ;;  %v2106_v60 = vpop.xlane.xlu1 %2105  ;;  %v2476_v35 = vsel %vm59_vm0, %v6628_v44, 0.0  ;;  %v6636_v41 = vpop.eup %5117 }
 0x36b   :  { %v2079_v28 = vpop.xlane.xlu0 %2078  ;;  %5127 = vpow2.f32 %v2340_v52  ;;  %v2252_v30 = vsub.f32 %v7326_v12, %v2106_v60  ;;  %2477 = vadd.xlane.f32.xlu1 %v2476_v35  ;;  %7328 = vst [vmem:[#allocation6_spill] sm:$0xff] %v6636_v41  ;;  %v2449_v60 = vsel %vm59_vm0, %v6636_v41, 0.0 }
 0x36c   :  { %v2243_v23 = vsub.f32 %v7327_v25, %v2079_v28  ;;  %2441 = vadd.xlane.f32.xlu0 %v2440_v11  ;;  %5129 = vpow2.f32 %v2314_v51  ;;  %v7331_v11 = vld [vmem:[#allocation11_spill] sm:$0xff] }
 0x36d   :  { %v6638_v58 = vpop.eup %5119  ;;  %v2338_v34 = vmul.f32 1.442695, %v2252_v30 }
 0x36e   :  { %v2320_v38 = vmul.f32 1.442695, %v2243_v23  ;;  %v2115_v0 = vpop.xlane.xlu1 %2114  ;;  %v2485_v16 = vsel %vm59_vm0, %v6638_v58, 0.0  ;;  %v6646_v28 = vpop.eup %5121 }
 0x36f   :  { %v2076_v5 = vpop.xlane.xlu0 %2075  ;;  %5131 = vpow2.f32 %v2338_v34  ;;  %v2255_v1 = vsub.f32 %v7329_v55, %v2115_v0  ;;  %2486 = vadd.xlane.f32.xlu1 %v2485_v16  ;;  %v7332_v0 = vld [vmem:[#allocation12_spill] sm:$0xff]  ;;  %v2446_v16 = vsel %vm59_vm0, %v6646_v28, 0.0 }
 0x370   :  { %v2242_v52 = vsub.f32 %v7330_v19, %v2076_v5  ;;  %2450 = vadd.xlane.f32.xlu0 %v2449_v60  ;;  %5133 = vpow2.f32 %v2320_v38 }
 0x371   :  { %v6648_v35 = vpop.eup %5123  ;;  %v2344_v51 = vmul.f32 1.442695, %v2255_v1 }
 0x372   :  { %v2318_v12 = vmul.f32 1.442695, %v2242_v52  ;;  %v2112_v30 = vpop.xlane.xlu1 %2111  ;;  %v2482_v23 = vsel %vm59_vm0, %v6648_v35, 0.0  ;;  %v6656_v55 = vpop.eup %5125 }
 0x373   :  { %v2085_v25 = vpop.xlane.xlu0 %2084  ;;  %5135 = vpow2.f32 %v2344_v51  ;;  %v2254_v34 = vsub.f32 %v7331_v11, %v2112_v30  ;;  %2483 = vadd.xlane.f32.xlu1 %v2482_v23  ;;  %7333 = vst [vmem:[#allocation7_spill] sm:$0xff] %v6656_v55  ;;  %v7334_v30 = vld [vmem:[#allocation13_spill] sm:$0xff]  ;;  %v2455_v23 = vsel %vm59_vm0, %v6656_v55, 0.0 }
 0x374   :  { %v2245_v5 = vsub.f32 %v7332_v0, %v2085_v25  ;;  %2447 = vadd.xlane.f32.xlu0 %v2446_v16  ;;  %5137 = vpow2.f32 %v2318_v12 }
 0x375   :  { %v6658_v1 = vpop.eup %5127  ;;  %v2342_v38 = vmul.f32 1.442695, %v2254_v34 }
 0x376   :  { %v2324_v19 = vmul.f32 1.442695, %v2245_v5  ;;  %v2121_v52 = vpop.xlane.xlu1 %2120  ;;  %v2491_v51 = vsel %vm59_vm0, %v6658_v1, 0.0  ;;  %v6666_v0 = vpop.eup %5129 }
 0x377   :  { %v2082_v60 = vpop.xlane.xlu0 %2081  ;;  %5139 = vpow2.f32 %v2342_v38  ;;  %v2257_v25 = vsub.f32 %v7334_v30, %v2121_v52  ;;  %2492 = vadd.xlane.f32.xlu1 %v2491_v51  ;;  %v7335_v52 = vld [vmem:[#allocation14_spill] sm:$0xff]  ;;  %v2452_v51 = vsel %vm59_vm0, %v6666_v0, 0.0 }
 0x378   :  { %v2244_v11 = vsub.f32 %v6406_v43, %v2082_v60  ;;  %2456 = vadd.xlane.f32.xlu0 %v2455_v23  ;;  %5141 = vpow2.f32 %v2324_v19 }
 0x379   :  { %v6668_v34 = vpop.eup %5131  ;;  %v2348_v12 = vmul.f32 1.442695, %v2257_v25 }
 0x37a   :  { %v2322_v5 = vmul.f32 1.442695, %v2244_v11  ;;  %v2118_v16 = vpop.xlane.xlu1 %2117  ;;  %v2488_v38 = vsel %vm59_vm0, %v6668_v34, 0.0  ;;  %v6676_v30 = vpop.eup %5133 }
 0x37b   :  { %v2127_v41 = vpop.xlane.xlu0 %2126  ;;  %5143 = vpow2.f32 %v2348_v12  ;;  %v2256_v43 = vsub.f32 %v7335_v52, %v2118_v16  ;;  %2489 = vadd.xlane.f32.xlu1 %v2488_v38  ;;  %v2461_v16 = vsel %vm59_vm0, %v6676_v30, 0.0 }
 0x37c   :  { %v2259_v60 = vsub.f32 %v6428_v49, %v2127_v41  ;;  %2453 = vadd.xlane.f32.xlu0 %v2452_v51  ;;  %5145 = vpow2.f32 %v2322_v5 }
 0x37d   :  { %v6678_v25 = vpop.eup %5135  ;;  %v2346_v19 = vmul.f32 1.442695, %v2256_v43 }
 0x37e   :  { %v2352_v11 = vmul.f32 1.442695, %v2259_v60  ;;  %v2139_v23 = vpop.xlane.xlu1 %2138  ;;  %v2497_v12 = vsel %vm59_vm0, %v6678_v25, 0.0  ;;  %v6686_v38 = vpop.eup %5137 }
 0x37f   :  { %v2124_v55 = vpop.xlane.xlu0 %2123  ;;  %5147 = vpow2.f32 %v2346_v19  ;;  %v2263_v49 = vsub.f32 %v6442_v20, %v2139_v23  ;;  %2498 = vadd.xlane.f32.xlu1 %v2497_v12 }
 0x380   :  { %v2258_v41 = vsub.f32 %v6452_v62, %v2124_v55  ;;  %2462 = vadd.xlane.f32.xlu0 %v2461_v16  ;;  %5149 = vpow2.f32 %v2352_v11  ;;  %v2458_v55 = vsel %vm59_vm0, %v6686_v38, 0.0 }
 0x381   :  { %v6688_v52 = vpop.eup %5139  ;;  %v2360_v5 = vmul.f32 1.442695, %v2263_v49 }
 0x382   :  { %v2350_v43 = vmul.f32 1.442695, %v2258_v41  ;;  %v2136_v60 = vpop.xlane.xlu1 %2135  ;;  %v2494_v19 = vsel %vm59_vm0, %v6688_v52, 0.0  ;;  %v6696_v23 = vpop.eup %5141 }
 0x383   :  { %v2133_v51 = vpop.xlane.xlu0 %2132  ;;  %5151 = vpow2.f32 %v2360_v5  ;;  %v2262_v20 = vsub.f32 %v6466_v59, %v2136_v60  ;;  %2495 = vadd.xlane.f32.xlu1 %v2494_v19  ;;  %v2467_v60 = vsel %vm59_vm0, %v6696_v23, 0.0 }
 0x384   :  { %v2261_v62 = vsub.f32 %v6476_v39, %v2133_v51  ;;  %2459 = vadd.xlane.f32.xlu0 %v2458_v55  ;;  %5153 = vpow2.f32 %v2350_v43 }
 0x385   :  { %v6698_v12 = vpop.eup %5143  ;;  %v2358_v11 = vmul.f32 1.442695, %v2262_v20 }
 0x386   :  { %v2356_v49 = vmul.f32 1.442695, %v2261_v62  ;;  %v2145_v41 = vpop.xlane.xlu1 %2144  ;;  %v2503_v5 = vsel %vm59_vm0, %v6698_v12, 0.0  ;;  %v6706_v51 = vpop.eup %5145 }
 0x387   :  { %v2130_v16 = vpop.xlane.xlu0 %2129  ;;  %5155 = vpow2.f32 %v2358_v11  ;;  %v2265_v59 = vsub.f32 %v6313_v56, %v2145_v41  ;;  %2504 = vadd.xlane.f32.xlu1 %v2503_v5  ;;  %v2464_v41 = vsel %vm59_vm0, %v6706_v51, 0.0 }
 0x388   :  { %v2260_v39 = vsub.f32 %v6490_v10, %v2130_v16  ;;  %2468 = vadd.xlane.f32.xlu0 %v2467_v60  ;;  %5157 = vpow2.f32 %v2356_v49 }
 0x389   :  { %v6708_v19 = vpop.eup %5147  ;;  %v2364_v43 = vmul.f32 1.442695, %v2265_v59 }
 0x38a   :  { %v2354_v20 = vmul.f32 1.442695, %v2260_v39  ;;  %v2142_v62 = vpop.xlane.xlu1 %2141  ;;  %v2500_v11 = vsel %vm59_vm0, %v6708_v19, 0.0  ;;  %v6716_v16 = vpop.eup %5149 }
 0x38b   :  { %v2151_v55 = vpop.xlane.xlu0 %2150  ;;  %5159 = vpow2.f32 %v2364_v43  ;;  %v2264_v56 = vsub.f32 %v6321_v21, %v2142_v62  ;;  %2501 = vadd.xlane.f32.xlu1 %v2500_v11  ;;  %v2509_v62 = vsel %vm59_vm0, %v6716_v16, 0.0 }
 0x38c   :  { %v2267_v10 = vsub.f32 %v6336_v17, %v2151_v55  ;;  %2465 = vadd.xlane.f32.xlu0 %v2464_v41  ;;  %5161 = vpow2.f32 %v2354_v20 }
 0x38d   :  { %v6718_v5 = vpop.eup %5151  ;;  %v2362_v49 = vmul.f32 1.442695, %v2264_v56 }
 0x38e   :  { %v2368_v59 = vmul.f32 1.442695, %v2267_v10  ;;  %v2187_v39 = vpop.xlane.xlu1 %2186  ;;  %v2521_v43 = vsel %vm59_vm0, %v6718_v5, 0.0  ;;  %v6726_v55 = vpop.eup %5153 }
 0x38f   :  { %v2148_v60 = vpop.xlane.xlu0 %2147  ;;  %5163 = vpow2.f32 %v2362_v49  ;;  %v2279_v21 = vsub.f32 %v6339_v36, %v2187_v39  ;;  %2522 = vadd.xlane.f32.xlu1 %v2521_v43  ;;  %v2506_v39 = vsel %vm59_vm0, %v6726_v55, 0.0 }
 0x390   :  { %v2266_v17 = vsub.f32 %v6342_v8, %v2148_v60  ;;  %2510 = vadd.xlane.f32.xlu0 %v2509_v62  ;;  %5165 = vpow2.f32 %v2368_v59 }
 0x391   :  { %v6728_v11 = vpop.eup %5155  ;;  %v2392_v20 = vmul.f32 1.442695, %v2279_v21 }
 0x392   :  { %v2366_v56 = vmul.f32 1.442695, %v2266_v17  ;;  %v2184_v10 = vpop.xlane.xlu1 %2183  ;;  %v2518_v49 = vsel %vm59_vm0, %v6728_v11, 0.0  ;;  %v6736_v60 = vpop.eup %5157 }
 0x393   :  { %v2157_v41 = vpop.xlane.xlu0 %2156  ;;  %5167 = vpow2.f32 %v2392_v20  ;;  %v2278_v36 = vsub.f32 %v6353_v32, %v2184_v10  ;;  %2519 = vadd.xlane.f32.xlu1 %v2518_v49  ;;  %v2515_v10 = vsel %vm59_vm0, %v6736_v60, 0.0 }
 0x394   :  { %v2269_v8 = vsub.f32 %v6363_v40, %v2157_v41  ;;  %2507 = vadd.xlane.f32.xlu0 %v2506_v39  ;;  %5169 = vpow2.f32 %v2366_v56 }
 0x395   :  { %v6738_v43 = vpop.eup %5159  ;;  %v2390_v59 = vmul.f32 1.442695, %v2278_v36 }
 0x396   :  { %v2372_v21 = vmul.f32 1.442695, %v2269_v8  ;;  %v2193_v62 = vpop.xlane.xlu1 %2192  ;;  %v2527_v20 = vsel %vm59_vm0, %v6738_v43, 0.0  ;;  %v6746_v41 = vpop.eup %5161 }
 0x397   :  { %v2154_v17 = vpop.xlane.xlu0 %2153  ;;  %5171 = vpow2.f32 %v2390_v59  ;;  %v2281_v40 = vsub.f32 %v6369_v2, %v2193_v62  ;;  %2528 = vadd.xlane.f32.xlu1 %v2527_v20 }
 0x398   :  { %v2268_v32 = vsub.f32 %v6372_v14, %v2154_v17  ;;  %2516 = vadd.xlane.f32.xlu0 %v2515_v10  ;;  %5173 = vpow2.f32 %v2372_v21  ;;  %v2512_v17 = vsel %vm59_vm0, %v6746_v41, 0.0 }
 0x399   :  { %v6748_v49 = vpop.eup %5163  ;;  %v2396_v56 = vmul.f32 1.442695, %v2281_v40 }
 0x39a   :  { %v2370_v36 = vmul.f32 1.442695, %v2268_v32  ;;  %v2190_v39 = vpop.xlane.xlu1 %2189  ;;  %v2524_v59 = vsel %vm59_vm0, %v6748_v49, 0.0  ;;  %v6756_v62 = vpop.eup %5165 }
 0x39b   :  { %v2163_v8 = vpop.xlane.xlu0 %2162  ;;  %v2280_v2 = vsub.f32 %v6378_v29, %v2190_v39  ;;  %2525 = vadd.xlane.f32.xlu1 %v2524_v59  ;;  %7336 = vst [vmem:[#allocation8_spill] sm:$0xff] %v6756_v62  ;;  %5175 = vpow2.f32 %v2396_v56  ;;  %v2533_v39 = vsel %vm59_vm0, %v6756_v62, 0.0 }
 0x39c   :  { %v2271_v14 = vsub.f32 %v6390_v42, %v2163_v8  ;;  %2513 = vadd.xlane.f32.xlu0 %v2512_v17  ;;  %5177 = vpow2.f32 %v2370_v36 }
 0x39d   :  { %v6758_v20 = vpop.eup %5167  ;;  %v2394_v21 = vmul.f32 1.442695, %v2280_v2 }
 0x39e   :  { %v2376_v32 = vmul.f32 1.442695, %v2271_v14  ;;  %v2199_v10 = vpop.xlane.xlu1 %2198  ;;  %v2569_v42 = vsel %vm59_vm0, %v6758_v20, 0.0  ;;  %v6766_v56 = vpop.eup %5169 }
 0x39f   :  { %v2160_v40 = vpop.xlane.xlu0 %2159  ;;  %v2283_v8 = vsub.f32 %v6393_v3, %v2199_v10  ;;  %2570 = vadd.xlane.f32.xlu1 %v2569_v42  ;;  %5179 = vpow2.f32 %v2394_v21  ;;  %v2530_v10 = vsel %vm59_vm0, %v6766_v56, 0.0 }
 0x3a0   :  { %v2270_v29 = vsub.f32 %v6396_v31, %v2160_v40  ;;  %2534 = vadd.xlane.f32.xlu0 %v2533_v39  ;;  %5181 = vpow2.f32 %v2376_v32 }
 0x3a1   :  { %v6768_v59 = vpop.eup %5171  ;;  %v2400_v36 = vmul.f32 1.442695, %v2283_v8 }
 0x3a2   :  { %v2374_v14 = vmul.f32 1.442695, %v2270_v29  ;;  %v2196_v17 = vpop.xlane.xlu1 %2195  ;;  %v2566_v31 = vsel %vm59_vm0, %v6768_v59, 0.0  ;;  %v6776_v21 = vpop.eup %5173 }
 0x3a3   :  { %v2169_v2 = vpop.xlane.xlu0 %2168  ;;  %v2282_v40 = vsub.f32 %v6409_v46, %v2196_v17  ;;  %2567 = vadd.xlane.f32.xlu1 %v2566_v31  ;;  %5183 = vpow2.f32 %v2400_v36  ;;  %v2539_v46 = vsel %vm59_vm0, %v6776_v21, 0.0 }
 0x3a4   :  { %v2273_v3 = vsub.f32 %v6414_v24, %v2169_v2  ;;  %2531 = vadd.xlane.f32.xlu0 %v2530_v10  ;;  %5185 = vpow2.f32 %v2374_v14 }
 0x3a5   :  { %v2398_v42 = vmul.f32 1.442695, %v2282_v40  ;;  %v6778_v32 = vpop.eup %5175 }
 0x3a6   :  { %v2380_v29 = vmul.f32 1.442695, %v2273_v3  ;;  %v2205_v39 = vpop.xlane.xlu1 %2204  ;;  %v2575_v2 = vsel %vm59_vm0, %v6778_v32, 0.0  ;;  %v6786_v17 = vpop.eup %5177 }
 0x3a7   :  { %v2166_v8 = vpop.xlane.xlu0 %2165  ;;  %v2285_v24 = vsub.f32 %v6421_v63, %v2205_v39  ;;  %5187 = vpow2.f32 %v2398_v42  ;;  %2576 = vadd.xlane.f32.xlu1 %v2575_v2  ;;  %v2536_v10 = vsel %vm59_vm0, %v6786_v17, 0.0 }
 0x3a8   :  { %v2272_v62 = vsub.f32 %v6424_v6, %v2166_v8  ;;  %2540 = vadd.xlane.f32.xlu0 %v2539_v46  ;;  %5189 = vpow2.f32 %v2380_v29 }
 0x3a9   :  { %v2404_v36 = vmul.f32 1.442695, %v2285_v24  ;;  %v6788_v14 = vpop.eup %5179 }
 0x3aa   :  { %v2378_v31 = vmul.f32 1.442695, %v2272_v62  ;;  %v2202_v6 = vpop.xlane.xlu1 %2201  ;;  %v2572_v8 = vsel %vm59_vm0, %v6788_v14, 0.0  ;;  %v6796_v42 = vpop.eup %5181 }
 0x3ab   :  { %v2175_v3 = vpop.xlane.xlu0 %2174  ;;  %v2284_v40 = vsub.f32 %v6431_v7, %v2202_v6  ;;  %5191 = vpow2.f32 %v2404_v36  ;;  %2573 = vadd.xlane.f32.xlu1 %v2572_v8  ;;  %v2545_v2 = vsel %vm59_vm0, %v6796_v42, 0.0 }
 0x3ac   :  { %v2275_v63 = vsub.f32 %v6438_v26, %v2175_v3  ;;  %2537 = vadd.xlane.f32.xlu0 %v2536_v10  ;;  %5193 = vpow2.f32 %v2378_v31 }
 0x3ad   :  { %v2402_v39 = vmul.f32 1.442695, %v2284_v40  ;;  %v6798_v29 = vpop.eup %5183 }
 0x3ae   :  { %v2384_v62 = vmul.f32 1.442695, %v2275_v63  ;;  %v2211_v26 = vpop.xlane.xlu1 %2210  ;;  %v2581_v3 = vsel %vm59_vm0, %v6798_v29, 0.0  ;;  %v6806_v36 = vpop.eup %5185 }
 0x3af   :  { %v2172_v24 = vpop.xlane.xlu0 %2171  ;;  %v2287_v46 = vsub.f32 %v6445_v37, %v2211_v26  ;;  %5195 = vpow2.f32 %v2402_v39  ;;  %2582 = vadd.xlane.f32.xlu1 %v2581_v3  ;;  %v2542_v8 = vsel %vm59_vm0, %v6806_v36, 0.0 }
 0x3b0   :  { %v2274_v7 = vsub.f32 %v6448_v33, %v2172_v24  ;;  %2546 = vadd.xlane.f32.xlu0 %v2545_v2  ;;  %5197 = vpow2.f32 %v2384_v62 }
 0x3b1   :  { %v2408_v6 = vmul.f32 1.442695, %v2287_v46  ;;  %v6808_v31 = vpop.eup %5187 }
 0x3b2   :  { %v2382_v63 = vmul.f32 1.442695, %v2274_v7  ;;  %v2208_v33 = vpop.xlane.xlu1 %2207  ;;  %v2578_v24 = vsel %vm59_vm0, %v6808_v31, 0.0  ;;  %v6816_v39 = vpop.eup %5189 }
 0x3b3   :  { %v2181_v40 = vpop.xlane.xlu0 %2180  ;;  %v2286_v10 = vsub.f32 %v6455_v45, %v2208_v33  ;;  %7337 = vst [vmem:[#allocation9_spill] sm:$0xff] %v6816_v39  ;;  %5199 = vpow2.f32 %v2408_v6  ;;  %2579 = vadd.xlane.f32.xlu1 %v2578_v24  ;;  %v2551_v2 = vsel %vm59_vm0, %v6816_v39, 0.0  ;;  %v7342_v24 = vld [vmem:[#allocation15_spill] sm:$0xff] }
 0x3b4   :  { %v2277_v37 = vsub.f32 %v6462_v47, %v2181_v40  ;;  %2543 = vadd.xlane.f32.xlu0 %v2542_v8  ;;  %5201 = vpow2.f32 %v2382_v63 }
 0x3b5   :  { %v2406_v26 = vmul.f32 1.442695, %v2286_v10  ;;  %v6818_v62 = vpop.eup %5191 }
 0x3b6   :  { %7338 = vst [vmem:[#allocation10_spill] sm:$0xff] %v6818_v62  ;;  %v2388_v7 = vmul.f32 1.442695, %v2277_v37  ;;  %v2217_v47 = vpop.xlane.xlu1 %2216  ;;  %v2587_v3 = vsel %vm59_vm0, %v6818_v62, 0.0  ;;  %v6825_v40 = vpop.eup %5193 }
 0x3b7   :  { %v2178_v46 = vpop.xlane.xlu0 %2177  ;;  %7339 = vst [vmem:[#allocation11_spill] sm:$0xff] %v6825_v40  ;;  %5203 = vpow2.f32 %v2406_v26  ;;  %2588 = vadd.xlane.f32.xlu1 %v2587_v3  ;;  %v2289_v6 = vsub.f32 %v6469_v15, %v2217_v47  ;;  %v2548_v62 = vsel %vm59_vm0, %v6825_v40, 0.0 }
 0x3b8   :  { %v2276_v45 = vsub.f32 %v6472_v13, %v2178_v46  ;;  %2552 = vadd.xlane.f32.xlu0 %v2551_v2  ;;  %5205 = vpow2.f32 %v2388_v7  ;;  %v7341_v13 = vld [vmem:[#allocation17_spill] sm:$0xff] }
 0x3b9   :  { %v6828_v33 = vpop.eup %5195  ;;  %v2412_v15 = vmul.f32 1.442695, %v2289_v6 }
 0x3ba   :  { %7340 = vst [vmem:[#allocation12_spill] sm:$0xff] %v6828_v33  ;;  %v2386_v63 = vmul.f32 1.442695, %v2276_v45  ;;  %v2214_v10 = vpop.xlane.xlu1 %2213  ;;  %v2584_v26 = vsel %vm59_vm0, %v6828_v33, 0.0  ;;  %v6836_v2 = vpop.eup %5197 }
 0x3bb   :  { %v2220_v37 = vpop.xlane.xlu0 %2219  ;;  %v2288_v46 = vsub.f32 %v7342_v24, %v2214_v10  ;;  %2585 = vadd.xlane.f32.xlu1 %v2584_v26  ;;  %v7344_v24 = vld [vmem:[#allocation16_spill] sm:$0xff]  ;;  %v2557_v40 = vsel %vm59_vm0, %v6836_v2, 0.0  ;;  %v7345_v26 = vld [vmem:[#allocation18_spill] sm:$0xff] }
 0x3bc   :  { %v2290_v8 = vsub.f32 %v7341_v13, %v2220_v37  ;;  %2549 = vadd.xlane.f32.xlu0 %v2548_v62  ;;  %5207 = vpow2.f32 %v2386_v63  ;;  %v7343_v13 = vld [vmem:[#allocation19_spill] sm:$0xff] }
 0x3bd   :  { %v2410_v47 = vmul.f32 1.442695, %v2288_v46  ;;  %v6838_v7 = vpop.eup %5199 }
 0x3be   :  { %v2414_v45 = vmul.f32 1.442695, %v2290_v8  ;;  %v2223_v37 = vpop.xlane.xlu1 %2222  ;;  %v2593_v33 = vsel %vm59_vm0, %v6838_v7, 0.0  ;;  %v6846_v62 = vpop.eup %5201 }
 0x3bf   :  { %v2226_v3 = vpop.xlane.xlu0 %2225  ;;  %v2291_v39 = vsub.f32 %v7344_v24, %v2223_v37  ;;  %5209 = vpow2.f32 %v2410_v47  ;;  %2594 = vadd.xlane.f32.xlu1 %v2593_v33  ;;  %v2554_v37 = vsel %vm59_vm0, %v6846_v62, 0.0 }
 0x3c0   :  { %v2292_v10 = vsub.f32 %v7343_v13, %v2226_v3  ;;  %2558 = vadd.xlane.f32.xlu0 %v2557_v40  ;;  %5211 = vpow2.f32 %v2412_v15 }
 0x3c1   :  { %v6848_v63 = vpop.eup %5203  ;;  %5213 = vpow2.f32 %v2414_v45  ;;  %v2416_v8 = vmul.f32 1.442695, %v2291_v39 }
 0x3c2   :  { %v2418_v6 = vmul.f32 1.442695, %v2292_v10  ;;  %v2229_v46 = vpop.xlane.xlu1 %2228  ;;  %v2590_v13 = vsel %vm59_vm0, %v6848_v63, 0.0  ;;  %v6855_v24 = vpop.eup %5205 }
 0x3c3   :  { %v2293_v3 = vsub.f32 %v7345_v26, %v2229_v46  ;;  %7346 = vst [vmem:[#allocation13_spill] sm:$0xff] %v6855_v24  ;;  %2591 = vadd.xlane.f32.xlu1 %v2590_v13  ;;  %v2563_v33 = vsel %vm59_vm0, %v6855_v24, 0.0  ;;  %v7353_v24 = vld [vmem:[#allocation3_spill] sm:$0xff] }
 0x3c4   :  { %2555 = vadd.xlane.f32.xlu0 %v2554_v37  ;;  %5215 = vpow2.f32 %v2418_v6 }
 0x3c5   :  { %5217 = vpow2.f32 %v2416_v8  ;;  %v2420_v40 = vmul.f32 1.442695, %v2293_v3 }
 0x3c6   :  { %v6859_v39 = vpop.eup %5207 }
 0x3c7   :  { %5219 = vpow2.f32 %v2420_v40  ;;  %v2560_v45 = vsel %vm59_vm0, %v6859_v39, 0.0 }
 0x3c8   :  { %2564 = vadd.xlane.f32.xlu0 %v2563_v33 }
 0x3c9   :  { %v6861_v15 = vpop.eup %5209 }
 0x3ca   :  { %v6863_v47 = vpop.eup %5211  ;;  %v2596_v10 = vsel %vm59_vm0, %v6861_v15, 0.0 }
 0x3cb   :  { %7347 = vst [vmem:[#allocation14_spill] sm:$0xff] %v6863_v47  ;;  %v6869_v6 = vpop.eup %5213  ;;  %2597 = vadd.xlane.f32.xlu1 %v2596_v10  ;;  %v2599_v26 = vsel %vm59_vm0, %v6863_v47, 0.0 }
 0x3cc   :  { %7348 = vst [vmem:[#allocation17_spill] sm:$0xff] %v6869_v6  ;;  %2561 = vadd.xlane.f32.xlu0 %v2560_v45  ;;  %v2602_v46 = vsel %vm59_vm0, %v6869_v6, 0.0 }
 0x3ce   :  { %v6871_v8 = vpop.eup %5215 }
 0x3cf   :  { %7349 = vst [vmem:[#allocation15_spill] sm:$0xff] %v6871_v8  ;;  %v6877_v3 = vpop.eup %5217  ;;  %2600 = vadd.xlane.f32.xlu1 %v2599_v26  ;;  %v2608_v37 = vsel %vm59_vm0, %v6871_v8, 0.0 }
 0x3d0   :  { %7350 = vst [vmem:[#allocation19_spill] sm:$0xff] %v6877_v3  ;;  %2603 = vadd.xlane.f32.xlu0 %v2602_v46  ;;  %v2605_v13 = vsel %vm59_vm0, %v6877_v3, 0.0 }
 0x3d1   :  { %v6883_v40 = vpop.eup %5219 }
 0x3d2   :  { %7351 = vst [vmem:[#allocation16_spill] sm:$0xff] %v6883_v40  ;;  %v2611_v33 = vsel %vm59_vm0, %v6883_v40, 0.0 }
 0x3d3   :  { %2606 = vadd.xlane.f32.xlu1 %v2605_v13 }
 0x3d4   :  { %2609 = vadd.xlane.f32.xlu0 %v2608_v37 }
 0x3d7   :  { %2612 = vadd.xlane.f32.xlu1 %v2611_v33 }
 0x3e0   :  { %v2427_v45 = vpop.xlane.xlu1 %2426 }
 0x3e1   :  { %5221 = vrcp.f32 %v2427_v45 }
 0x3e4   :  { %v2433_v46 = vpop.xlane.xlu1 %2432 }
 0x3e5   :  { %v2424_v10 = vpop.xlane.xlu0 %2423 }
 0x3e6   :  { %5223 = vrcp.f32 %v2424_v10 }
 0x3e7   :  { %5225 = vrcp.f32 %v2433_v46 }
 0x3e9   :  { %v2430_v26 = vpop.xlane.xlu0 %2429 }
 0x3ea   :  { %5227 = vrcp.f32 %v2430_v26  ;;  %v7352_v26 = vld [vmem:[#allocation2_spill] sm:$0xff] }
 0x3eb   :  { %v5222_v6 = vpop.eup %5221 }
 0x3ec   :  { %v2475_v8 = vpop.xlane.xlu1 %2474  ;;  %v2679_v33 = vmul.f32 %v5222_v6, %v6574_v22 }
 0x3ed   :  { %v2439_v47 = vpop.xlane.xlu0 %2438  ;;  %5229 = vrcp.f32 %v2475_v8 }
 0x3ee   :  { %5231 = vrcp.f32 %v2439_v47 }
 0x3f0   :  { %v5224_v3 = vpop.eup %5223  ;;  %v2472_v37 = vpop.xlane.xlu1 %2471 }
 0x3f1   :  { %v2436_v13 = vpop.xlane.xlu0 %2435  ;;  %5233 = vrcp.f32 %v2472_v37  ;;  %v2678_v40 = vmul.f32 %v5224_v3, %v6582_v9  ;;  %v5226_v45 = vpop.eup %5225 }
 0x3f2   :  { %5235 = vrcp.f32 %v2436_v13  ;;  %v2681_v37 = vmul.f32 %v5226_v45, %v6580_v61 }
 0x3f3   :  { %4749 = vmatprep.mubr.msk.f32.mxu1 %vm59_vm0, %v2678_v40 }
 0x3f4   :  { %v5228_v10 = vpop.eup %5227  ;;  %4750 = vmatmul.mubr.msk.f32.vlgmr.msra.gmra.mrb[64].mxu1 %vm59_vm0, %v2679_v33  ;;  %v2481_v46 = vpop.xlane.xlu1 %2480 }
 0x3f5   :  { %5008 = vmatpush3.bf16.msra.mxu1 %v7352_v26  ;;  %v2445_v8 = vpop.xlane.xlu0 %2444  ;;  %v2680_v47 = vmul.f32 %v5228_v10, %v6590_v18  ;;  %5237 = vrcp.f32 %v2481_v46 }
 0x3f6   :  { %5010 = vmatprep.subr.bf16.mxu1 %v7353_v24  ;;  %5239 = vrcp.f32 %v2445_v8  ;;  %v7355_v8 = vld [vmem:[#allocation5_spill] sm:$0xff] }
 0x3f7   :  { %4752 = vmatprep.mubr.msk.f32.mxu1 %vm59_vm0, %v2680_v47  ;;  %v5230_v9 = vpop.eup %5229 }
 0x3f8   :  { %4753 = vmatmul.mubr.msk.f32.gmra.mrb[66].mxu1 %vm59_vm0, %v2681_v37  ;;  %v2478_v22 = vpop.xlane.xlu1 %2477  ;;  %v5232_v3 = vpop.eup %5231  ;;  %v2695_v61 = vmul.f32 %v5230_v9, %v6598_v50 }
 0x3f9   :  { %5012 = vmatpush3.bf16.msra.mxu1 %v7353_v24  ;;  %v2442_v6 = vpop.xlane.xlu0 %2441  ;;  %5241 = vrcp.f32 %v2478_v22  ;;  %v2683_v46 = vmul.f32 %v5232_v3, %v6596_v53  ;;  %v7354_v24 = vld [vmem:[#allocation4_spill] sm:$0xff] }
 0x3fa   :  { %5243 = vrcp.f32 %v2442_v6 }
 0x3fb   :  { %v5234_v40 = vpop.eup %5233 }
 0x3fc   :  { %v5236_v18 = vpop.eup %5235  ;;  %v2487_v13 = vpop.xlane.xlu1 %2486  ;;  %v2694_v33 = vmul.f32 %v5234_v40, %v6608_v27 }
 0x3fd   :  { %v2451_v45 = vpop.xlane.xlu0 %2450  ;;  %v2682_v10 = vmul.f32 %v5236_v18, %v6606_v4  ;;  %5245 = vrcp.f32 %v2487_v13 }
 0x3fe   :  { %4781 = vmatprep.mubr.msk.f32.mxu0 %vm59_vm0, %v2694_v33  ;;  %5247 = vrcp.f32 %v2451_v45 }
 0x3ff   :  { %4755 = vmatprep.mubr.msk.f32.mxu1 %vm59_vm0, %v2682_v10  ;;  %4782 = vmatmul.mubr.msk.f32.vlgmr.msra.gmra.mrb[80].mxu0 %vm59_vm0, %v2695_v61  ;;  %v5238_v26 = vpop.eup %5237 }
 0x400   :  { %4756 = vmatmul.mubr.msk.f32.gmra.mrb[68].mxu1 %vm59_vm0, %v2683_v46  ;;  %5016 = vmatpush3.bf16.msra.mxu0 %v7354_v24  ;;  %v2484_v27 = vpop.xlane.xlu1 %2483  ;;  %v5240_v4 = vpop.eup %5239  ;;  %v2697_v3 = vmul.f32 %v5238_v26, %v6618_v54  ;;  %v7356_v24 = vld [vmem:[#allocation6_spill] sm:$0xff] }
 0x401   :  { %v2448_v50 = vpop.xlane.xlu0 %2447  ;;  %5018 = vmatprep.subr.bf16.mxu0 %v7355_v8  ;;  %5249 = vrcp.f32 %v2484_v27  ;;  %v2685_v40 = vmul.f32 %v5240_v4, %v6616_v48 }
 0x402   :  { %5251 = vrcp.f32 %v2448_v50 }
 0x403   :  { %v5242_v47 = vpop.eup %5241 }
 0x404   :  { %v5244_v53 = vpop.eup %5243  ;;  %5020 = vmatpush3.bf16.msra.mxu0 %v7355_v8  ;;  %v2493_v37 = vpop.xlane.xlu1 %2492  ;;  %v2696_v22 = vmul.f32 %v5242_v47, %v6628_v44 }
 0x405   :  { %v2457_v9 = vpop.xlane.xlu0 %2456  ;;  %v2684_v6 = vmul.f32 %v5244_v53, %v6626_v57  ;;  %5253 = vrcp.f32 %v2493_v37 }
 0x406   :  { %4784 = vmatprep.mubr.msk.f32.mxu0 %vm59_vm0, %v2696_v22  ;;  %5255 = vrcp.f32 %v2457_v9  ;;  %v7357_v9 = vld [vmem:[#allocation7_spill] sm:$0xff] }
 0x407   :  { %4758 = vmatprep.mubr.msk.f32.mxu1 %vm59_vm0, %v2684_v6  ;;  %4785 = vmatmul.mubr.msk.f32.gmra.mrb[82].mxu0 %vm59_vm0, %v2697_v3  ;;  %v5246_v13 = vpop.eup %5245 }
 0x408   :  { %4759 = vmatmul.mubr.msk.f32.gmra.mrb[70].mxu1 %vm59_vm0, %v2685_v40  ;;  %v2490_v18 = vpop.xlane.xlu1 %2489  ;;  %v5248_v33 = vpop.eup %5247  ;;  %v2699_v46 = vmul.f32 %v5246_v13, %v6638_v58 }
 0x409   :  { %v2454_v44 = vpop.xlane.xlu0 %2453  ;;  %5257 = vrcp.f32 %v2490_v18  ;;  %v2687_v27 = vmul.f32 %v5248_v33, %v7356_v24 }
 0x40a   :  { %5259 = vrcp.f32 %v2454_v44 }
 0x40b   :  { %v5250_v57 = vpop.eup %5249 }
 0x40c   :  { %v5252_v54 = vpop.eup %5251  ;;  %v2499_v61 = vpop.xlane.xlu1 %2498  ;;  %v2698_v45 = vmul.f32 %v5250_v57, %v6648_v35 }
 0x40d   :  { %v2463_v48 = vpop.xlane.xlu0 %2462  ;;  %v2686_v10 = vmul.f32 %v5252_v54, %v6646_v28  ;;  %5261 = vrcp.f32 %v2499_v61 }
 0x40e   :  { %4787 = vmatprep.mubr.msk.f32.mxu0 %vm59_vm0, %v2698_v45  ;;  %5263 = vrcp.f32 %v2463_v48 }
 0x40f   :  { %4761 = vmatprep.mubr.msk.f32.mxu1 %vm59_vm0, %v2686_v10  ;;  %4788 = vmatmul.mubr.msk.f32.gmra.mrb[84].mxu0 %vm59_vm0, %v2699_v46  ;;  %v5254_v50 = vpop.eup %5253 }
 0x410   :  { %4762 = vmatmul.mubr.msk.f32.gmra.mrb[72].mxu1 %vm59_vm0, %v2687_v27  ;;  %v2496_v26 = vpop.xlane.xlu1 %2495  ;;  %v5256_v8 = vpop.eup %5255  ;;  %v2701_v22 = vmul.f32 %v5254_v50, %v6658_v1 }
 0x411   :  { %v2460_v35 = vpop.xlane.xlu0 %2459  ;;  %5265 = vrcp.f32 %v2496_v26  ;;  %v2689_v6 = vmul.f32 %v5256_v8, %v7357_v9 }
 0x412   :  { %5267 = vrcp.f32 %v2460_v35 }
 0x413   :  { %v5258_v28 = vpop.eup %5257 }
 0x414   :  { %v5260_v58 = vpop.eup %5259  ;;  %v2505_v4 = vpop.xlane.xlu1 %2504  ;;  %v2700_v47 = vmul.f32 %v5258_v28, %v6668_v34 }
 0x415   :  { %v2469_v53 = vpop.xlane.xlu0 %2468  ;;  %v2688_v37 = vmul.f32 %v5260_v58, %v6666_v0  ;;  %5269 = vrcp.f32 %v2505_v4 }
 0x416   :  { %4790 = vmatprep.mubr.msk.f32.mxu0 %vm59_vm0, %v2700_v47  ;;  %5271 = vrcp.f32 %v2469_v53 }
 0x417   :  { %4764 = vmatprep.mubr.msk.f32.mxu1 %vm59_vm0, %v2688_v37  ;;  %4791 = vmatmul.mubr.msk.f32.gmra.mrb[86].mxu0 %vm59_vm0, %v2701_v22  ;;  %v5262_v40 = vpop.eup %5261 }
 0x418   :  { %4765 = vmatmul.mubr.msk.f32.gmra.mrb[74].mxu1 %vm59_vm0, %v2689_v6  ;;  %v2502_v3 = vpop.xlane.xlu1 %2501  ;;  %v5264_v18 = vpop.eup %5263  ;;  %v2703_v54 = vmul.f32 %v5262_v40, %v6678_v25 }
 0x419   :  { %v2466_v34 = vpop.xlane.xlu0 %2465  ;;  %5273 = vrcp.f32 %v2502_v3  ;;  %v2691_v61 = vmul.f32 %v5264_v18, %v6676_v30 }
 0x41a   :  { %5275 = vrcp.f32 %v2466_v34 }
 0x41b   :  { %v5266_v0 = vpop.eup %5265 }
 0x41c   :  { %v5268_v1 = vpop.eup %5267  ;;  %v2523_v13 = vpop.xlane.xlu1 %2522  ;;  %v2702_v44 = vmul.f32 %v5266_v0, %v6688_v52 }
 0x41d   :  { %v2511_v33 = vpop.xlane.xlu0 %2510  ;;  %v2690_v57 = vmul.f32 %v5268_v1, %v6686_v38  ;;  %5277 = vrcp.f32 %v2523_v13 }
 0x41e   :  { %4793 = vmatprep.mubr.msk.f32.mxu0 %vm59_vm0, %v2702_v44  ;;  %5279 = vrcp.f32 %v2511_v33 }
 0x41f   :  { %4767 = vmatprep.mubr.msk.f32.mxu1 %vm59_vm0, %v2690_v57  ;;  %4794 = vmatmul.mubr.msk.f32.gmra.mrb[88].mxu0 %vm59_vm0, %v2703_v54  ;;  %v5270_v48 = vpop.eup %5269 }
 0x420   :  { %4768 = vmatmul.mubr.msk.f32.gmra.mrb[76].mxu1 %vm59_vm0, %v2691_v61  ;;  %v2520_v45 = vpop.xlane.xlu1 %2519  ;;  %v5272_v10 = vpop.eup %5271  ;;  %v2705_v26 = vmul.f32 %v5270_v48, %v6698_v12 }
 0x421   :  { %v2508_v52 = vpop.xlane.xlu0 %2507  ;;  %5281 = vrcp.f32 %v2520_v45  ;;  %v2693_v50 = vmul.f32 %v5272_v10, %v6696_v23  ;;  %v7358_v45 = vld [vmem:[#allocation8_spill] sm:$0xff] }
 0x422   :  { %5283 = vrcp.f32 %v2508_v52 }
 0x423   :  { %v5274_v38 = vpop.eup %5273 }
 0x424   :  { %v5276_v25 = vpop.eup %5275  ;;  %v2529_v46 = vpop.xlane.xlu1 %2528  ;;  %v2704_v24 = vmul.f32 %v5274_v38, %v6708_v19 }
 0x425   :  { %v2517_v30 = vpop.xlane.xlu0 %2516  ;;  %v2692_v27 = vmul.f32 %v5276_v25, %v6706_v51  ;;  %5285 = vrcp.f32 %v2529_v46 }
 0x426   :  { %4796 = vmatprep.mubr.msk.f32.mxu0 %vm59_vm0, %v2704_v24  ;;  %5287 = vrcp.f32 %v2517_v30 }
 0x427   :  { %4770 = vmatprep.mubr.msk.f32.mxu1 %vm59_vm0, %v2692_v27  ;;  %4797 = vmatmul.mubr.msk.f32.gmra.mrb[90].mxu0 %vm59_vm0, %v2705_v26  ;;  %v5278_v8 = vpop.eup %5277 }
 0x428   :  { %4771 = vmatmul.mubr.msk.f32.gmra.mrb[78].mxu1 %vm59_vm0, %v2693_v50  ;;  %v2526_v35 = vpop.xlane.xlu1 %2525  ;;  %v5280_v28 = vpop.eup %5279  ;;  %v2711_v23 = vmul.f32 %v5278_v8, %v6718_v5 }
 0x429   :  { %v2514_v19 = vpop.xlane.xlu0 %2513  ;;  %5289 = vrcp.f32 %v2526_v35  ;;  %v2707_v37 = vmul.f32 %v5280_v28, %v6716_v16 }
 0x42a   :  { %5291 = vrcp.f32 %v2514_v19 }
 0x42b   :  { %v5282_v51 = vpop.eup %5281 }
 0x42c   :  { %v5284_v12 = vpop.eup %5283  ;;  %v2571_v58 = vpop.xlane.xlu1 %2570  ;;  %v2710_v4 = vmul.f32 %v5282_v51, %v6728_v11 }
 0x42d   :  { %v2535_v47 = vpop.xlane.xlu0 %2534  ;;  %v2706_v53 = vmul.f32 %v5284_v12, %v6726_v55  ;;  %5293 = vrcp.f32 %v2571_v58 }
 0x42e   :  { %4813 = vmatprep.mubr.msk.f32.mxu1 %vm59_vm0, %v2710_v4  ;;  %5295 = vrcp.f32 %v2535_v47 }
 0x42f   :  { %4799 = vmatprep.mubr.msk.f32.mxu0 %vm59_vm0, %v2706_v53  ;;  %4814 = vmatmul.mubr.msk.f32.vlgmr.msra.gmra.mrb[80].mxu1 %vm59_vm0, %v2711_v23  ;;  %v5286_v9 = vpop.eup %5285 }
 0x430   :  { %4800 = vmatmul.mubr.msk.f32.gmra.mrb[92].mxu0 %vm59_vm0, %v2707_v37  ;;  %v2568_v22 = vpop.xlane.xlu1 %2567  ;;  %v5288_v5 = vpop.eup %5287  ;;  %v2713_v18 = vmul.f32 %v5286_v9, %v6738_v43  ;;  %v7359_v37 = vld [vmem:[#allocation11_spill] sm:$0xff] }
 0x431   :  { %v2532_v11 = vpop.xlane.xlu0 %2531  ;;  %5297 = vrcp.f32 %v2568_v22  ;;  %v2709_v0 = vmul.f32 %v5288_v5, %v6736_v60 }
 0x432   :  { %5299 = vrcp.f32 %v2532_v11  ;;  %v7361_v11 = vld [vmem:[#allocation9_spill] sm:$0xff] }
 0x433   :  { %v5290_v6 = vpop.eup %5289 }
 0x434   :  { %v5292_v55 = vpop.eup %5291  ;;  %v2712_v3 = vmul.f32 %v5290_v6, %v6748_v49  ;;  %v2577_v16 = vpop.xlane.xlu1 %2576  ;;  %v7362_v6 = vld [vmem:[#allocation10_spill] sm:$0xff] }
 0x435   :  { %v2541_v40 = vpop.xlane.xlu0 %2540  ;;  %v2708_v34 = vmul.f32 %v5292_v55, %v6746_v41 }
 0x436   :  { %4816 = vmatprep.mubr.msk.f32.mxu1 %vm59_vm0, %v2712_v3  ;;  %5301 = vrcp.f32 %v2541_v40 }
 0x437   :  { %4802 = vmatprep.mubr.msk.f32.mxu0 %vm59_vm0, %v2708_v34  ;;  %4817 = vmatmul.mubr.msk.f32.gmra.mrb[82].mxu1 %vm59_vm0, %v2713_v18  ;;  %v5294_v1 = vpop.eup %5293  ;;  %5303 = vrcp.f32 %v2577_v16 }
 0x438   :  { %4803 = vmatmul.mubr.msk.f32.gmra.mrb[94].mxu0 %vm59_vm0, %v2709_v0  ;;  %v2574_v13 = vpop.xlane.xlu1 %2573  ;;  %v5296_v44 = vpop.eup %5295  ;;  %v2727_v60 = vmul.f32 %v5294_v1, %v6758_v20 }
 0x439   :  { %v2538_v49 = vpop.xlane.xlu0 %2537  ;;  %v2715_v48 = vmul.f32 %v5296_v44, %v7358_v45 }
 0x43a   :  { %5305 = vrcp.f32 %v2538_v49 }
 0x43b   :  { %v5298_v41 = vpop.eup %5297  ;;  %5307 = vrcp.f32 %v2574_v13 }
 0x43c   :  { %v5300_v43 = vpop.eup %5299  ;;  %v2726_v33 = vmul.f32 %v5298_v41, %v6768_v59  ;;  %v2583_v54 = vpop.xlane.xlu1 %2582 }
 0x43d   :  { %v2547_v57 = vpop.xlane.xlu0 %2546  ;;  %v2714_v61 = vmul.f32 %v5300_v43, %v6766_v56 }
 0x43e   :  { %4845 = vmatprep.mubr.msk.f32.mxu0 %vm59_vm0, %v2726_v33  ;;  %5309 = vrcp.f32 %v2547_v57 }
 0x43f   :  { %4819 = vmatprep.mubr.msk.f32.mxu1 %vm59_vm0, %v2714_v61  ;;  %4846 = vmatmul.mubr.msk.f32.vlgmr.msra.gmra.mrb[96].mxu0 %vm59_vm0, %v2727_v60  ;;  %5311 = vrcp.f32 %v2583_v54 }
 0x440   :  { %4820 = vmatmul.mubr.msk.f32.gmra.mrb[84].mxu1 %vm59_vm0, %v2715_v48  ;;  %v2580_v59 = vpop.xlane.xlu1 %2579  ;;  %v5302_v10 = vpop.eup %5301 }
 0x441   :  { %v2544_v52 = vpop.xlane.xlu0 %2543  ;;  %v5304_v20 = vpop.eup %5303  ;;  %v2717_v27 = vmul.f32 %v5302_v10, %v6776_v21 }
 0x442   :  { %5313 = vrcp.f32 %v2544_v52  ;;  %v2729_v26 = vmul.f32 %v5304_v20, %v6778_v32  ;;  %v7365_v20 = vld [vmem:[#allocation14_spill] sm:$0xff] }
 0x443   :  { %5315 = vrcp.f32 %v2580_v59  ;;  %v7364_v59 = vld [vmem:[#allocation17_spill] sm:$0xff] }
 0x444   :  { %v5306_v38 = vpop.eup %5305  ;;  %v2589_v46 = vpop.xlane.xlu1 %2588 }
 0x445   :  { %v5308_v56 = vpop.eup %5307  ;;  %v2553_v25 = vpop.xlane.xlu0 %2552  ;;  %v2716_v24 = vmul.f32 %v5306_v38, %v6786_v17 }
 0x446   :  { %v2728_v30 = vmul.f32 %v5308_v56, %v6788_v14  ;;  %5317 = vrcp.f32 %v2553_v25 }
 0x447   :  { %4822 = vmatprep.mubr.msk.f32.mxu1 %vm59_vm0, %v2716_v24  ;;  %5319 = vrcp.f32 %v2589_v46  ;;  %v7367_v46 = vld [vmem:[#allocation19_spill] sm:$0xff] }
 0x448   :  { %4848 = vmatprep.mubr.msk.f32.mxu0 %vm59_vm0, %v2728_v30  ;;  %4823 = vmatmul.mubr.msk.f32.gmra.mrb[86].mxu1 %vm59_vm0, %v2717_v27  ;;  %v2586_v35 = vpop.xlane.xlu1 %2585  ;;  %v5310_v8 = vpop.eup %5309  ;;  %v7368_v27 = vld [vmem:[#allocation16_spill] sm:$0xff] }
 0x449   :  { %4849 = vmatmul.mubr.msk.f32.gmra.mrb[98].mxu0 %vm59_vm0, %v2729_v26  ;;  %v2550_v50 = vpop.xlane.xlu0 %2549  ;;  %v5312_v17 = vpop.eup %5311  ;;  %v2719_v12 = vmul.f32 %v5310_v8, %v6796_v42  ;;  %v3692_v8 = vld [vmem:[%s7271_s7 + $0x10] sm:$0xff] }
 0x44a   :  { %5321 = vrcp.f32 %v2550_v50  ;;  %v2731_v58 = vmul.f32 %v5312_v17, %v6798_v29  ;;  %v7360_v29 = vld [vmem:[#allocation12_spill] sm:$0xff]  ;;  %v3690_v50 = vld [vmem:[%s7271_s7] sm:$0xff] }
 0x44b   :  { %5323 = vrcp.f32 %v2586_v35  ;;  %v3691_v35 = vld [vmem:[%s7271_s7 + $0x8] sm:$0xff] }
 0x44c   :  { %v5314_v14 = vpop.eup %5313  ;;  %v2595_v28 = vpop.xlane.xlu1 %2594  ;;  %v5021_v17 = vpack.c.bf16 %v3691_v35, %v3690_v50 }
 0x44d   :  { %v5316_v21 = vpop.eup %5315  ;;  %v2559_v19 = vpop.xlane.xlu0 %2558  ;;  %v2718_v32 = vmul.f32 %v5314_v14, %v6806_v36  ;;  %v3693_v14 = vld [vmem:[%s7271_s7 + $0x18] sm:$0xff] }
 0x44e   :  { %v2730_v51 = vmul.f32 %v5316_v21, %v6808_v31  ;;  %5325 = vrcp.f32 %v2559_v19  ;;  %v5025_v21 = vpack.c.bf16 %v3693_v14, %v3692_v8  ;;  %5022 = vmatprep.subr.bf16.mxu1 %v5021_v17 }
 0x44f   :  { %4825 = vmatprep.mubr.msk.f32.mxu1 %vm59_vm0, %v2718_v32  ;;  %5327 = vrcp.f32 %v2595_v28  ;;  %5024 = vmatpush3.bf16.msra.mxu1 %v5021_v17 }
 0x450   :  { %4851 = vmatprep.mubr.msk.f32.mxu0 %vm59_vm0, %v2730_v51  ;;  %4826 = vmatmul.mubr.msk.f32.gmra.mrb[88].mxu1 %vm59_vm0, %v2719_v12  ;;  %v2592_v23 = vpop.xlane.xlu1 %2591  ;;  %v5318_v47 = vpop.eup %5317  ;;  %v7036_v12 = vld [vmem:[%s7269_s5] ss:$0 sm:$0xff] }
 0x451   :  { %4852 = vmatmul.mubr.msk.f32.gmra.mrb[100].mxu0 %vm59_vm0, %v2731_v58  ;;  %v2556_v4 = vpop.xlane.xlu0 %2555  ;;  %v5320_v36 = vpop.eup %5319  ;;  %v2721_v5 = vmul.f32 %v5318_v47, %v7361_v11  ;;  %5026 = vmatprep.subr.bf16.mxu1 %v5025_v21 }
 0x452   :  { %5329 = vrcp.f32 %v2556_v4  ;;  %v2733_v55 = vmul.f32 %v5320_v36, %v7362_v6 }
 0x453   :  { %5331 = vrcp.f32 %v2592_v23  ;;  %5028 = vmatpush3.bf16.msra.mxu1 %v5025_v21 }
 0x454   :  { %v5322_v31 = vpop.eup %5321 }
 0x455   :  { %v5324_v42 = vpop.eup %5323  ;;  %v2565_v53 = vpop.xlane.xlu0 %2564  ;;  %v2720_v22 = vmul.f32 %v5322_v31, %v7359_v37  ;;  %v7043_v31 = vld [vmem:[%s7269_s5 + $0x1] ss:$0 sm:$0xff] }
 0x456   :  { %v2732_v9 = vmul.f32 %v5324_v42, %v7360_v29  ;;  %5333 = vrcp.f32 %v2565_v53 }
 0x457   :  { %4828 = vmatprep.mubr.msk.f32.mxu1 %vm59_vm0, %v2720_v22 }
 0x458   :  { %4854 = vmatprep.mubr.msk.f32.mxu0 %vm59_vm0, %v2732_v9  ;;  %4829 = vmatmul.mubr.msk.f32.gmra.mrb[90].mxu1 %vm59_vm0, %v2721_v5  ;;  %v2598_v40 = vpop.xlane.xlu1 %2597  ;;  %v5326_v16 = vpop.eup %5325 }
 0x459   :  { %4855 = vmatmul.mubr.msk.f32.gmra.mrb[102].mxu0 %vm59_vm0, %v2733_v55  ;;  %v2562_v3 = vpop.xlane.xlu0 %2561  ;;  %v5328_v34 = vpop.eup %5327  ;;  %v2723_v41 = vmul.f32 %v5326_v16, %v6836_v2 }
 0x45a   :  { %5335 = vrcp.f32 %v2562_v3  ;;  %v2735_v43 = vmul.f32 %v5328_v34, %v6838_v7  ;;  %v7363_v7 = vld [vmem:[#allocation13_spill] sm:$0xff] }
 0x45b   :  { %5337 = vrcp.f32 %v2598_v40 }
 0x45c   :  { %v5330_v18 = vpop.eup %5329  ;;  %v2601_v49 = vpop.xlane.xlu1 %2600 }
 0x45d   :  { %v5332_v0 = vpop.eup %5331  ;;  %v2604_v1 = vpop.xlane.xlu0 %2603  ;;  %v2722_v13 = vmul.f32 %v5330_v18, %v6846_v62 }
 0x45e   :  { %5339 = vrcp.f32 %v2604_v1  ;;  %v2734_v44 = vmul.f32 %v5332_v0, %v6848_v63 }
 0x45f   :  { %5341 = vrcp.f32 %v2601_v49  ;;  %4831 = vmatprep.mubr.msk.f32.mxu1 %vm59_vm0, %v2722_v13 }
 0x460   :  { %4857 = vmatprep.mubr.msk.f32.mxu0 %vm59_vm0, %v2734_v44  ;;  %4832 = vmatmul.mubr.msk.f32.gmra.mrb[92].mxu1 %vm59_vm0, %v2723_v41  ;;  %v2607_v60 = vpop.xlane.xlu1 %2606  ;;  %v5334_v62 = vpop.eup %5333 }
 0x461   :  { %4858 = vmatmul.mubr.msk.f32.gmra.mrb[104].mxu0 %vm59_vm0, %v2735_v43  ;;  %v2610_v33 = vpop.xlane.xlu0 %2609  ;;  %v2725_v45 = vmul.f32 %v5334_v62, %v7363_v7 }
 0x462   :  { %5343 = vrcp.f32 %v2610_v33 }
 0x463   :  { %5345 = vrcp.f32 %v2607_v60 }
 0x464   :  { %v5336_v57 = vpop.eup %5335  ;;  %v2613_v54 = vpop.xlane.xlu1 %2612 }
 0x465   :  { %v5338_v63 = vpop.eup %5337  ;;  %v2724_v2 = vmul.f32 %v5336_v57, %v6859_v39  ;;  %5347 = vrcp.f32 %v2613_v54 }
 0x466   :  { %v2736_v61 = vmul.f32 %v5338_v63, %v6861_v15  ;;  %v7366_v15 = vld [vmem:[#allocation15_spill] sm:$0xff] }
 0x467   :  { %4834 = vmatprep.mubr.msk.f32.mxu1 %vm59_vm0, %v2724_v2 }
 0x468   :  { %v5340_v48 = vpop.eup %5339  ;;  %4860 = vmatprep.mubr.msk.f32.mxu0 %vm59_vm0, %v2736_v61  ;;  %4835 = vmatmul.mubr.msk.f32.gmra.mrb[94].mxu1 %vm59_vm0, %v2725_v45  ;;  %v7065_v61 = vld [vmem:[%s7269_s5 + $0x2] ss:$0 sm:$0xff] }
 0x469   :  { %v5342_v52 = vpop.eup %5341  ;;  %v2738_v10 = vmul.f32 %v5340_v48, %v7364_v59 }
 0x46a   :  { %v2737_v38 = vmul.f32 %v5342_v52, %v7365_v20 }
 0x46c   :  { %v5344_v56 = vpop.eup %5343  ;;  %4861 = vmatmul.mubr.msk.f32.gmra.mrb[106].mxu0 %vm59_vm0, %v2737_v38 }
 0x46d   :  { %v5346_v39 = vpop.eup %5345  ;;  %4863 = vmatprep.mubr.msk.f32.mxu0 %vm59_vm0, %v2738_v10  ;;  %v2740_v25 = vmul.f32 %v5344_v56, %v7366_v15 }
 0x46e   :  { %v2739_v24 = vmul.f32 %v5346_v39, %v7367_v46 }
 0x46f   :  { %v5348_v30 = vpop.eup %5347 }
 0x470   :  { %4864 = vmatmul.mubr.msk.f32.gmra.mrb[108].mxu0 %vm59_vm0, %v2739_v24  ;;  %v2741_v26 = vmul.f32 %v5348_v30, %v7368_v27 }
 0x471   :  { %4866 = vmatprep.mubr.msk.f32.mxu0 %vm59_vm0, %v2740_v25 }
 0x474   :  { %4867 = vmatmul.mubr.msk.f32.gmra.mrb[110].mxu0 %vm59_vm0, %v2741_v26 }
 0x4c7   :  { %v4751_v19 = vpop.f32.mrb[64].mxu1 }
 0x4c8   :  { %v2856_v28 = vpop.f32.mrb[65].mxu1  ;;  %v3515_v58 = vmul.f32 %v7036_v12, %v4751_v19 }
 0x4c9   :  { %v3514_v23 = vmul.f32 %v7036_v12, %v2856_v28 }
 0x4ca   :  { %v3585_v22 = vsel %vm59_vm0, %v3515_v58, 0.0 }
 0x4cb   :  { %v4754_v32 = vpop.f32.mrb[66].mxu1  ;;  %v3578_v9 = vsel %vm59_vm0, %v3514_v23, 0.0 }
 0x4cc   :  { %v2866_v51 = vpop.f32.mrb[67].mxu1  ;;  %v3517_v55 = vmul.f32 %v7036_v12, %v4754_v32 }
 0x4cd   :  { %v3516_v40 = vmul.f32 %v7036_v12, %v2866_v51 }
 0x4ce   :  { %v3599_v49 = vsel %vm59_vm0, %v3517_v55, 0.0 }
 0x4cf   :  { %v3592_v44 = vsel %vm59_vm0, %v3516_v40, 0.0 }
 0x4d2   :  { %v4783_v4 = vpop.f32.mrb[80].mxu0 }
 0x4d3   :  { %v4757_v47 = vpop.f32.mrb[68].mxu1  ;;  %v3049_v36 = vpop.f32.mrb[81].mxu0  ;;  %v3531_v60 = vmul.f32 %v7036_v12, %v4783_v4 }
 0x4d4   :  { %v3519_v42 = vmul.f32 %v7043_v31, %v4757_v47  ;;  %v2876_v53 = vpop.f32.mrb[69].mxu1  ;;  %v3530_v62 = vmul.f32 %v7036_v12, %v3049_v36 }
 0x4d5   :  { %v3518_v37 = vmul.f32 %v7043_v31, %v2876_v53  ;;  %v3613_v52 = vsel %vm59_vm0, %v3531_v60, 0.0 }
 0x4d6   :  { %v3586_v29 = vsel %vm59_vm0, %v3519_v42, 0.0  ;;  %v3606_v20 = vsel %vm59_vm0, %v3530_v62, 0.0 }
 0x4d7   :  { %v3587_v11 = vadd.f32 %v3586_v29, %v3585_v22  ;;  %v3579_v5 = vsel %vm59_vm0, %v3518_v37, 0.0 }
 0x4d8   :  { %v3580_v6 = vadd.f32 %v3579_v5, %v3578_v9 }
 0x4da   :  { %v4786_v3 = vpop.f32.mrb[82].mxu0 }
 0x4db   :  { %v4760_v16 = vpop.f32.mrb[70].mxu1  ;;  %v3059_v34 = vpop.f32.mrb[83].mxu0  ;;  %v3533_v30 = vmul.f32 %v7036_v12, %v4786_v3 }
 0x4dc   :  { %v3521_v18 = vmul.f32 %v7043_v31, %v4760_v16  ;;  %v2886_v0 = vpop.f32.mrb[71].mxu1  ;;  %v3532_v27 = vmul.f32 %v7036_v12, %v3059_v34 }
 0x4dd   :  { %v3520_v1 = vmul.f32 %v7043_v31, %v2886_v0  ;;  %v3627_v19 = vsel %vm59_vm0, %v3533_v30, 0.0 }
 0x4de   :  { %v3600_v13 = vsel %vm59_vm0, %v3521_v18, 0.0  ;;  %v3620_v51 = vsel %vm59_vm0, %v3532_v27, 0.0 }
 0x4df   :  { %v3601_v41 = vadd.f32 %v3600_v13, %v3599_v49  ;;  %v3593_v43 = vsel %vm59_vm0, %v3520_v1, 0.0 }
 0x4e0   :  { %v3594_v33 = vadd.f32 %v3593_v43, %v3592_v44 }
 0x4e2   :  { %v4789_v57 = vpop.f32.mrb[84].mxu0 }
 0x4e3   :  { %v4763_v63 = vpop.f32.mrb[72].mxu1  ;;  %v3535_v54 = vmul.f32 %v7043_v31, %v4789_v57  ;;  %v3069_v2 = vpop.f32.mrb[85].mxu0 }
 0x4e4   :  { %v3523_v7 = vmul.f32 %v7065_v61, %v4763_v63  ;;  %v2896_v45 = vpop.f32.mrb[73].mxu1  ;;  %v3534_v48 = vmul.f32 %v7043_v31, %v3069_v2 }
 0x4e5   :  { %v3614_v59 = vsel %vm59_vm0, %v3535_v54, 0.0  ;;  %v3522_v10 = vmul.f32 %v7065_v61, %v2896_v45 }
 0x4e6   :  { %v3588_v38 = vsel %vm59_vm0, %v3523_v7, 0.0  ;;  %v3615_v56 = vadd.f32 %v3614_v59, %v3613_v52  ;;  %v3607_v39 = vsel %vm59_vm0, %v3534_v48, 0.0 }
 0x4e7   :  { %v3589_v15 = vadd.f32 %v3588_v38, %v3587_v11  ;;  %v3581_v25 = vsel %vm59_vm0, %v3522_v10, 0.0  ;;  %v3608_v46 = vadd.f32 %v3607_v39, %v3606_v20  ;;  %v7092_v11 = vld [vmem:[%s7269_s5 + $0x3] ss:$0 sm:$0xff] }
 0x4e8   :  { %v3582_v24 = vadd.f32 %v3581_v25, %v3580_v6 }
 0x4ea   :  { %v4792_v26 = vpop.f32.mrb[86].mxu0 }
 0x4eb   :  { %v4766_v50 = vpop.f32.mrb[74].mxu1  ;;  %v3537_v35 = vmul.f32 %v7043_v31, %v4792_v26  ;;  %v3079_v8 = vpop.f32.mrb[87].mxu0 }
 0x4ec   :  { %v3525_v17 = vmul.f32 %v7065_v61, %v4766_v50  ;;  %v2906_v14 = vpop.f32.mrb[75].mxu1  ;;  %v3536_v21 = vmul.f32 %v7043_v31, %v3079_v8 }
 0x4ed   :  { %v3628_v28 = vsel %vm59_vm0, %v3537_v35, 0.0  ;;  %v3524_v32 = vmul.f32 %v7065_v61, %v2906_v14 }
 0x4ee   :  { %v3602_v58 = vsel %vm59_vm0, %v3525_v17, 0.0  ;;  %v3629_v4 = vadd.f32 %v3628_v28, %v3627_v19  ;;  %v3621_v23 = vsel %vm59_vm0, %v3536_v21, 0.0 }
 0x4ef   :  { %v3603_v47 = vadd.f32 %v3602_v58, %v3601_v41  ;;  %v3595_v36 = vsel %vm59_vm0, %v3524_v32, 0.0  ;;  %v3622_v42 = vadd.f32 %v3621_v23, %v3620_v51 }
 0x4f0   :  { %v3596_v53 = vadd.f32 %v3595_v36, %v3594_v33 }
 0x4f2   :  { %v4795_v37 = vpop.f32.mrb[88].mxu0 }
 0x4f3   :  { %v4769_v22 = vpop.f32.mrb[76].mxu1  ;;  %v3539_v29 = vmul.f32 %v7065_v61, %v4795_v37  ;;  %v3089_v9 = vpop.f32.mrb[89].mxu0 }
 0x4f4   :  { %v3527_v5 = vmul.f32 %v7092_v11, %v4769_v22  ;;  %v2916_v6 = vpop.f32.mrb[77].mxu1  ;;  %v3538_v55 = vmul.f32 %v7065_v61, %v3089_v9 }
 0x4f5   :  { %v3616_v3 = vsel %vm59_vm0, %v3539_v29, 0.0  ;;  %v3526_v40 = vmul.f32 %v7092_v11, %v2916_v6 }
 0x4f6   :  { %v3590_v16 = vsel %vm59_vm0, %v3527_v5, 0.0  ;;  %v3617_v34 = vadd.f32 %v3616_v3, %v3615_v56  ;;  %v3609_v18 = vsel %vm59_vm0, %v3538_v55, 0.0 }
 0x4f7   :  { %v3591_v0 = vadd.f32 %v3590_v16, %v3589_v15  ;;  %v3583_v1 = vsel %vm59_vm0, %v3526_v40, 0.0  ;;  %v3610_v49 = vadd.f32 %v3609_v18, %v3608_v46 }
 0x4f8   :  { %v3584_v13 = vadd.f32 %v3583_v1, %v3582_v24 }
 0x4fa   :  { %4877 = vmatprep.mubr.msk.f32.mxu1 %vm59_vm0, %v3584_v13  ;;  %v4798_v44 = vpop.f32.mrb[90].mxu0 }
 0x4fb   :  { %v4772_v41 = vpop.f32.mrb[78].mxu1  ;;  %v3541_v43 = vmul.f32 %v7065_v61, %v4798_v44  ;;  %4878 = vmatmul.mubr.msk.f32.vlgmr.msra.gmra.mrb[96].mxu1 %vm59_vm0, %v3591_v0  ;;  %v3099_v33 = vpop.f32.mrb[91].mxu0 }
 0x4fc   :  { %v3529_v60 = vmul.f32 %v7092_v11, %v4772_v41  ;;  %v2926_v62 = vpop.f32.mrb[79].mxu1  ;;  %v3540_v57 = vmul.f32 %v7065_v61, %v3099_v33 }
 0x4fd   :  { %v3630_v63 = vsel %vm59_vm0, %v3541_v43, 0.0  ;;  %v3528_v54 = vmul.f32 %v7092_v11, %v2926_v62 }
 0x4fe   :  { %v3604_v2 = vsel %vm59_vm0, %v3529_v60, 0.0  ;;  %v3631_v7 = vadd.f32 %v3630_v63, %v3629_v4  ;;  %v3623_v45 = vsel %vm59_vm0, %v3540_v57, 0.0 }
 0x4ff   :  { %v3605_v48 = vadd.f32 %v3604_v2, %v3603_v47  ;;  %v3597_v52 = vsel %vm59_vm0, %v3528_v54, 0.0  ;;  %v3624_v59 = vadd.f32 %v3623_v45, %v3622_v42 }
 0x500   :  { %v3598_v10 = vadd.f32 %v3597_v52, %v3596_v53 }
 0x502   :  { %4880 = vmatprep.mubr.msk.f32.mxu1 %vm59_vm0, %v3598_v10  ;;  %v4815_v20 = vpop.f32.mrb[80].mxu1 }
 0x503   :  { %v4801_v38 = vpop.f32.mrb[92].mxu0  ;;  %4881 = vmatmul.mubr.msk.f32.gmra.mrb[98].mxu1 %vm59_vm0, %v3605_v48  ;;  %v3242_v56 = vpop.f32.mrb[81].mxu1  ;;  %v3547_v51 = vmul.f32 %v7036_v12, %v4815_v20 }
 0x504   :  { %v3543_v39 = vmul.f32 %v7092_v11, %v4801_v38  ;;  %v3109_v15 = vpop.f32.mrb[93].mxu0  ;;  %v3546_v4 = vmul.f32 %v7036_v12, %v3242_v56 }
 0x505   :  { %v3542_v25 = vmul.f32 %v7092_v11, %v3109_v15  ;;  %v3641_v37 = vsel %vm59_vm0, %v3547_v51, 0.0 }
 0x506   :  { %v3618_v46 = vsel %vm59_vm0, %v3543_v39, 0.0  ;;  %v3634_v29 = vsel %vm59_vm0, %v3546_v4, 0.0 }
 0x507   :  { %v3619_v24 = vadd.f32 %v3618_v46, %v3617_v34  ;;  %v3611_v30 = vsel %vm59_vm0, %v3542_v25, 0.0 }
 0x508   :  { %v3612_v27 = vadd.f32 %v3611_v30, %v3610_v49 }
 0x50a   :  { %4883 = vmatprep.mubr.msk.f32.mxu1 %vm59_vm0, %v3612_v27  ;;  %v4818_v26 = vpop.f32.mrb[82].mxu1 }
 0x50b   :  { %v4804_v50 = vpop.f32.mrb[94].mxu0  ;;  %4884 = vmatmul.mubr.msk.f32.gmra.mrb[100].mxu1 %vm59_vm0, %v3619_v24  ;;  %v3252_v35 = vpop.f32.mrb[83].mxu1  ;;  %v3549_v55 = vmul.f32 %v7036_v12, %v4818_v26 }
 0x50c   :  { %v3545_v8 = vmul.f32 %v7092_v11, %v4804_v50  ;;  %v3119_v17 = vpop.f32.mrb[95].mxu0  ;;  %v3548_v3 = vmul.f32 %v7036_v12, %v3252_v35 }
 0x50d   :  { %v3544_v14 = vmul.f32 %v7092_v11, %v3119_v17  ;;  %v3655_v49 = vsel %vm59_vm0, %v3549_v55, 0.0 }
 0x50e   :  { %v3632_v21 = vsel %vm59_vm0, %v3545_v8, 0.0  ;;  %v3648_v44 = vsel %vm59_vm0, %v3548_v3, 0.0 }
 0x50f   :  { %v3633_v19 = vadd.f32 %v3632_v21, %v3631_v7  ;;  %v3625_v28 = vsel %vm59_vm0, %v3544_v14, 0.0 }
 0x510   :  { %v3626_v32 = vadd.f32 %v3625_v28, %v3624_v59 }
 0x512   :  { %4886 = vmatprep.mubr.msk.f32.mxu1 %vm59_vm0, %v3626_v32  ;;  %v4847_v58 = vpop.f32.mrb[96].mxu0 }
 0x513   :  { %v4821_v23 = vpop.f32.mrb[84].mxu1  ;;  %4887 = vmatmul.mubr.msk.f32.gmra.mrb[102].mxu1 %vm59_vm0, %v3633_v19  ;;  %v3435_v47 = vpop.f32.mrb[97].mxu0  ;;  %v3563_v60 = vmul.f32 %v7036_v12, %v4847_v58 }
 0x514   :  { %v3551_v36 = vmul.f32 %v7043_v31, %v4821_v23  ;;  %v3262_v42 = vpop.f32.mrb[85].mxu1  ;;  %v3562_v57 = vmul.f32 %v7036_v12, %v3435_v47 }
 0x515   :  { %v3550_v53 = vmul.f32 %v7043_v31, %v3262_v42  ;;  %v3669_v10 = vsel %vm59_vm0, %v3563_v60, 0.0 }
 0x516   :  { %v3642_v22 = vsel %vm59_vm0, %v3551_v36, 0.0  ;;  %v3662_v39 = vsel %vm59_vm0, %v3562_v57, 0.0 }
 0x517   :  { %v3643_v9 = vadd.f32 %v3642_v22, %v3641_v37  ;;  %v3635_v5 = vsel %vm59_vm0, %v3550_v53, 0.0 }
 0x518   :  { %v3636_v6 = vadd.f32 %v3635_v5, %v3634_v29 }
 0x51b   :  { %v4824_v40 = vpop.f32.mrb[86].mxu1 }
 0x51c   :  { %v3553_v16 = vmul.f32 %v7043_v31, %v4824_v40  ;;  %v4850_v34 = vpop.f32.mrb[98].mxu0  ;;  %v3272_v18 = vpop.f32.mrb[87].mxu1 }
 0x51d   :  { %v3552_v0 = vmul.f32 %v7043_v31, %v3272_v18  ;;  %v3445_v1 = vpop.f32.mrb[99].mxu0  ;;  %v3565_v30 = vmul.f32 %v7036_v12, %v4850_v34 }
 0x51e   :  { %v3656_v13 = vsel %vm59_vm0, %v3553_v16, 0.0  ;;  %v3564_v26 = vmul.f32 %v7036_v12, %v3445_v1 }
 0x51f   :  { %v3657_v41 = vadd.f32 %v3656_v13, %v3655_v49  ;;  %v3649_v43 = vsel %vm59_vm0, %v3552_v0, 0.0  ;;  %v3683_v32 = vsel %vm59_vm0, %v3565_v30, 0.0 }
 0x520   :  { %v3650_v33 = vadd.f32 %v3649_v43, %v3648_v44  ;;  %v3676_v4 = vsel %vm59_vm0, %v3564_v26, 0.0 }
 0x523   :  { %v4827_v62 = vpop.f32.mrb[88].mxu1 }
 0x524   :  { %v3555_v63 = vmul.f32 %v7065_v61, %v4827_v62  ;;  %v4853_v54 = vpop.f32.mrb[100].mxu0  ;;  %v3282_v2 = vpop.f32.mrb[89].mxu1 }
 0x525   :  { %v3567_v7 = vmul.f32 %v7043_v31, %v4853_v54  ;;  %v3554_v45 = vmul.f32 %v7065_v61, %v3282_v2  ;;  %v3455_v48 = vpop.f32.mrb[101].mxu0 }
 0x526   :  { %v3644_v52 = vsel %vm59_vm0, %v3555_v63, 0.0  ;;  %v3566_v59 = vmul.f32 %v7043_v31, %v3455_v48 }
 0x527   :  { %v3645_v20 = vadd.f32 %v3644_v52, %v3643_v9  ;;  %v3670_v38 = vsel %vm59_vm0, %v3567_v7, 0.0  ;;  %v3637_v56 = vsel %vm59_vm0, %v3554_v45, 0.0 }
 0x528   :  { %v3671_v15 = vadd.f32 %v3670_v38, %v3669_v10  ;;  %v3638_v25 = vadd.f32 %v3637_v56, %v3636_v6  ;;  %v3663_v46 = vsel %vm59_vm0, %v3566_v59, 0.0 }
 0x529   :  { %v3664_v24 = vadd.f32 %v3663_v46, %v3662_v39 }
 0x52b   :  { %v4830_v27 = vpop.f32.mrb[90].mxu1 }
 0x52c   :  { %v3557_v50 = vmul.f32 %v7065_v61, %v4830_v27  ;;  %v4856_v35 = vpop.f32.mrb[102].mxu0  ;;  %v3292_v8 = vpop.f32.mrb[91].mxu1 }
 0x52d   :  { %v3569_v17 = vmul.f32 %v7043_v31, %v4856_v35  ;;  %v3556_v14 = vmul.f32 %v7065_v61, %v3292_v8  ;;  %v3465_v21 = vpop.f32.mrb[103].mxu0  ;;  %v4156_v8 = vld [vmem:[%s7272_s8] ss:$0 sm:$0xff] }
 0x52e   :  { %v3658_v19 = vsel %vm59_vm0, %v3557_v50, 0.0  ;;  %v3568_v28 = vmul.f32 %v7043_v31, %v3465_v21 }
 0x52f   :  { %v3659_v51 = vadd.f32 %v3658_v19, %v3657_v41  ;;  %v3684_v58 = vsel %vm59_vm0, %v3569_v17, 0.0  ;;  %v3651_v12 = vsel %vm59_vm0, %v3556_v14, 0.0 }
 0x530   :  { %v3685_v23 = vadd.f32 %v3684_v58, %v3683_v32  ;;  %v3652_v47 = vadd.f32 %v3651_v12, %v3650_v33  ;;  %v3677_v36 = vsel %vm59_vm0, %v3568_v28, 0.0 }
 0x531   :  { %v3678_v42 = vadd.f32 %v3677_v36, %v3676_v4 }
 0x533   :  { %v4833_v53 = vpop.f32.mrb[92].mxu1 }
 0x534   :  { %v3559_v37 = vmul.f32 %v7092_v11, %v4833_v53  ;;  %v4859_v22 = vpop.f32.mrb[104].mxu0  ;;  %v3302_v29 = vpop.f32.mrb[93].mxu1 }
 0x535   :  { %v3571_v31 = vmul.f32 %v7065_v61, %v4859_v22  ;;  %v3558_v9 = vmul.f32 %v7092_v11, %v3302_v29  ;;  %v3475_v5 = vpop.f32.mrb[105].mxu0 }
 0x536   :  { %v3646_v6 = vsel %vm59_vm0, %v3559_v37, 0.0  ;;  %v3570_v55 = vmul.f32 %v7065_v61, %v3475_v5 }
 0x537   :  { %v3647_v3 = vadd.f32 %v3646_v6, %v3645_v20  ;;  %v3672_v40 = vsel %vm59_vm0, %v3571_v31, 0.0  ;;  %v3639_v16 = vsel %vm59_vm0, %v3558_v9, 0.0 }
 0x538   :  { %v3673_v34 = vadd.f32 %v3672_v40, %v3671_v15  ;;  %v3640_v18 = vadd.f32 %v3639_v16, %v3638_v25  ;;  %v3665_v0 = vsel %vm59_vm0, %v3570_v55, 0.0 }
 0x539   :  { %v3666_v1 = vadd.f32 %v3665_v0, %v3664_v24 }
 0x53a   :  { %4889 = vmatprep.mubr.msk.f32.mxu1 %vm59_vm0, %v3640_v18 }
 0x53b   :  { %v4836_v49 = vpop.f32.mrb[94].mxu1  ;;  %4890 = vmatmul.mubr.msk.f32.gmra.mrb[104].mxu1 %vm59_vm0, %v3647_v3 }
 0x53c   :  { %v3561_v13 = vmul.f32 %v7092_v11, %v4836_v49  ;;  %v3312_v44 = vpop.f32.mrb[95].mxu1 }
 0x53d   :  { %v3560_v41 = vmul.f32 %v7092_v11, %v3312_v44 }
 0x53e   :  { %v3660_v43 = vsel %vm59_vm0, %v3561_v13, 0.0 }
 0x53f   :  { %v3661_v33 = vadd.f32 %v3660_v43, %v3659_v51  ;;  %v3653_v60 = vsel %vm59_vm0, %v3560_v41, 0.0  ;;  %v4862_v62 = vpop.f32.mrb[106].mxu0 }
 0x540   :  { %v3654_v57 = vadd.f32 %v3653_v60, %v3652_v47  ;;  %v3573_v63 = vmul.f32 %v7065_v61, %v4862_v62  ;;  %v3485_v54 = vpop.f32.mrb[107].mxu0 }
 0x541   :  { %v3572_v2 = vmul.f32 %v7065_v61, %v3485_v54 }
 0x542   :  { %v3686_v7 = vsel %vm59_vm0, %v3573_v63, 0.0  ;;  %4892 = vmatprep.mubr.msk.f32.mxu1 %vm59_vm0, %v3654_v57 }
 0x543   :  { %v3687_v45 = vadd.f32 %v3686_v7, %v3685_v23  ;;  %v3679_v48 = vsel %vm59_vm0, %v3572_v2, 0.0  ;;  %v4865_v52 = vpop.f32.mrb[108].mxu0  ;;  %4893 = vmatmul.mubr.msk.f32.gmra.mrb[106].mxu1 %vm59_vm0, %v3661_v33 }
 0x544   :  { %v3680_v59 = vadd.f32 %v3679_v48, %v3678_v42  ;;  %v3575_v10 = vmul.f32 %v7092_v11, %v4865_v52  ;;  %v3495_v20 = vpop.f32.mrb[109].mxu0 }
 0x545   :  { %v3574_v38 = vmul.f32 %v7092_v11, %v3495_v20 }
 0x546   :  { %v3674_v56 = vsel %vm59_vm0, %v3575_v10, 0.0 }
 0x547   :  { %v3675_v39 = vadd.f32 %v3674_v56, %v3673_v34  ;;  %v3667_v61 = vsel %vm59_vm0, %v3574_v38, 0.0  ;;  %v4868_v15 = vpop.f32.mrb[110].mxu0 }
 0x548   :  { %v3668_v25 = vadd.f32 %v3667_v61, %v3666_v1  ;;  %v3577_v46 = vmul.f32 %v7092_v11, %v4868_v15  ;;  %v3505_v24 = vpop.f32.mrb[111].mxu0 }
 0x549   :  { %v3576_v30 = vmul.f32 %v7092_v11, %v3505_v24 }
 0x54a   :  { %v3688_v27 = vsel %vm59_vm0, %v3577_v46, 0.0  ;;  %4895 = vmatprep.mubr.msk.f32.mxu1 %vm59_vm0, %v3668_v25 }
 0x54b   :  { %v3689_v26 = vadd.f32 %v3688_v27, %v3687_v45  ;;  %v3681_v50 = vsel %vm59_vm0, %v3576_v30, 0.0  ;;  %4896 = vmatmul.mubr.msk.f32.gmra.mrb[108].mxu1 %vm59_vm0, %v3675_v39 }
 0x54c   :  { %v3682_v35 = vadd.f32 %v3681_v50, %v3680_v59 }
 0x54e   :  { %4898 = vmatprep.mubr.msk.f32.mxu1 %vm59_vm0, %v3682_v35 }
 0x54f   :  { %4899 = vmatmul.mubr.msk.f32.gmra.mrb[110].mxu1 %vm59_vm0, %v3689_v26 }
 0x5ce   :  { %v4879_v17 = vpop.f32.mrb[96].mxu1 }
 0x5cf   :  { %v3821_v11 = vadd.f32 %v4879_v17, %v4156_v8  ;;  %v3815_v14 = vpop.f32.mrb[97].mxu1 }
 0x5d0   :  { %v3816_v21 = vadd.f32 %v4156_v8, %v3815_v14 }
 0x5d1   :  { %3895 = vst.msk [vmem:[%s7273_s9 + $0x8] sm:$0xff] %vm59_vm0, %v3821_v11 }
 0x5d2   :  { %3894 = vst.msk [vmem:[%s7273_s9] sm:$0xff] %vm59_vm0, %v3816_v21 }
 0x5d6   :  { %v4882_v19 = vpop.f32.mrb[98].mxu1 }
 0x5d7   :  { %v3831_v28 = vadd.f32 %v4882_v19, %v4156_v8  ;;  %v3825_v32 = vpop.f32.mrb[99].mxu1 }
 0x5d8   :  { %v3826_v51 = vadd.f32 %v4156_v8, %v3825_v32 }
 0x5d9   :  { %3897 = vst.msk [vmem:[%s7273_s9 + $0x18] sm:$0xff] %vm59_vm0, %v3831_v28 }
 0x5da   :  { %3896 = vst.msk [vmem:[%s7273_s9 + $0x10] sm:$0xff] %vm59_vm0, %v3826_v51 }
 0x5de   :  { %v4885_v58 = vpop.f32.mrb[100].mxu1 }
 0x5df   :  { %v3841_v12 = vadd.f32 %v4885_v58, %v4156_v8  ;;  %v3835_v4 = vpop.f32.mrb[101].mxu1 }
 0x5e0   :  { %v3836_v23 = vadd.f32 %v4156_v8, %v3835_v4 }
 0x5e1   :  { %3899 = vst.msk [vmem:[%s7273_s9 + $0x28] sm:$0xff] %vm59_vm0, %v3841_v12 }
 0x5e2   :  { %3898 = vst.msk [vmem:[%s7273_s9 + $0x20] sm:$0xff] %vm59_vm0, %v3836_v23 }
 0x5e6   :  { %v4888_v47 = vpop.f32.mrb[102].mxu1 }
 0x5e7   :  { %v3851_v36 = vadd.f32 %v4888_v47, %v4156_v8  ;;  %v3845_v42 = vpop.f32.mrb[103].mxu1 }
 0x5e8   :  { %v3846_v53 = vadd.f32 %v4156_v8, %v3845_v42 }
 0x5e9   :  { %3901 = vst.msk [vmem:[%s7273_s9 + $0x38] sm:$0xff] %vm59_vm0, %v3851_v36 }
 0x5ea   :  { %3900 = vst.msk [vmem:[%s7273_s9 + $0x30] sm:$0xff] %vm59_vm0, %v3846_v53 }
 0x60e   :  { %v4891_v37 = vpop.f32.mrb[104].mxu1 }
 0x60f   :  { %v3861_v22 = vadd.f32 %v4891_v37, %v4156_v8  ;;  %v3855_v29 = vpop.f32.mrb[105].mxu1 }
 0x610   :  { %v3856_v31 = vadd.f32 %v4156_v8, %v3855_v29 }
 0x611   :  { %3903 = vst.msk [vmem:[%s7273_s9 + $0x48] sm:$0xff] %vm59_vm0, %v3861_v22 }
 0x612   :  { %3902 = vst.msk [vmem:[%s7273_s9 + $0x40] sm:$0xff] %vm59_vm0, %v3856_v31 }
 0x616   :  { %v4894_v9 = vpop.f32.mrb[106].mxu1 }
 0x617   :  { %v3871_v5 = vadd.f32 %v4894_v9, %v4156_v8  ;;  %v3865_v6 = vpop.f32.mrb[107].mxu1 }
 0x618   :  { %v3866_v55 = vadd.f32 %v4156_v8, %v3865_v6 }
 0x619   :  { %3905 = vst.msk [vmem:[%s7273_s9 + $0x58] sm:$0xff] %vm59_vm0, %v3871_v5 }
 0x61a   :  { %3904 = vst.msk [vmem:[%s7273_s9 + $0x50] sm:$0xff] %vm59_vm0, %v3866_v55 }
 0x61e   :  { %v4897_v3 = vpop.f32.mrb[108].mxu1 }
 0x61f   :  { %v3881_v40 = vadd.f32 %v4897_v3, %v4156_v8  ;;  %v3875_v16 = vpop.f32.mrb[109].mxu1 }
 0x620   :  { %v3876_v34 = vadd.f32 %v4156_v8, %v3875_v16 }
 0x621   :  { %3907 = vst.msk [vmem:[%s7273_s9 + $0x68] sm:$0xff] %vm59_vm0, %v3881_v40 }
 0x622   :  { %3906 = vst.msk [vmem:[%s7273_s9 + $0x60] sm:$0xff] %vm59_vm0, %v3876_v34  ;;  %v4900_v18 = vpop.f32.mrb[110].mxu1 }
 0x623   :  { %v3891_v0 = vadd.f32 %v4900_v18, %v4156_v8  ;;  %v3885_v1 = vpop.f32.mrb[111].mxu1 }
 0x624   :  { %v3886_v49 = vadd.f32 %v4156_v8, %v3885_v1 }
 0x625   :  { %3909 = vst.msk [vmem:[%s7273_s9 + $0x78] sm:$0xff] %vm59_vm0, %v3891_v0 }
 0x626   :  { %3908 = vst.msk [vmem:[%s7273_s9 + $0x70] sm:$0xff] %vm59_vm0, %v3886_v49 }

</bundles_post_ra>
